<compile_context>
chip_gen: v6e
topology: v6e:2x2x1
jax: 0.10.0
libtpu: 0.0.40
codegen_flags: <defaults>
</compile_context>

<pallas_src>
import jax
import jax.numpy as jnp
from jax.experimental import pallas as pl
from jax.experimental.pallas import tpu as pltpu

KERNEL_SIZE = 5  # matches TempMaskedDist(kernel_size=5); avg_filter = ones/k^2


def _temp_masked_l2_kernel(p_ref, t_ref, m_ref, k_ref, sq_ref, cnt_ref):
    # p_ref/t_ref/m_ref: (T, F) f32 slab for one batch; k_ref: (F, F) blur matrix.
    p = p_ref[...]
    tg = t_ref[...]
    m = m_ref[...]

    # Blur all T frames in one MXU matmul (M = T is sublane-aligned), then take
    # temporal differences; blur is linear so this equals blurring the diffs.
    btg = jnp.dot(tg, k_ref[...], preferred_element_type=jnp.float32)   # (T, F)

    dp = p[1:] - p[:-1]          # temporal diff of preds      (T-1, F)
    blur = btg[1:] - btg[:-1]    # blurred temporal diff of targets
    mm = m[1:] * m[:-1]          # mask_time = mask[1:] * mask[:-1]

    # MaskedDist (L2) numerator / denominator partials for this batch.
    d = (dp - blur) * mm
    sq_ref[...] = jnp.sum(d * d, keepdims=True)                          # (1, 1)
    cnt_ref[...] = jnp.sum((mm > 0).astype(jnp.float32), keepdims=True)  # (1, 1)


def _band(n, half):
    i = jnp.arange(n)
    return (jnp.abs(i[:, None] - i[None, :]) <= half).astype(jnp.float32)


def temp_masked_dist(preds, targets, mask, kernel_size=KERNEL_SIZE):
    """Pallas TPU implementation of TempMaskedDist(distance_type='L2', kernel_size=5)."""
    assert preds.shape == targets.shape == mask.shape
    B, T, C, H, W = preds.shape
    if T < 2:
        # No temporal pairs: sum over empty set = 0, denominator = 0 + 1.
        return jnp.zeros((), jnp.float32)

    F = C * H * W
    half = (kernel_size - 1) // 2

    # Hoisted, grid-invariant blur operator (includes the 1/k^2 scale):
    # K[(c,h,w),(c',h',w')] = delta_cc' * B_H[h,h'] * B_W[w,w'] / k^2.
    b_h = _band(H, half)
    b_w = _band(W, half)
    k_mat = (jnp.kron(jnp.kron(jnp.eye(C, dtype=jnp.float32), b_h), b_w)
             / float(kernel_size * kernel_size))                         # (F, F)

    p2 = preds.reshape(B, T, F).astype(jnp.float32)
    t2 = targets.reshape(B, T, F).astype(jnp.float32)
    m2 = mask.reshape(B, T, F).astype(jnp.float32)

    slab = pl.BlockSpec((None, T, F), lambda b: (b, 0, 0))
    const_k = pl.BlockSpec((F, F), lambda b: (0, 0))        # resident in VMEM
    part_out = pl.BlockSpec((None, 1, 1), lambda b: (b, 0, 0))

    sq, cnt = pl.pallas_call(
        _temp_masked_l2_kernel,
        out_shape=(jax.ShapeDtypeStruct((B, 1, 1), jnp.float32),
                   jax.ShapeDtypeStruct((B, 1, 1), jnp.float32)),
        grid_spec=pltpu.PrefetchScalarGridSpec(
            num_scalar_prefetch=0,
            grid=(B,),
            in_specs=[slab, slab, slab, const_k],
            out_specs=(part_out, part_out),
        ),
        compiler_params=pltpu.CompilerParams(
            dimension_semantics=("parallel",),
            vmem_limit_bytes=32 * 1024 * 1024),
    )(p2, t2, m2, k_mat)

    # Final (tiny) reduction over per-batch partials done in the wrapper.
    return jnp.sum(sq) / (jnp.sum(cnt) + 1.0)


def _reference(preds, targets, mask, k=KERNEL_SIZE):
    """Pure-JAX reference mirroring the PyTorch module."""
    dp = preds[:, 1:] - preds[:, :-1]
    dt = targets[:, 1:] - targets[:, :-1]
    pad = (k - 1) // 2
    xp = jnp.pad(dt, ((0, 0), (0, 0), (0, 0), (pad, pad), (pad, pad)))
    blur = jnp.zeros_like(dt)
    H, W = dt.shape[-2:]
    for di in range(k):
        for dj in range(k):
            blur = blur + xp[..., di:di + H, dj:dj + W]
    blur = blur / (k * k)
    m = mask[:, 1:] * mask[:, :-1]
    num = jnp.sum((dp * m - blur * m) ** 2)
    den = jnp.sum((m > 0).astype(jnp.float32)) + 1.0
    return num / den


if __name__ == "__main__":
    key = jax.random.PRNGKey(0)
    B, T, C, H, W = 2, 8, 4, 16, 16
    kp, kt, km = jax.random.split(key, 3)
    preds = jax.random.normal(kp, (B, T, C, H, W), dtype=jnp.float32)
    targets = jax.random.normal(kt, (B, T, C, H, W), dtype=jnp.float32)
    mask = jax.random.bernoulli(km, 0.7, (B, T, C, H, W)).astype(jnp.float32)

    loss = jax.block_until_ready(temp_masked_dist(preds, targets, mask))
    ref = jax.block_until_ready(_reference(preds, targets, mask))

    assert jnp.isfinite(loss), "non-finite loss"
    assert jnp.allclose(loss, ref, rtol=1e-4, atol=1e-5), (loss, ref)
    print("KERNEL_OK")
</pallas_src>

<mosaic_0001>
module attributes {stable_mosaic.version = 11 : i64} {
  func.func @_temp_masked_l2_kernel(%arg0: i32, %arg1: memref<1x8x1024xf32, #tpu.memory_space<vmem>>, %arg2: memref<1x8x1024xf32, #tpu.memory_space<vmem>>, %arg3: memref<1x8x1024xf32, #tpu.memory_space<vmem>>, %arg4: memref<1024x1024xf32, #tpu.memory_space<vmem>>, %arg5: memref<1x1x1xf32, #tpu.memory_space<vmem>>, %arg6: memref<1x1x1xf32, #tpu.memory_space<vmem>>) attributes {dimension_semantics = [#tpu.dimension_semantics<parallel>], iteration_bounds = array<i64: 2>, scalar_prefetch = 0 : i64, scratch_operands = 0 : i64, tpu.core_type = #tpu.core_type<tc>, window_params = [{transform_indices = @transform_0, window_bounds = array<i64: 1, 8, 1024>}, {transform_indices = @transform_1, window_bounds = array<i64: 1, 8, 1024>}, {transform_indices = @transform_2, window_bounds = array<i64: 1, 8, 1024>}, {pipeline_mode = #tpu.pipeline_mode<synchronous>, transform_indices = @transform_3, window_bounds = array<i64: 1024, 1024>}, {transform_indices = @transform_4, window_bounds = array<i64: 1, 1, 1>}, {transform_indices = @transform_5, window_bounds = array<i64: 1, 1, 1>}]} {
    %c0 = arith.constant 0 : index
    %c0_0 = arith.constant 0 : index
    %c0_1 = arith.constant 0 : index
    %0 = vector.load %arg1[%c0, %c0_0, %c0_1] : memref<1x8x1024xf32, #tpu.memory_space<vmem>>, vector<1x8x1024xf32>
    %1 = vector.shape_cast %0 : vector<1x8x1024xf32> to vector<8x1024xf32>
    %c0_2 = arith.constant 0 : index
    %c0_3 = arith.constant 0 : index
    %c0_4 = arith.constant 0 : index
    %2 = vector.load %arg2[%c0_2, %c0_3, %c0_4] : memref<1x8x1024xf32, #tpu.memory_space<vmem>>, vector<1x8x1024xf32>
    %3 = vector.shape_cast %2 : vector<1x8x1024xf32> to vector<8x1024xf32>
    %c0_5 = arith.constant 0 : index
    %c0_6 = arith.constant 0 : index
    %c0_7 = arith.constant 0 : index
    %4 = vector.load %arg3[%c0_5, %c0_6, %c0_7] : memref<1x8x1024xf32, #tpu.memory_space<vmem>>, vector<1x8x1024xf32>
    %5 = vector.shape_cast %4 : vector<1x8x1024xf32> to vector<8x1024xf32>
    %c0_8 = arith.constant 0 : index
    %c0_9 = arith.constant 0 : index
    %6 = vector.load %arg4[%c0_8, %c0_9] : memref<1024x1024xf32, #tpu.memory_space<vmem>>, vector<1024x1024xf32>
    %cst = arith.constant dense<0.000000e+00> : vector<8x1024xf32>
    %7 = tpu.matmul %3, %6, %cst {dimension_numbers = #tpu.dot_dimension_numbers<[1], [0], [0], [1], [0, 0, 1, 1], [], []>} : vector<8x1024xf32>, vector<1024x1024xf32>, vector<8x1024xf32> -> vector<8x1024xf32>
    %8 = vector.extract_strided_slice %1 {offsets = [1, 0], sizes = [7, 1024], strides = [1, 1]} : vector<8x1024xf32> to vector<7x1024xf32>
    %9 = vector.extract_strided_slice %1 {offsets = [0, 0], sizes = [7, 1024], strides = [1, 1]} : vector<8x1024xf32> to vector<7x1024xf32>
    %10 = arith.subf %8, %9 : vector<7x1024xf32>
    %11 = vector.extract_strided_slice %7 {offsets = [1, 0], sizes = [7, 1024], strides = [1, 1]} : vector<8x1024xf32> to vector<7x1024xf32>
    %12 = vector.extract_strided_slice %7 {offsets = [0, 0], sizes = [7, 1024], strides = [1, 1]} : vector<8x1024xf32> to vector<7x1024xf32>
    %13 = arith.subf %11, %12 : vector<7x1024xf32>
    %14 = vector.extract_strided_slice %5 {offsets = [1, 0], sizes = [7, 1024], strides = [1, 1]} : vector<8x1024xf32> to vector<7x1024xf32>
    %15 = vector.extract_strided_slice %5 {offsets = [0, 0], sizes = [7, 1024], strides = [1, 1]} : vector<8x1024xf32> to vector<7x1024xf32>
    %16 = arith.mulf %14, %15 : vector<7x1024xf32>
    %17 = arith.subf %10, %13 : vector<7x1024xf32>
    %18 = arith.mulf %17, %16 : vector<7x1024xf32>
    %19 = arith.mulf %18, %18 : vector<7x1024xf32>
    %20 = vector.shape_cast %19 : vector<7x1024xf32> to vector<1x7x1024xf32>
    %cst_10 = arith.constant dense<0.000000e+00> : vector<1xf32>
    %21 = vector.multi_reduction <add>, %20, %cst_10 [1, 2] : vector<1x7x1024xf32> to vector<1xf32>
    %22 = vector.shape_cast %21 : vector<1xf32> to vector<1x1x1xf32>
    %23 = vector.extract %22[0, 0, 0] : f32 from vector<1x1x1xf32>
    %24 = vector.broadcast %23 : f32 to vector<1x1xf32>
    %c0_11 = arith.constant 0 : index
    %c0_12 = arith.constant 0 : index
    %c0_13 = arith.constant 0 : index
    %25 = vector.load %arg5[%c0_11, %c0_12, %c0_13] : memref<1x1x1xf32, #tpu.memory_space<vmem>>, vector<1x1x1xf32>
    %26 = vector.shape_cast %25 : vector<1x1x1xf32> to vector<1x1xf32>
    %27 = vector.shape_cast %24 : vector<1x1xf32> to vector<1x1x1xf32>
    tpu.vector_store %arg5[%c0_11, %c0_12, %c0_13], %27 {strides = array<i32>} : memref<1x1x1xf32, #tpu.memory_space<vmem>>, vector<1x1x1xf32>,
    %cst_14 = arith.constant 0.000000e+00 : f32
    %28 = vector.broadcast %cst_14 : f32 to vector<7x1024xf32>
    %29 = arith.cmpf ogt, %16, %28 : vector<7x1024xf32>
    %30 = arith.extui %29 : vector<7x1024xi1> to vector<7x1024xi32>
    %31 = arith.sitofp %30 : vector<7x1024xi32> to vector<7x1024xf32>
    %32 = vector.shape_cast %31 : vector<7x1024xf32> to vector<1x7x1024xf32>
    %cst_15 = arith.constant dense<0.000000e+00> : vector<1xf32>
    %33 = vector.multi_reduction <add>, %32, %cst_15 [1, 2] : vector<1x7x1024xf32> to vector<1xf32>
    %34 = vector.shape_cast %33 : vector<1xf32> to vector<1x1x1xf32>
    %35 = vector.extract %34[0, 0, 0] : f32 from vector<1x1x1xf32>
    %36 = vector.broadcast %35 : f32 to vector<1x1xf32>
    %c0_16 = arith.constant 0 : index
    %c0_17 = arith.constant 0 : index
    %c0_18 = arith.constant 0 : index
    %37 = vector.load %arg6[%c0_16, %c0_17, %c0_18] : memref<1x1x1xf32, #tpu.memory_space<vmem>>, vector<1x1x1xf32>
    %38 = vector.shape_cast %37 : vector<1x1x1xf32> to vector<1x1xf32>
    %39 = vector.shape_cast %36 : vector<1x1xf32> to vector<1x1x1xf32>
    tpu.vector_store %arg6[%c0_16, %c0_17, %c0_18], %39 {strides = array<i32>} : memref<1x1x1xf32, #tpu.memory_space<vmem>>, vector<1x1x1xf32>,
    return
  }
  func.func @transform_0(%arg0: i32) -> (i32, i32, i32) {
    %c0_i32 = arith.constant 0 : i32
    %c0_i32_0 = arith.constant 0 : i32
    %c0_i32_1 = arith.constant 0 : i32
    return %arg0, %c0_i32, %c0_i32_0 : i32, i32, i32
  }
  func.func @transform_1(%arg0: i32) -> (i32, i32, i32) {
    %c0_i32 = arith.constant 0 : i32
    %c0_i32_0 = arith.constant 0 : i32
    %c0_i32_1 = arith.constant 0 : i32
    return %arg0, %c0_i32, %c0_i32_0 : i32, i32, i32
  }
  func.func @transform_2(%arg0: i32) -> (i32, i32, i32) {
    %c0_i32 = arith.constant 0 : i32
    %c0_i32_0 = arith.constant 0 : i32
    %c0_i32_1 = arith.constant 0 : i32
    return %arg0, %c0_i32, %c0_i32_0 : i32, i32, i32
  }
  func.func @transform_3(%arg0: i32) -> (i32, i32) {
    %c0_i32 = arith.constant 0 : i32
    %c0_i32_0 = arith.constant 0 : i32
    %c0_i32_1 = arith.constant 0 : i32
    return %c0_i32, %c0_i32_0 : i32, i32
  }
  func.func @transform_4(%arg0: i32) -> (i32, i32, i32) {
    %c0_i32 = arith.constant 0 : i32
    %c0_i32_0 = arith.constant 0 : i32
    %c0_i32_1 = arith.constant 0 : i32
    return %arg0, %c0_i32, %c0_i32_0 : i32, i32, i32
  }
  func.func @transform_5(%arg0: i32) -> (i32, i32, i32) {
    %c0_i32 = arith.constant 0 : i32
    %c0_i32_0 = arith.constant 0 : i32
    %c0_i32_1 = arith.constant 0 : i32
    return %arg0, %c0_i32, %c0_i32_0 : i32, i32, i32
  }
}

</mosaic_0001>

<bundles_post_ra>
// kernel: tpu_custom_call.1
= control target key start
LH: loop header
LB: loop body
LE: loop exit
PB: predicated region body
PF: predicated region fallthrough
CT: control target
= control target key end

     0   :  { %s3492_s0 = inlined_call_operand.hbm [shape: f32[2,8,1024], index: 0, kind: input, shape index: {}]   ;;  %s3493_s1 = inlined_call_operand.hbm [shape: f32[2,8,1024], index: 1, kind: input, shape index: {}]   ;;  %s3494_s2 = inlined_call_operand.hbm [shape: f32[2,8,1024], index: 2, kind: input, shape index: {}]   ;;  %s3495_s3 = inlined_call_operand.hbm [shape: f32[1024,1024], index: 3, kind: input, shape index: {}]   ;;  %s3496_s4 = inlined_call_operand.vmem [shape: f32[2,1,1], index: 4, kind: output, shape index: {0}]   ;;  %s3497_s5 = inlined_call_operand.vmem [shape: f32[2,1,1], index: 5, kind: output, shape index: {1}]  }
   0x1   :  { %3503 = sst [smem:[#allocation14_spill]] %s3493_s1 }
   0x2   :  { %11 = vsyncpa [#allocation3], 0 }
   0x3   :  { %13 = vsyncpa [#allocation3 + $0x1], 0 }
   0x4   :  { %14 = vsyncpa [#allocation5], 0 }
   0x5   :  { %16 = vsyncpa [#allocation5 + $0x1], 0 }
   0x6   :  { %17 = vsyncpa [#allocation8], 0  ;;  %s3216_s18 = smov 0   ;;  %s3218_s19 = smov 0  }
   0x7   :  { %s3220_s20 = smov 0   ;;  %s3222_s21 = smov 0  }
   0x8 LB: > { %s3237_s22 = sadd.s32 1, %s3177_s21   ;;  %s30_s23 = sadd.s32 1, %s3173_s20  ;;  %s3177_s21 = sphi %s3222_s21, %s3516_s21   ;;  %s3173_s20 = sphi %s3220_s20, %s3520_s20   ;;  %s3169_s19 = sphi %s3218_s19, %s3519_s19   ;;  %s3165_s18 = sphi %s3216_s18, %s3518_s18  }
   0x9   : > { %3504 = sst [smem:[#allocation12_spill]] %s3237_s22  ;;  %s27_s24 = ssub.s32 %s3177_s21, %s3237_s22 }
   0xa   : > { %p37_p0 = scmp.ne.s32.totalorder %s3173_s20, %s3169_s19  ;;  %p28_p1 = scmp.eq.s32.totalorder %s27_s24, 0 }
   0xb   : > { %p38_p2 = scmp.eq.s32.totalorder %s3177_s21, 0  ;;  %p2963_p3 = scmp.lt.s32.totalorder %s3177_s21, 2 }
   0xc   : > { %s3247_s25 = scalar_select %p28_p1, %s3173_s20, %s30_s23  }
   0xd   : > { %p39_p4 = por %p38_p2, %p37_p0  ;;  %s205_s26 = sand.u32 1, %s3173_s20  }
   0xe   : > { %3505 = sst [smem:[#allocation13_spill]] %s3247_s25  ;;  %s3252_s27 = sshll.u32 %s205_s26, 6 }
   0xf   : > { %s3255_s28 = sshll.u32 %s3177_s21, 10  ;;  %p3257_p5 = pnand %p2963_p3, %p39_p4 }
  0x10   : > { %s224_s30 = sand.u32 1, %s3177_s21   ;;  %s3507_s1 = sld [smem:[#allocation14_spill]] }
  0x11   : > { %s228_s9 = scalar_lea.vmem [#allocation4], %s3252_s27  ;;  %s3269_s11 = scalar_lea.sflag [#allocation5], %s224_s30 }
  0x12   : > { %s236_s10 = sshll.u32 %s228_s9, 4  ;;  %p3275_p7 = pneg %p3257_p5  ;;  %s237_s10 = int_to_ptr.vmem [resolvable:$true] %s236_s10 }
  0x16   : > { %s3266_s8 = scalar_lea.hbm %s3507_s1, %s3255_s28  ;;  %s3030_s16 = scalar_lea.hbm %s3507_s1, 2048 }
  0x17   : > { %s3025_s12 = scalar_lea.hbm %s3266_s8, 1024  ;;  %p3031_p10 = scmp.lt.s32.totalorder %s3266_s8, %s3507_s1 }
  0x18   : > { %p3026_p6 = scmp.ne.s32.totalorder %s3266_s8, %s3025_s12  ;;  %p3032_p11 = scmp.lt.s32.totalorder %s3030_s16, %s3025_s12 }
  0x1a   : > { %p3028_p8 = pnand %p3275_p7, %p3026_p6  ;;  %p3033_p12 = por %p3032_p11, %p3031_p10 }
  0x1c   : > { %p3029_p9 = pneg %p3028_p8 }
  0x1e   : > { %p3034_p13 = pnand %p3033_p12, %p3029_p9 }
  0x20   : > { %3037 = shalt.err (!%p3034_p13)
}
  0x21   : > { %s3038_s24 = scalar_lea.vmem %s237_s10, 1024  ;;  %s3179_s30 = smov [#allocation4]  }
  0x22   : > { %p3039_p0 = scmp.ne.s32.totalorder %s237_s10, %s3038_s24  ;;  %s3043_s6 = sshll.u32 %s3179_s30, 4  ;;  %s3044_s6 = int_to_ptr.vmem [resolvable:$false] %s3043_s6 }
  0x23   : > { %s3045_s7 = scalar_lea.vmem %s3044_s6, 2048  ;;  %p3046_p3 = scmp.lt.s32.totalorder %s237_s10, %s3044_s6 }
  0x24   : > { %p3041_p1 = pnand %p3039_p0, %p3275_p7  ;;  %p3047_p4 = scmp.lt.s32.totalorder %s3045_s7, %s3038_s24 }
  0x26   : > { %p3042_p2 = pneg %p3041_p1  ;;  %p3048_p6 = por %p3047_p4, %p3046_p3 }
  0x28   : > { %p3049_p8 = pnand %p3048_p6, %p3042_p2 }
  0x2a   : > { %3052 = shalt.err (!%p3049_p8)
}
  0x2b   : > { %2958 = dma.hbm_to_vmem [thread:$0]  (!%p3257_p5), %s3266_s8, 1024, %s237_s10, %s3269_s11  }
  0x2c   : > { %s3295_s9 = sadd.s32 4294967295, %s3177_s21   ;;  %p43_p9 = scmp.ne.s32.totalorder %s3169_s19, %s3165_s18 }
  0x2d   : > { %p3500_p10 = scmp.eq.s32.totalorder %s3295_s9, 0  ;;  %p2904_p11 = scmp.ge.s32.totalorder %s3177_s21, 1 }
  0x2e   : > { %p179_p12 = scmp.lt.s32.totalorder %s3177_s21, 3  ;;  %s3180_s8 = smov [#allocation7]  }
  0x2f   : > { %p3304_p13 = por %p3500_p10, %p43_p9  ;;  %s191_s10 = sshll.u32 %s3180_s8, 4  ;;  %s192_s10 = int_to_ptr.vmem [resolvable:$true] %s191_s10 }
  0x30   : > { %p3308_p0 = pnand %p2904_p11, %p179_p12  ;;  %s3324_s16 = scalar_lea.hbm %s3492_s0, %s3255_s28 }
  0x31   : > { %s3509_s12 = scalar_select %p3304_p13, 1, 0 }
  0x32   : > { %s3510_s14 = scalar_select %p3308_p0, 1, 0 }
  0x33   : > { %p2948_p1 = pneg %p3308_p0  ;;  %s209_s17 = scalar_lea.vmem [#allocation2], %s3252_s27 }
  0x34   : > { %s217_s23 = sshll.u32 %s209_s17, 4  ;;  %s3064_s24 = scalar_lea.vmem %s192_s10, 131072  ;;  %s3327_s23 = int_to_ptr.vmem [resolvable:$true] %s217_s23 }
  0x35   : > { %p3316_p2 = pnand %p2948_p1, %p3500_p10  ;;  %p3065_p4 = scmp.ne.s32.totalorder %s192_s10, %s3064_s24 }
  0x36   : > { %p3072_p9 = scmp.lt.s32.totalorder %s192_s10, %s192_s10  ;;  %p3073_p11 = scmp.lt.s32.totalorder %s3064_s24, %s3064_s24 }
  0x37   : > { %p3055_p3 = pneg %p3316_p2 }
  0x38   : > { %p3074_p12 = por %p3073_p11, %p3072_p9 }
  0x39   : > { %p3067_p6 = pnand %p3065_p4, %p3055_p3 }
  0x3b   : > { %p3068_p8 = pneg %p3067_p6 }
  0x3d   : > { %p3075_p1 = pnand %p3074_p12, %p3068_p8 }
  0x3f   : > { %3078 = shalt.err (!%p3075_p1)
}
  0x40   : > { %s3181_s30 = smov 1024   ;;  %s3182_s6 = smov 64  }
  0x41   : > { %2951 = dma.hbm_to_vmem [thread:$0]  (!%p3316_p2), %s3495_s3, 131072, %s192_s10, [#allocation8], %s3181_s30, %s3181_s30, %s3182_s6  }
  0x42   : > { %s206_s21 = scalar_lea.sflag [#allocation3], %s205_s26  ;;  %s3079_s15 = scalar_lea.hbm %s3324_s16, 1024 }
  0x43   : > { %p3080_p3 = scmp.ne.s32.totalorder %s3324_s16, %s3079_s15  ;;  %s3084_s1 = scalar_lea.hbm %s3492_s0, 2048 }
  0x44   : > { %p3085_p8 = scmp.lt.s32.totalorder %s3324_s16, %s3492_s0  ;;  %p3086_p9 = scmp.lt.s32.totalorder %s3084_s1, %s3079_s15 }
  0x45   : > { %p3082_p4 = pnand %p3080_p3, %p3275_p7 }
  0x46   : > { %p3087_p11 = por %p3086_p9, %p3085_p8 }
  0x47   : > { %p3083_p6 = pneg %p3082_p4 }
  0x49   : > { %p3088_p12 = pnand %p3087_p11, %p3083_p6 }
  0x4b   : > { %3091 = shalt.err (!%p3088_p12)
}
  0x4c   : > { %s3092_s26 = scalar_lea.vmem %s3327_s23, 1024  ;;  %s3183_s10 = smov [#allocation2]  }
  0x4d   : > { %p3093_p2 = scmp.ne.s32.totalorder %s3327_s23, %s3092_s26  ;;  %s3097_s18 = sshll.u32 %s3183_s10, 4  ;;  %s3098_s18 = int_to_ptr.vmem [resolvable:$false] %s3097_s18 }
  0x4e   : > { %s3099_s30 = scalar_lea.vmem %s3098_s18, 2048  ;;  %p3100_p4 = scmp.lt.s32.totalorder %s3327_s23, %s3098_s18 }
  0x4f   : > { %p3095_p1 = pnand %p3093_p2, %p3275_p7  ;;  %p3101_p10 = scmp.lt.s32.totalorder %s3099_s30, %s3092_s26 }
  0x51   : > { %p3096_p3 = pneg %p3095_p1  ;;  %p3102_p13 = por %p3101_p10, %p3100_p4 }
  0x53   : > { %p3103_p0 = pnand %p3102_p13, %p3096_p3 }
  0x55   : > { %3106 = shalt.err (!%p3103_p0)
}
  0x56   : > { %2955 = dma.hbm_to_vmem [thread:$0]  (!%p3257_p5), %s3324_s16, 1024, %s3327_s23, %s206_s21  }
  0x57   : > { %s253_s25 = scalar_lea.hbm %s3494_s2, %s3255_s28  ;;  %s247_s6 = scalar_lea.vmem [#allocation6], %s3252_s27 }
  0x58   : > { %s255_s7 = sshll.u32 %s247_s6, 4  ;;  %s3107_s8 = scalar_lea.hbm %s253_s25, 1024  ;;  %s256_s7 = int_to_ptr.vmem [resolvable:$true] %s255_s7 }
  0x59   : > { %p3108_p6 = scmp.ne.s32.totalorder %s253_s25, %s3107_s8  ;;  %s3112_s24 = scalar_lea.hbm %s3494_s2, 2048 }
  0x5a   : > { %p3113_p0 = scmp.lt.s32.totalorder %s253_s25, %s3494_s2  ;;  %p3114_p8 = scmp.lt.s32.totalorder %s3112_s24, %s3107_s8 }
  0x5b   : > { %p3110_p10 = pnand %p3108_p6, %p3275_p7 }
  0x5c   : > { %p3115_p9 = por %p3114_p8, %p3113_p0 }
  0x5d   : > { %p3111_p13 = pneg %p3110_p10 }
  0x5f   : > { %p3116_p11 = pnand %p3115_p9, %p3111_p13 }
  0x61   : > { %3119 = shalt.err (!%p3116_p11)
}
  0x62   : > { %s3120_s27 = scalar_lea.vmem %s256_s7, 1024  ;;  %s3184_s28 = smov [#allocation6]  }
  0x63   : > { %p3121_p12 = scmp.ne.s32.totalorder %s256_s7, %s3120_s27  ;;  %s3125_s16 = sshll.u32 %s3184_s28, 4  ;;  %s3126_s16 = int_to_ptr.vmem [resolvable:$false] %s3125_s16 }
  0x64   : > { %s3127_s23 = scalar_lea.vmem %s3126_s16, 2048  ;;  %p3128_p3 = scmp.lt.s32.totalorder %s256_s7, %s3126_s16 }
  0x65   : > { %p3123_p2 = pnand %p3121_p12, %p3275_p7  ;;  %p3129_p4 = scmp.lt.s32.totalorder %s3127_s23, %s3120_s27 }
  0x67   : > { %p3124_p1 = pneg %p3123_p2  ;;  %p3130_p6 = por %p3129_p4, %p3128_p3 }
  0x69   : > { %p3131_p10 = pnand %p3130_p6, %p3124_p1 }
  0x6b   : > { %3134 = shalt.err (!%p3131_p10)
}
  0x6c   : > { %2961 = dma.hbm_to_vmem [thread:$0]  (!%p3257_p5), %s253_s25, 1024, %s256_s7, %s3269_s11  }
  0x6d   : > { %p3512_p13 = scmp.ne.s32.totalorder %s3510_s14, 0 }
  0x6e   : > { %s266_s13 = sand.u32 (!%p3512_p13), 1, %s3169_s19   ;;  %p3513_p7 = scmp.ne.s32.totalorder (!%p3512_p13), %s3509_s12, 0 }
  0x6f   : > { %264 = sbr.rel (%p3512_p13) target bundleno = 1071 (0x42f), region = 36  ;;  %s2917_s21 = sshll.u32 (!%p3512_p13), %s266_s13, 6 }
  0x70   : > { %s267_s18 = scalar_lea.sflag (!%p3512_p13), [#allocation3], %s266_s13  ;;  %s3379_s30 = scalar_lea.vmem (!%p3512_p13), [#allocation2], %s2917_s21 }
  0x74   : > { %3152 = dma.done.wait (%p3513_p7), %s267_s18, 1024  }
  0x75   : > { %3154 = vsyncadd (%p3513_p7), %s267_s18, 4294966272  ;;  %s275_s29 = sand.u32 1, %s3295_s9   ;;  %s3386_s11 = scalar_lea.vmem [#allocation4], %s2917_s21 }
  0x76   : > { %s276_s1 = scalar_lea.sflag [#allocation5], %s275_s29 }
  0x77   : > { %3156 = dma.done.wait (%p3513_p7), %s276_s1, 2048  }
  0x78   : > { %3158 = vsyncadd (%p3513_p7), %s276_s1, 4294965248  ;;  %s3392_s14 = scalar_lea.vmem [#allocation6], %s2917_s21  ;;  %p3514_p5 = scmp.eq.s32.totalorder %s3295_s9, 0 }
  0x7a   : > { %3160 = dma.done.wait (%p3514_p5), [#allocation8], 131072   ;;  %p3515_p0 = pmov %p3514_p5 }
  0x7b   : > { %v481_v0 = vld [vmem:[#allocation7 + $0x3c8] sm:$0xff]  ;;  %v480_v2 = vld [vmem:[#allocation7 + $0x3c0] sm:$0xff]  ;;  %vm2664_vm3 = vcmask 1046528   ;;  %p330_p8 = scmp.lt.s32.totalorder %s3295_s9, 1  ;;  %vm2690_vm9 = vcmask 0  }
  0x7c   : > { %3162 = vsyncadd (%p3515_p0), [#allocation8], 4294836224  ;;  %v737_v1 = vld [vmem:[#allocation7 + $0xbc8] sm:$0xff]  ;;  %1384 = vmatprep.subr.mxu0 %v481_v0  ;;  %v736_v3 = vld [vmem:[#allocation7 + $0xbc0] sm:$0xff] }
  0x7d   : > { %1455 = vmatprep.subr.mxu1 %v737_v1  ;;  %v473_v4 = vld [vmem:[#allocation7 + $0x388] sm:$0xff]  ;;  %1385 = vmatpush1.msra.mxu0 %v480_v2  ;;  %v472_v6 = vld [vmem:[#allocation7 + $0x380] sm:$0xff]  ;;  %s3522_s9 = smov (!%p330_p8, %s3295_s9), 1 }
  0x7e   : > { %v729_v5 = vld [vmem:[#allocation7 + $0xb88] sm:$0xff]  ;;  %1456 = vmatpush1.msra.mxu1 %v736_v3  ;;  %v728_v7 = vld [vmem:[#allocation7 + $0xb80] sm:$0xff]  ;;  %1386 = vmatprep.subr.mxu0 %v473_v4  ;;  %s332_s25 = scalar_lea.vmem %s3496_s4, %s3522_s9  ;;  %s335_s15 = scalar_lea.vmem %s3497_s5, %s3522_s9 }
  0x7f   : > { %v465_v8 = vld [vmem:[#allocation7 + $0x348] sm:$0xff]  ;;  %1457 = vmatprep.subr.mxu1 %v729_v5  ;;  %v464_v10 = vld [vmem:[#allocation7 + $0x340] sm:$0xff]  ;;  %1387 = vmatpush1.msra.mxu0 %v472_v6 }
  0x80   : > { %v721_v9 = vld [vmem:[#allocation7 + $0xb48] sm:$0xff]  ;;  %v720_v11 = vld [vmem:[#allocation7 + $0xb40] sm:$0xff]  ;;  %1458 = vmatpush1.msra.mxu1 %v728_v7  ;;  %1388 = vmatprep.subr.mxu0 %v465_v8 }
  0x81   : > { %v457_v12 = vld [vmem:[#allocation7 + $0x308] sm:$0xff]  ;;  %1459 = vmatprep.subr.mxu1 %v721_v9  ;;  %v456_v14 = vld [vmem:[#allocation7 + $0x300] sm:$0xff]  ;;  %1389 = vmatpush1.msra.mxu0 %v464_v10 }
  0x82   : > { %v713_v13 = vld [vmem:[#allocation7 + $0xb08] sm:$0xff]  ;;  %v712_v15 = vld [vmem:[#allocation7 + $0xb00] sm:$0xff]  ;;  %1460 = vmatpush1.msra.mxu1 %v720_v11  ;;  %1390 = vmatprep.subr.mxu0 %v457_v12 }
  0x83   : > { %v449_v16 = vld [vmem:[#allocation7 + $0x2c8] sm:$0xff]  ;;  %1461 = vmatprep.subr.mxu1 %v713_v13  ;;  %v448_v18 = vld [vmem:[#allocation7 + $0x2c0] sm:$0xff]  ;;  %1391 = vmatpush1.msra.mxu0 %v456_v14 }
  0x84   : > { %v705_v17 = vld [vmem:[#allocation7 + $0xac8] sm:$0xff]  ;;  %v704_v19 = vld [vmem:[#allocation7 + $0xac0] sm:$0xff]  ;;  %1462 = vmatpush1.msra.mxu1 %v712_v15  ;;  %1392 = vmatprep.subr.mxu0 %v449_v16 }
  0x85   : > { %v441_v20 = vld [vmem:[#allocation7 + $0x288] sm:$0xff]  ;;  %1463 = vmatprep.subr.mxu1 %v705_v17  ;;  %v440_v22 = vld [vmem:[#allocation7 + $0x280] sm:$0xff]  ;;  %1393 = vmatpush1.msra.mxu0 %v448_v18 }
  0x86   : > { %v697_v21 = vld [vmem:[#allocation7 + $0xa88] sm:$0xff]  ;;  %v696_v23 = vld [vmem:[#allocation7 + $0xa80] sm:$0xff]  ;;  %1464 = vmatpush1.msra.mxu1 %v704_v19  ;;  %1394 = vmatprep.subr.mxu0 %v441_v20 }
  0x87   : > { %v433_v24 = vld [vmem:[#allocation7 + $0x248] sm:$0xff]  ;;  %1465 = vmatprep.subr.mxu1 %v697_v21  ;;  %v432_v26 = vld [vmem:[#allocation7 + $0x240] sm:$0xff]  ;;  %1395 = vmatpush1.msra.mxu0 %v440_v22 }
  0x88   : > { %v689_v25 = vld [vmem:[#allocation7 + $0xa48] sm:$0xff]  ;;  %v688_v27 = vld [vmem:[#allocation7 + $0xa40] sm:$0xff]  ;;  %1466 = vmatpush1.msra.mxu1 %v696_v23  ;;  %1396 = vmatprep.subr.mxu0 %v433_v24 }
  0x89   : > { %v425_v28 = vld [vmem:[#allocation7 + $0x208] sm:$0xff]  ;;  %1467 = vmatprep.subr.mxu1 %v689_v25  ;;  %v424_v30 = vld [vmem:[#allocation7 + $0x200] sm:$0xff]  ;;  %1397 = vmatpush1.msra.mxu0 %v432_v26 }
  0x8a   : > { %v681_v29 = vld [vmem:[#allocation7 + $0xa08] sm:$0xff]  ;;  %v680_v31 = vld [vmem:[#allocation7 + $0xa00] sm:$0xff]  ;;  %1468 = vmatpush1.msra.mxu1 %v688_v27  ;;  %1398 = vmatprep.subr.mxu0 %v425_v28 }
  0x8b   : > { %v417_v32 = vld [vmem:[#allocation7 + $0x1c8] sm:$0xff]  ;;  %1469 = vmatprep.subr.mxu1 %v681_v29  ;;  %v416_v34 = vld [vmem:[#allocation7 + $0x1c0] sm:$0xff]  ;;  %1399 = vmatpush1.msra.mxu0 %v424_v30 }
  0x8c   : > { %v673_v33 = vld [vmem:[#allocation7 + $0x9c8] sm:$0xff]  ;;  %v672_v35 = vld [vmem:[#allocation7 + $0x9c0] sm:$0xff]  ;;  %1470 = vmatpush1.msra.mxu1 %v680_v31  ;;  %1400 = vmatprep.subr.mxu0 %v417_v32 }
  0x8d   : > { %v409_v36 = vld [vmem:[#allocation7 + $0x188] sm:$0xff]  ;;  %1471 = vmatprep.subr.mxu1 %v673_v33  ;;  %v408_v38 = vld [vmem:[#allocation7 + $0x180] sm:$0xff]  ;;  %1401 = vmatpush1.msra.mxu0 %v416_v34 }
  0x8e   : > { %v665_v37 = vld [vmem:[#allocation7 + $0x988] sm:$0xff]  ;;  %v664_v39 = vld [vmem:[#allocation7 + $0x980] sm:$0xff]  ;;  %1472 = vmatpush1.msra.mxu1 %v672_v35  ;;  %1402 = vmatprep.subr.mxu0 %v409_v36 }
  0x8f   : > { %v401_v40 = vld [vmem:[#allocation7 + $0x148] sm:$0xff]  ;;  %1473 = vmatprep.subr.mxu1 %v665_v37  ;;  %v400_v42 = vld [vmem:[#allocation7 + $0x140] sm:$0xff]  ;;  %1403 = vmatpush1.msra.mxu0 %v408_v38 }
  0x90   : > { %v657_v41 = vld [vmem:[#allocation7 + $0x948] sm:$0xff]  ;;  %v656_v43 = vld [vmem:[#allocation7 + $0x940] sm:$0xff]  ;;  %1474 = vmatpush1.msra.mxu1 %v664_v39  ;;  %1404 = vmatprep.subr.mxu0 %v401_v40 }
  0x91   : > { %v393_v44 = vld [vmem:[#allocation7 + $0x108] sm:$0xff]  ;;  %1475 = vmatprep.subr.mxu1 %v657_v41  ;;  %v392_v46 = vld [vmem:[#allocation7 + $0x100] sm:$0xff]  ;;  %1405 = vmatpush1.msra.mxu0 %v400_v42 }
  0x92   : > { %v649_v45 = vld [vmem:[#allocation7 + $0x908] sm:$0xff]  ;;  %v648_v47 = vld [vmem:[#allocation7 + $0x900] sm:$0xff]  ;;  %1476 = vmatpush1.msra.mxu1 %v656_v43  ;;  %1406 = vmatprep.subr.mxu0 %v393_v44 }
  0x93   : > { %v385_v48 = vld [vmem:[#allocation7 + $0xc8] sm:$0xff]  ;;  %1477 = vmatprep.subr.mxu1 %v649_v45  ;;  %v384_v50 = vld [vmem:[#allocation7 + $0xc0] sm:$0xff]  ;;  %1407 = vmatpush1.msra.mxu0 %v392_v46 }
  0x94   : > { %v641_v49 = vld [vmem:[#allocation7 + $0x8c8] sm:$0xff]  ;;  %v640_v51 = vld [vmem:[#allocation7 + $0x8c0] sm:$0xff]  ;;  %1478 = vmatpush1.msra.mxu1 %v648_v47  ;;  %1408 = vmatprep.subr.mxu0 %v385_v48 }
  0x95   : > { %v377_v52 = vld [vmem:[#allocation7 + $0x88] sm:$0xff]  ;;  %1479 = vmatprep.subr.mxu1 %v641_v49  ;;  %v376_v54 = vld [vmem:[#allocation7 + $0x80] sm:$0xff]  ;;  %1409 = vmatpush1.msra.mxu0 %v384_v50 }
  0x96   : > { %v633_v53 = vld [vmem:[#allocation7 + $0x888] sm:$0xff]  ;;  %v632_v55 = vld [vmem:[#allocation7 + $0x880] sm:$0xff]  ;;  %1480 = vmatpush1.msra.mxu1 %v640_v51  ;;  %1410 = vmatprep.subr.mxu0 %v377_v52 }
  0x97   : > { %v369_v56 = vld [vmem:[#allocation7 + $0x48] sm:$0xff]  ;;  %1481 = vmatprep.subr.mxu1 %v633_v53  ;;  %v368_v58 = vld [vmem:[#allocation7 + $0x40] sm:$0xff]  ;;  %1411 = vmatpush1.msra.mxu0 %v376_v54 }
  0x98   : > { %v625_v57 = vld [vmem:[#allocation7 + $0x848] sm:$0xff]  ;;  %v624_v59 = vld [vmem:[#allocation7 + $0x840] sm:$0xff]  ;;  %1482 = vmatpush1.msra.mxu1 %v632_v55  ;;  %1412 = vmatprep.subr.mxu0 %v369_v56 }
  0x99   : > { %v361_v60 = vld [vmem:[#allocation7 + $0x8] sm:$0xff]  ;;  %1483 = vmatprep.subr.mxu1 %v625_v57  ;;  %v360_v62 = vld [vmem:[#allocation7] sm:$0xff]  ;;  %1413 = vmatpush1.msra.mxu0 %v368_v58 }
  0x9a   : > { %v617_v61 = vld [vmem:[#allocation7 + $0x808] sm:$0xff]  ;;  %v616_v63 = vld [vmem:[#allocation7 + $0x800] sm:$0xff]  ;;  %1484 = vmatpush1.msra.mxu1 %v624_v59  ;;  %1414 = vmatprep.subr.mxu0 %v361_v60 }
  0x9b   : > { %v609_v0 = vld [vmem:[#allocation7 + $0x7c8] sm:$0xff]  ;;  %1485 = vmatprep.subr.mxu1 %v617_v61  ;;  %v608_v2 = vld [vmem:[#allocation7 + $0x7c0] sm:$0xff]  ;;  %1415 = vmatpush1.msra.mxu0 %v360_v62 }
  0x9c   : > { %v865_v1 = vld [vmem:[#allocation7 + $0xfc8] sm:$0xff]  ;;  %v864_v3 = vld [vmem:[#allocation7 + $0xfc0] sm:$0xff]  ;;  %1486 = vmatpush1.msra.mxu1 %v616_v63  ;;  %1416 = vmatprep.subr.mxu0 %v609_v0 }
  0x9d   : > { %v601_v4 = vld [vmem:[#allocation7 + $0x788] sm:$0xff]  ;;  %1487 = vmatprep.subr.mxu1 %v865_v1  ;;  %v600_v6 = vld [vmem:[#allocation7 + $0x780] sm:$0xff]  ;;  %1417 = vmatpush2.msra.mxu0 %v608_v2  ;;  %v347_v1 = vld [vmem:[%s3386_s11 + $0x18] sm:$0xff] }
  0x9e   : > { %v857_v5 = vld [vmem:[#allocation7 + $0xf88] sm:$0xff]  ;;  %v856_v7 = vld [vmem:[#allocation7 + $0xf80] sm:$0xff]  ;;  %1488 = vmatpush2.msra.mxu1 %v864_v3  ;;  %1418 = vmatprep.subr.mxu0 %v601_v4  ;;  %v346_v3 = vld [vmem:[%s3386_s11 + $0x10] sm:$0xff] }
  0x9f   : > { %v593_v8 = vld [vmem:[#allocation7 + $0x748] sm:$0xff]  ;;  %1489 = vmatprep.subr.mxu1 %v857_v5  ;;  %v592_v10 = vld [vmem:[#allocation7 + $0x740] sm:$0xff]  ;;  %1419 = vmatpush2.msra.mxu0 %v600_v6 }
  0xa0   : > { %v849_v9 = vld [vmem:[#allocation7 + $0xf48] sm:$0xff]  ;;  %v848_v11 = vld [vmem:[#allocation7 + $0xf40] sm:$0xff]  ;;  %1490 = vmatpush2.msra.mxu1 %v856_v7  ;;  %1420 = vmatprep.subr.mxu0 %v593_v8 }
  0xa1   : > { %v585_v12 = vld [vmem:[#allocation7 + $0x708] sm:$0xff]  ;;  %1491 = vmatprep.subr.mxu1 %v849_v9  ;;  %v584_v14 = vld [vmem:[#allocation7 + $0x700] sm:$0xff]  ;;  %1421 = vmatpush2.msra.mxu0 %v592_v10 }
  0xa2   : > { %v841_v13 = vld [vmem:[#allocation7 + $0xf08] sm:$0xff]  ;;  %v840_v15 = vld [vmem:[#allocation7 + $0xf00] sm:$0xff]  ;;  %1492 = vmatpush2.msra.mxu1 %v848_v11  ;;  %1422 = vmatprep.subr.mxu0 %v585_v12 }
  0xa3   : > { %v577_v16 = vld [vmem:[#allocation7 + $0x6c8] sm:$0xff]  ;;  %1493 = vmatprep.subr.mxu1 %v841_v13  ;;  %v576_v18 = vld [vmem:[#allocation7 + $0x6c0] sm:$0xff]  ;;  %1423 = vmatpush2.msra.mxu0 %v584_v14 }
  0xa4   : > { %v833_v17 = vld [vmem:[#allocation7 + $0xec8] sm:$0xff]  ;;  %v832_v19 = vld [vmem:[#allocation7 + $0xec0] sm:$0xff]  ;;  %1494 = vmatpush2.msra.mxu1 %v840_v15  ;;  %1424 = vmatprep.subr.mxu0 %v577_v16 }
  0xa5   : > { %v569_v20 = vld [vmem:[#allocation7 + $0x688] sm:$0xff]  ;;  %1495 = vmatprep.subr.mxu1 %v833_v17  ;;  %v568_v22 = vld [vmem:[#allocation7 + $0x680] sm:$0xff]  ;;  %1425 = vmatpush2.msra.mxu0 %v576_v18 }
  0xa6   : > { %v825_v21 = vld [vmem:[#allocation7 + $0xe88] sm:$0xff]  ;;  %v824_v23 = vld [vmem:[#allocation7 + $0xe80] sm:$0xff]  ;;  %1496 = vmatpush2.msra.mxu1 %v832_v19  ;;  %1426 = vmatprep.subr.mxu0 %v569_v20 }
  0xa7   : > { %v561_v24 = vld [vmem:[#allocation7 + $0x648] sm:$0xff]  ;;  %1497 = vmatprep.subr.mxu1 %v825_v21  ;;  %v560_v26 = vld [vmem:[#allocation7 + $0x640] sm:$0xff]  ;;  %1427 = vmatpush2.msra.mxu0 %v568_v22 }
  0xa8   : > { %v817_v25 = vld [vmem:[#allocation7 + $0xe48] sm:$0xff]  ;;  %v816_v27 = vld [vmem:[#allocation7 + $0xe40] sm:$0xff]  ;;  %1498 = vmatpush2.msra.mxu1 %v824_v23  ;;  %1428 = vmatprep.subr.mxu0 %v561_v24 }
  0xa9   : > { %v553_v28 = vld [vmem:[#allocation7 + $0x608] sm:$0xff]  ;;  %1499 = vmatprep.subr.mxu1 %v817_v25  ;;  %v552_v30 = vld [vmem:[#allocation7 + $0x600] sm:$0xff]  ;;  %1429 = vmatpush2.msra.mxu0 %v560_v26 }
  0xaa   : > { %v809_v29 = vld [vmem:[#allocation7 + $0xe08] sm:$0xff]  ;;  %v808_v31 = vld [vmem:[#allocation7 + $0xe00] sm:$0xff]  ;;  %1500 = vmatpush2.msra.mxu1 %v816_v27  ;;  %1430 = vmatprep.subr.mxu0 %v553_v28 }
  0xab   : > { %v545_v32 = vld [vmem:[#allocation7 + $0x5c8] sm:$0xff]  ;;  %1501 = vmatprep.subr.mxu1 %v809_v29  ;;  %v544_v34 = vld [vmem:[#allocation7 + $0x5c0] sm:$0xff]  ;;  %1431 = vmatpush2.msra.mxu0 %v552_v30 }
  0xac   : > { %v801_v33 = vld [vmem:[#allocation7 + $0xdc8] sm:$0xff]  ;;  %v800_v35 = vld [vmem:[#allocation7 + $0xdc0] sm:$0xff]  ;;  %1502 = vmatpush2.msra.mxu1 %v808_v31  ;;  %1432 = vmatprep.subr.mxu0 %v545_v32 }
  0xad   : > { %v537_v36 = vld [vmem:[#allocation7 + $0x588] sm:$0xff]  ;;  %1503 = vmatprep.subr.mxu1 %v801_v33  ;;  %v536_v38 = vld [vmem:[#allocation7 + $0x580] sm:$0xff]  ;;  %1433 = vmatpush2.msra.mxu0 %v544_v34 }
  0xae   : > { %v793_v37 = vld [vmem:[#allocation7 + $0xd88] sm:$0xff]  ;;  %v792_v39 = vld [vmem:[#allocation7 + $0xd80] sm:$0xff]  ;;  %1504 = vmatpush2.msra.mxu1 %v800_v35  ;;  %1434 = vmatprep.subr.mxu0 %v537_v36 }
  0xaf   : > { %v529_v40 = vld [vmem:[#allocation7 + $0x548] sm:$0xff]  ;;  %1505 = vmatprep.subr.mxu1 %v793_v37  ;;  %v528_v42 = vld [vmem:[#allocation7 + $0x540] sm:$0xff]  ;;  %1435 = vmatpush2.msra.mxu0 %v536_v38 }
  0xb0   : > { %v785_v41 = vld [vmem:[#allocation7 + $0xd48] sm:$0xff]  ;;  %v784_v43 = vld [vmem:[#allocation7 + $0xd40] sm:$0xff]  ;;  %1506 = vmatpush2.msra.mxu1 %v792_v39  ;;  %1436 = vmatprep.subr.mxu0 %v529_v40 }
  0xb1   : > { %v521_v44 = vld [vmem:[#allocation7 + $0x508] sm:$0xff]  ;;  %1507 = vmatprep.subr.mxu1 %v785_v41  ;;  %v520_v46 = vld [vmem:[#allocation7 + $0x500] sm:$0xff]  ;;  %1437 = vmatpush2.msra.mxu0 %v528_v42 }
  0xb2   : > { %v777_v45 = vld [vmem:[#allocation7 + $0xd08] sm:$0xff]  ;;  %v776_v47 = vld [vmem:[#allocation7 + $0xd00] sm:$0xff]  ;;  %1508 = vmatpush2.msra.mxu1 %v784_v43  ;;  %1438 = vmatprep.subr.mxu0 %v521_v44 }
  0xb3   : > { %v513_v48 = vld [vmem:[#allocation7 + $0x4c8] sm:$0xff]  ;;  %1509 = vmatprep.subr.mxu1 %v777_v45  ;;  %v512_v50 = vld [vmem:[#allocation7 + $0x4c0] sm:$0xff]  ;;  %1439 = vmatpush2.msra.mxu0 %v520_v46 }
  0xb4   : > { %v769_v49 = vld [vmem:[#allocation7 + $0xcc8] sm:$0xff]  ;;  %v768_v51 = vld [vmem:[#allocation7 + $0xcc0] sm:$0xff]  ;;  %1510 = vmatpush2.msra.mxu1 %v776_v47  ;;  %1440 = vmatprep.subr.mxu0 %v513_v48 }
  0xb5   : > { %v505_v52 = vld [vmem:[#allocation7 + $0x488] sm:$0xff]  ;;  %1511 = vmatprep.subr.mxu1 %v769_v49  ;;  %v504_v54 = vld [vmem:[#allocation7 + $0x480] sm:$0xff]  ;;  %1441 = vmatpush2.msra.mxu0 %v512_v50 }
  0xb6   : > { %v761_v53 = vld [vmem:[#allocation7 + $0xc88] sm:$0xff]  ;;  %v760_v55 = vld [vmem:[#allocation7 + $0xc80] sm:$0xff]  ;;  %1512 = vmatpush2.msra.mxu1 %v768_v51  ;;  %1442 = vmatprep.subr.mxu0 %v505_v52 }
  0xb7   : > { %v497_v56 = vld [vmem:[#allocation7 + $0x448] sm:$0xff]  ;;  %1513 = vmatprep.subr.mxu1 %v761_v53  ;;  %v496_v58 = vld [vmem:[#allocation7 + $0x440] sm:$0xff]  ;;  %1443 = vmatpush2.msra.mxu0 %v504_v54 }
  0xb8   : > { %v753_v57 = vld [vmem:[#allocation7 + $0xc48] sm:$0xff]  ;;  %v752_v59 = vld [vmem:[#allocation7 + $0xc40] sm:$0xff]  ;;  %1514 = vmatpush2.msra.mxu1 %v760_v55  ;;  %1444 = vmatprep.subr.mxu0 %v497_v56 }
  0xb9   : > { %v489_v60 = vld [vmem:[#allocation7 + $0x408] sm:$0xff]  ;;  %1515 = vmatprep.subr.mxu1 %v753_v57  ;;  %v488_v62 = vld [vmem:[#allocation7 + $0x400] sm:$0xff]  ;;  %1445 = vmatpush2.msra.mxu0 %v496_v58 }
  0xba   : > { %v745_v61 = vld [vmem:[#allocation7 + $0xc08] sm:$0xff]  ;;  %1516 = vmatpush2.msra.mxu1 %v752_v59  ;;  %v744_v0 = vld [vmem:[#allocation7 + $0xc00] sm:$0xff]  ;;  %1446 = vmatprep.subr.mxu0 %v489_v60 }
  0xbb   : > { %v345_v63 = vld [vmem:[%s3386_s11 + $0x8] sm:$0xff]  ;;  %1517 = vmatprep.subr.mxu1 %v745_v61  ;;  %v344_v2 = vld [vmem:[%s3386_s11] sm:$0xff]  ;;  %1447 = vmatpush2.msra.mxu0 %v488_v62 }
  0xbc   : > { %1448 = vmatprep.mubr.f32.mxu0 %v345_v63  ;;  %v993_v4 = vld [vmem:[#allocation7 + $0x13c8] sm:$0xff]  ;;  %1518 = vmatpush2.msra.mxu1 %v744_v0  ;;  %v992_v6 = vld [vmem:[#allocation7 + $0x13c0] sm:$0xff] }
  0xbd   : > { %v1249_v5 = vld [vmem:[#allocation7 + $0x1bc8] sm:$0xff]  ;;  %1519 = vmatprep.mubr.f32.mxu1 %v347_v1  ;;  %v1248_v7 = vld [vmem:[#allocation7 + $0x1bc0] sm:$0xff]  ;;  %1449 = vmatmul.mubr.f32.vlgmr.msra.gmra.mxu0 %v344_v2 }
  0xbe   : > { %1520 = vmatmul.mubr.f32.vlgmr.msra.gmra.mxu1 %v346_v3  ;;  %v985_v8 = vld [vmem:[#allocation7 + $0x1388] sm:$0xff]  ;;  %1526 = vmatprep.subr.mxu0 %v993_v4  ;;  %v984_v10 = vld [vmem:[#allocation7 + $0x1380] sm:$0xff] }
  0xbf   : > { %v1241_v9 = vld [vmem:[#allocation7 + $0x1b88] sm:$0xff]  ;;  %1597 = vmatprep.subr.mxu1 %v1249_v5  ;;  %v1240_v11 = vld [vmem:[#allocation7 + $0x1b80] sm:$0xff]  ;;  %1527 = vmatpush1.msra.mxu0 %v992_v6 }
  0xc0   : > { %1598 = vmatpush1.msra.mxu1 %v1248_v7  ;;  %v977_v12 = vld [vmem:[#allocation7 + $0x1348] sm:$0xff]  ;;  %1528 = vmatprep.subr.mxu0 %v985_v8  ;;  %v976_v14 = vld [vmem:[#allocation7 + $0x1340] sm:$0xff] }
  0xc1   : > { %v1233_v13 = vld [vmem:[#allocation7 + $0x1b48] sm:$0xff]  ;;  %1599 = vmatprep.subr.mxu1 %v1241_v9  ;;  %v1232_v15 = vld [vmem:[#allocation7 + $0x1b40] sm:$0xff]  ;;  %1529 = vmatpush1.msra.mxu0 %v984_v10 }
  0xc2   : > { %1600 = vmatpush1.msra.mxu1 %v1240_v11  ;;  %v969_v16 = vld [vmem:[#allocation7 + $0x1308] sm:$0xff]  ;;  %1530 = vmatprep.subr.mxu0 %v977_v12  ;;  %v968_v18 = vld [vmem:[#allocation7 + $0x1300] sm:$0xff] }
  0xc3   : > { %v1225_v17 = vld [vmem:[#allocation7 + $0x1b08] sm:$0xff]  ;;  %1601 = vmatprep.subr.mxu1 %v1233_v13  ;;  %v1224_v19 = vld [vmem:[#allocation7 + $0x1b00] sm:$0xff]  ;;  %1531 = vmatpush1.msra.mxu0 %v976_v14 }
  0xc4   : > { %1602 = vmatpush1.msra.mxu1 %v1232_v15  ;;  %v961_v20 = vld [vmem:[#allocation7 + $0x12c8] sm:$0xff]  ;;  %1532 = vmatprep.subr.mxu0 %v969_v16  ;;  %v960_v22 = vld [vmem:[#allocation7 + $0x12c0] sm:$0xff] }
  0xc5   : > { %v1217_v21 = vld [vmem:[#allocation7 + $0x1ac8] sm:$0xff]  ;;  %1603 = vmatprep.subr.mxu1 %v1225_v17  ;;  %v1216_v23 = vld [vmem:[#allocation7 + $0x1ac0] sm:$0xff]  ;;  %1533 = vmatpush1.msra.mxu0 %v968_v18 }
  0xc6   : > { %1604 = vmatpush1.msra.mxu1 %v1224_v19  ;;  %v953_v24 = vld [vmem:[#allocation7 + $0x1288] sm:$0xff]  ;;  %1534 = vmatprep.subr.mxu0 %v961_v20  ;;  %v952_v26 = vld [vmem:[#allocation7 + $0x1280] sm:$0xff] }
  0xc7   : > { %v1209_v25 = vld [vmem:[#allocation7 + $0x1a88] sm:$0xff]  ;;  %1605 = vmatprep.subr.mxu1 %v1217_v21  ;;  %v1208_v27 = vld [vmem:[#allocation7 + $0x1a80] sm:$0xff]  ;;  %1535 = vmatpush1.msra.mxu0 %v960_v22 }
  0xc8   : > { %1606 = vmatpush1.msra.mxu1 %v1216_v23  ;;  %v945_v28 = vld [vmem:[#allocation7 + $0x1248] sm:$0xff]  ;;  %1536 = vmatprep.subr.mxu0 %v953_v24  ;;  %v944_v30 = vld [vmem:[#allocation7 + $0x1240] sm:$0xff] }
  0xc9   : > { %v1201_v29 = vld [vmem:[#allocation7 + $0x1a48] sm:$0xff]  ;;  %1607 = vmatprep.subr.mxu1 %v1209_v25  ;;  %v1200_v31 = vld [vmem:[#allocation7 + $0x1a40] sm:$0xff]  ;;  %1537 = vmatpush1.msra.mxu0 %v952_v26 }
  0xca   : > { %1608 = vmatpush1.msra.mxu1 %v1208_v27  ;;  %v937_v32 = vld [vmem:[#allocation7 + $0x1208] sm:$0xff]  ;;  %1538 = vmatprep.subr.mxu0 %v945_v28  ;;  %v936_v34 = vld [vmem:[#allocation7 + $0x1200] sm:$0xff] }
  0xcb   : > { %v1193_v33 = vld [vmem:[#allocation7 + $0x1a08] sm:$0xff]  ;;  %1609 = vmatprep.subr.mxu1 %v1201_v29  ;;  %v1192_v35 = vld [vmem:[#allocation7 + $0x1a00] sm:$0xff]  ;;  %1539 = vmatpush1.msra.mxu0 %v944_v30 }
  0xcc   : > { %1610 = vmatpush1.msra.mxu1 %v1200_v31  ;;  %v929_v36 = vld [vmem:[#allocation7 + $0x11c8] sm:$0xff]  ;;  %1540 = vmatprep.subr.mxu0 %v937_v32  ;;  %v928_v38 = vld [vmem:[#allocation7 + $0x11c0] sm:$0xff] }
  0xcd   : > { %v1185_v37 = vld [vmem:[#allocation7 + $0x19c8] sm:$0xff]  ;;  %1611 = vmatprep.subr.mxu1 %v1193_v33  ;;  %v1184_v39 = vld [vmem:[#allocation7 + $0x19c0] sm:$0xff]  ;;  %1541 = vmatpush1.msra.mxu0 %v936_v34 }
  0xce   : > { %1612 = vmatpush1.msra.mxu1 %v1192_v35  ;;  %v921_v40 = vld [vmem:[#allocation7 + $0x1188] sm:$0xff]  ;;  %1542 = vmatprep.subr.mxu0 %v929_v36  ;;  %v920_v42 = vld [vmem:[#allocation7 + $0x1180] sm:$0xff] }
  0xcf   : > { %v1177_v41 = vld [vmem:[#allocation7 + $0x1988] sm:$0xff]  ;;  %1613 = vmatprep.subr.mxu1 %v1185_v37  ;;  %v1176_v43 = vld [vmem:[#allocation7 + $0x1980] sm:$0xff]  ;;  %1543 = vmatpush1.msra.mxu0 %v928_v38 }
  0xd0   : > { %1614 = vmatpush1.msra.mxu1 %v1184_v39  ;;  %v913_v44 = vld [vmem:[#allocation7 + $0x1148] sm:$0xff]  ;;  %1544 = vmatprep.subr.mxu0 %v921_v40  ;;  %v912_v46 = vld [vmem:[#allocation7 + $0x1140] sm:$0xff] }
  0xd1   : > { %v1169_v45 = vld [vmem:[#allocation7 + $0x1948] sm:$0xff]  ;;  %1615 = vmatprep.subr.mxu1 %v1177_v41  ;;  %v1168_v47 = vld [vmem:[#allocation7 + $0x1940] sm:$0xff]  ;;  %1545 = vmatpush1.msra.mxu0 %v920_v42 }
  0xd2   : > { %1616 = vmatpush1.msra.mxu1 %v1176_v43  ;;  %v905_v48 = vld [vmem:[#allocation7 + $0x1108] sm:$0xff]  ;;  %1546 = vmatprep.subr.mxu0 %v913_v44  ;;  %v904_v50 = vld [vmem:[#allocation7 + $0x1100] sm:$0xff] }
  0xd3   : > { %v1161_v49 = vld [vmem:[#allocation7 + $0x1908] sm:$0xff]  ;;  %1617 = vmatprep.subr.mxu1 %v1169_v45  ;;  %v1160_v51 = vld [vmem:[#allocation7 + $0x1900] sm:$0xff]  ;;  %1547 = vmatpush1.msra.mxu0 %v912_v46 }
  0xd4   : > { %1618 = vmatpush1.msra.mxu1 %v1168_v47  ;;  %v897_v52 = vld [vmem:[#allocation7 + $0x10c8] sm:$0xff]  ;;  %1548 = vmatprep.subr.mxu0 %v905_v48  ;;  %v896_v54 = vld [vmem:[#allocation7 + $0x10c0] sm:$0xff] }
  0xd5   : > { %v1153_v53 = vld [vmem:[#allocation7 + $0x18c8] sm:$0xff]  ;;  %1619 = vmatprep.subr.mxu1 %v1161_v49  ;;  %v1152_v55 = vld [vmem:[#allocation7 + $0x18c0] sm:$0xff]  ;;  %1549 = vmatpush1.msra.mxu0 %v904_v50 }
  0xd6   : > { %1620 = vmatpush1.msra.mxu1 %v1160_v51  ;;  %v889_v56 = vld [vmem:[#allocation7 + $0x1088] sm:$0xff]  ;;  %1550 = vmatprep.subr.mxu0 %v897_v52  ;;  %v888_v58 = vld [vmem:[#allocation7 + $0x1080] sm:$0xff] }
  0xd7   : > { %v1145_v57 = vld [vmem:[#allocation7 + $0x1888] sm:$0xff]  ;;  %1621 = vmatprep.subr.mxu1 %v1153_v53  ;;  %v1144_v59 = vld [vmem:[#allocation7 + $0x1880] sm:$0xff]  ;;  %1551 = vmatpush1.msra.mxu0 %v896_v54 }
  0xd8   : > { %1622 = vmatpush1.msra.mxu1 %v1152_v55  ;;  %v881_v60 = vld [vmem:[#allocation7 + $0x1048] sm:$0xff]  ;;  %1552 = vmatprep.subr.mxu0 %v889_v56  ;;  %v880_v62 = vld [vmem:[#allocation7 + $0x1040] sm:$0xff] }
  0xd9   : > { %v1137_v61 = vld [vmem:[#allocation7 + $0x1848] sm:$0xff]  ;;  %1623 = vmatprep.subr.mxu1 %v1145_v57  ;;  %v1136_v63 = vld [vmem:[#allocation7 + $0x1840] sm:$0xff]  ;;  %1553 = vmatpush1.msra.mxu0 %v888_v58 }
  0xda   : > { %1624 = vmatpush1.msra.mxu1 %v1144_v59  ;;  %v873_v0 = vld [vmem:[#allocation7 + $0x1008] sm:$0xff]  ;;  %1554 = vmatprep.subr.mxu0 %v881_v60  ;;  %v872_v2 = vld [vmem:[#allocation7 + $0x1000] sm:$0xff] }
  0xdb   : > { %v1129_v1 = vld [vmem:[#allocation7 + $0x1808] sm:$0xff]  ;;  %1625 = vmatprep.subr.mxu1 %v1137_v61  ;;  %v1128_v3 = vld [vmem:[#allocation7 + $0x1800] sm:$0xff]  ;;  %1555 = vmatpush1.msra.mxu0 %v880_v62 }
  0xdc   : > { %1626 = vmatpush1.msra.mxu1 %v1136_v63  ;;  %v1121_v4 = vld [vmem:[#allocation7 + $0x17c8] sm:$0xff]  ;;  %1556 = vmatprep.subr.mxu0 %v873_v0  ;;  %v1120_v6 = vld [vmem:[#allocation7 + $0x17c0] sm:$0xff] }
  0xdd   : > { %v1377_v5 = vld [vmem:[#allocation7 + $0x1fc8] sm:$0xff]  ;;  %1627 = vmatprep.subr.mxu1 %v1129_v1  ;;  %v1376_v7 = vld [vmem:[#allocation7 + $0x1fc0] sm:$0xff]  ;;  %1557 = vmatpush1.msra.mxu0 %v872_v2 }
  0xde   : > { %1628 = vmatpush1.msra.mxu1 %v1128_v3  ;;  %v1113_v8 = vld [vmem:[#allocation7 + $0x1788] sm:$0xff]  ;;  %1558 = vmatprep.subr.mxu0 %v1121_v4  ;;  %v1112_v10 = vld [vmem:[#allocation7 + $0x1780] sm:$0xff] }
  0xdf   : > { %v1369_v9 = vld [vmem:[#allocation7 + $0x1f88] sm:$0xff]  ;;  %1629 = vmatprep.subr.mxu1 %v1377_v5  ;;  %v1368_v11 = vld [vmem:[#allocation7 + $0x1f80] sm:$0xff]  ;;  %1559 = vmatpush2.msra.mxu0 %v1120_v6  ;;  %v351_v6 = vld [vmem:[%s3386_s11 + $0x38] sm:$0xff] }
  0xe0   : > { %1630 = vmatpush2.msra.mxu1 %v1376_v7  ;;  %v1105_v12 = vld [vmem:[#allocation7 + $0x1748] sm:$0xff]  ;;  %1560 = vmatprep.subr.mxu0 %v1113_v8  ;;  %v1104_v14 = vld [vmem:[#allocation7 + $0x1740] sm:$0xff]  ;;  %v483_v7 = vld [vmem:[#allocation7 + $0x3d8] sm:$0xff] }
  0xe1   : > { %v1361_v13 = vld [vmem:[#allocation7 + $0x1f48] sm:$0xff]  ;;  %1631 = vmatprep.subr.mxu1 %v1369_v9  ;;  %v1360_v15 = vld [vmem:[#allocation7 + $0x1f40] sm:$0xff]  ;;  %1561 = vmatpush2.msra.mxu0 %v1112_v10  ;;  %v739_v8 = vld [vmem:[#allocation7 + $0xbd8] sm:$0xff] }
  0xe2   : > { %1632 = vmatpush2.msra.mxu1 %v1368_v11  ;;  %v1097_v16 = vld [vmem:[#allocation7 + $0x1708] sm:$0xff]  ;;  %1562 = vmatprep.subr.mxu0 %v1105_v12  ;;  %v1096_v18 = vld [vmem:[#allocation7 + $0x1700] sm:$0xff]  ;;  %v350_v9 = vld [vmem:[%s3386_s11 + $0x30] sm:$0xff] }
  0xe3   : > { %v1353_v17 = vld [vmem:[#allocation7 + $0x1f08] sm:$0xff]  ;;  %1633 = vmatprep.subr.mxu1 %v1361_v13  ;;  %v1352_v19 = vld [vmem:[#allocation7 + $0x1f00] sm:$0xff]  ;;  %1563 = vmatpush2.msra.mxu0 %v1104_v14  ;;  %v482_v10 = vld [vmem:[#allocation7 + $0x3d0] sm:$0xff] }
  0xe4   : > { %1634 = vmatpush2.msra.mxu1 %v1360_v15  ;;  %v1089_v20 = vld [vmem:[#allocation7 + $0x16c8] sm:$0xff]  ;;  %1564 = vmatprep.subr.mxu0 %v1097_v16  ;;  %v1088_v22 = vld [vmem:[#allocation7 + $0x16c0] sm:$0xff]  ;;  %v738_v11 = vld [vmem:[#allocation7 + $0xbd0] sm:$0xff] }
  0xe5   : > { %v1345_v21 = vld [vmem:[#allocation7 + $0x1ec8] sm:$0xff]  ;;  %1635 = vmatprep.subr.mxu1 %v1353_v17  ;;  %v1344_v23 = vld [vmem:[#allocation7 + $0x1ec0] sm:$0xff]  ;;  %1565 = vmatpush2.msra.mxu0 %v1096_v18  ;;  %v475_v12 = vld [vmem:[#allocation7 + $0x398] sm:$0xff] }
  0xe6   : > { %1636 = vmatpush2.msra.mxu1 %v1352_v19  ;;  %v1081_v24 = vld [vmem:[#allocation7 + $0x1688] sm:$0xff]  ;;  %1566 = vmatprep.subr.mxu0 %v1089_v20  ;;  %v1080_v26 = vld [vmem:[#allocation7 + $0x1680] sm:$0xff]  ;;  %v731_v13 = vld [vmem:[#allocation7 + $0xb98] sm:$0xff] }
  0xe7   : > { %v1337_v25 = vld [vmem:[#allocation7 + $0x1e88] sm:$0xff]  ;;  %1637 = vmatprep.subr.mxu1 %v1345_v21  ;;  %v1336_v27 = vld [vmem:[#allocation7 + $0x1e80] sm:$0xff]  ;;  %1567 = vmatpush2.msra.mxu0 %v1088_v22  ;;  %v474_v14 = vld [vmem:[#allocation7 + $0x390] sm:$0xff] }
  0xe8   : > { %1638 = vmatpush2.msra.mxu1 %v1344_v23  ;;  %v1073_v28 = vld [vmem:[#allocation7 + $0x1648] sm:$0xff]  ;;  %1568 = vmatprep.subr.mxu0 %v1081_v24  ;;  %v1072_v30 = vld [vmem:[#allocation7 + $0x1640] sm:$0xff]  ;;  %v730_v15 = vld [vmem:[#allocation7 + $0xb90] sm:$0xff] }
  0xe9   : > { %v1329_v29 = vld [vmem:[#allocation7 + $0x1e48] sm:$0xff]  ;;  %1639 = vmatprep.subr.mxu1 %v1337_v25  ;;  %v1328_v31 = vld [vmem:[#allocation7 + $0x1e40] sm:$0xff]  ;;  %1569 = vmatpush2.msra.mxu0 %v1080_v26  ;;  %v467_v16 = vld [vmem:[#allocation7 + $0x358] sm:$0xff] }
  0xea   : > { %1640 = vmatpush2.msra.mxu1 %v1336_v27  ;;  %v1065_v32 = vld [vmem:[#allocation7 + $0x1608] sm:$0xff]  ;;  %1570 = vmatprep.subr.mxu0 %v1073_v28  ;;  %v1064_v34 = vld [vmem:[#allocation7 + $0x1600] sm:$0xff]  ;;  %v723_v17 = vld [vmem:[#allocation7 + $0xb58] sm:$0xff] }
  0xeb   : > { %v1321_v33 = vld [vmem:[#allocation7 + $0x1e08] sm:$0xff]  ;;  %1641 = vmatprep.subr.mxu1 %v1329_v29  ;;  %v1320_v35 = vld [vmem:[#allocation7 + $0x1e00] sm:$0xff]  ;;  %1571 = vmatpush2.msra.mxu0 %v1072_v30  ;;  %v466_v18 = vld [vmem:[#allocation7 + $0x350] sm:$0xff] }
  0xec   : > { %1642 = vmatpush2.msra.mxu1 %v1328_v31  ;;  %v1057_v36 = vld [vmem:[#allocation7 + $0x15c8] sm:$0xff]  ;;  %1572 = vmatprep.subr.mxu0 %v1065_v32  ;;  %v1056_v38 = vld [vmem:[#allocation7 + $0x15c0] sm:$0xff]  ;;  %v722_v19 = vld [vmem:[#allocation7 + $0xb50] sm:$0xff] }
  0xed   : > { %v1313_v37 = vld [vmem:[#allocation7 + $0x1dc8] sm:$0xff]  ;;  %1643 = vmatprep.subr.mxu1 %v1321_v33  ;;  %v1312_v39 = vld [vmem:[#allocation7 + $0x1dc0] sm:$0xff]  ;;  %1573 = vmatpush2.msra.mxu0 %v1064_v34  ;;  %v459_v20 = vld [vmem:[#allocation7 + $0x318] sm:$0xff] }
  0xee   : > { %1644 = vmatpush2.msra.mxu1 %v1320_v35  ;;  %v1049_v40 = vld [vmem:[#allocation7 + $0x1588] sm:$0xff]  ;;  %1574 = vmatprep.subr.mxu0 %v1057_v36  ;;  %v1048_v42 = vld [vmem:[#allocation7 + $0x1580] sm:$0xff]  ;;  %v715_v21 = vld [vmem:[#allocation7 + $0xb18] sm:$0xff] }
  0xef   : > { %v1305_v41 = vld [vmem:[#allocation7 + $0x1d88] sm:$0xff]  ;;  %1645 = vmatprep.subr.mxu1 %v1313_v37  ;;  %v1304_v43 = vld [vmem:[#allocation7 + $0x1d80] sm:$0xff]  ;;  %1575 = vmatpush2.msra.mxu0 %v1056_v38  ;;  %v458_v22 = vld [vmem:[#allocation7 + $0x310] sm:$0xff] }
  0xf0   : > { %1646 = vmatpush2.msra.mxu1 %v1312_v39  ;;  %v1041_v44 = vld [vmem:[#allocation7 + $0x1548] sm:$0xff]  ;;  %1576 = vmatprep.subr.mxu0 %v1049_v40  ;;  %v1040_v46 = vld [vmem:[#allocation7 + $0x1540] sm:$0xff]  ;;  %v714_v23 = vld [vmem:[#allocation7 + $0xb10] sm:$0xff] }
  0xf1   : > { %v1297_v45 = vld [vmem:[#allocation7 + $0x1d48] sm:$0xff]  ;;  %1647 = vmatprep.subr.mxu1 %v1305_v41  ;;  %v1296_v47 = vld [vmem:[#allocation7 + $0x1d40] sm:$0xff]  ;;  %1577 = vmatpush2.msra.mxu0 %v1048_v42  ;;  %v451_v24 = vld [vmem:[#allocation7 + $0x2d8] sm:$0xff] }
  0xf2   : > { %1648 = vmatpush2.msra.mxu1 %v1304_v43  ;;  %v1033_v48 = vld [vmem:[#allocation7 + $0x1508] sm:$0xff]  ;;  %1578 = vmatprep.subr.mxu0 %v1041_v44  ;;  %v1032_v50 = vld [vmem:[#allocation7 + $0x1500] sm:$0xff]  ;;  %v707_v25 = vld [vmem:[#allocation7 + $0xad8] sm:$0xff] }
  0xf3   : > { %v1289_v49 = vld [vmem:[#allocation7 + $0x1d08] sm:$0xff]  ;;  %1649 = vmatprep.subr.mxu1 %v1297_v45  ;;  %v1288_v51 = vld [vmem:[#allocation7 + $0x1d00] sm:$0xff]  ;;  %1579 = vmatpush2.msra.mxu0 %v1040_v46  ;;  %v450_v26 = vld [vmem:[#allocation7 + $0x2d0] sm:$0xff] }
  0xf4   : > { %1650 = vmatpush2.msra.mxu1 %v1296_v47  ;;  %v1025_v52 = vld [vmem:[#allocation7 + $0x14c8] sm:$0xff]  ;;  %1580 = vmatprep.subr.mxu0 %v1033_v48  ;;  %v1024_v54 = vld [vmem:[#allocation7 + $0x14c0] sm:$0xff]  ;;  %v706_v27 = vld [vmem:[#allocation7 + $0xad0] sm:$0xff] }
  0xf5   : > { %v1281_v53 = vld [vmem:[#allocation7 + $0x1cc8] sm:$0xff]  ;;  %1651 = vmatprep.subr.mxu1 %v1289_v49  ;;  %v1280_v55 = vld [vmem:[#allocation7 + $0x1cc0] sm:$0xff]  ;;  %1581 = vmatpush2.msra.mxu0 %v1032_v50  ;;  %v443_v28 = vld [vmem:[#allocation7 + $0x298] sm:$0xff] }
  0xf6   : > { %1652 = vmatpush2.msra.mxu1 %v1288_v51  ;;  %v1017_v56 = vld [vmem:[#allocation7 + $0x1488] sm:$0xff]  ;;  %1582 = vmatprep.subr.mxu0 %v1025_v52  ;;  %v1016_v58 = vld [vmem:[#allocation7 + $0x1480] sm:$0xff]  ;;  %v699_v29 = vld [vmem:[#allocation7 + $0xa98] sm:$0xff] }
  0xf7   : > { %v1273_v57 = vld [vmem:[#allocation7 + $0x1c88] sm:$0xff]  ;;  %1653 = vmatprep.subr.mxu1 %v1281_v53  ;;  %v1272_v59 = vld [vmem:[#allocation7 + $0x1c80] sm:$0xff]  ;;  %1583 = vmatpush2.msra.mxu0 %v1024_v54  ;;  %v442_v30 = vld [vmem:[#allocation7 + $0x290] sm:$0xff] }
  0xf8   : > { %1654 = vmatpush2.msra.mxu1 %v1280_v55  ;;  %v1009_v60 = vld [vmem:[#allocation7 + $0x1448] sm:$0xff]  ;;  %1584 = vmatprep.subr.mxu0 %v1017_v56  ;;  %v1008_v62 = vld [vmem:[#allocation7 + $0x1440] sm:$0xff]  ;;  %v698_v31 = vld [vmem:[#allocation7 + $0xa90] sm:$0xff] }
  0xf9   : > { %v1265_v61 = vld [vmem:[#allocation7 + $0x1c48] sm:$0xff]  ;;  %1655 = vmatprep.subr.mxu1 %v1273_v57  ;;  %v1264_v63 = vld [vmem:[#allocation7 + $0x1c40] sm:$0xff]  ;;  %1585 = vmatpush2.msra.mxu0 %v1016_v58  ;;  %v435_v32 = vld [vmem:[#allocation7 + $0x258] sm:$0xff] }
  0xfa   : > { %1656 = vmatpush2.msra.mxu1 %v1272_v59  ;;  %v1001_v0 = vld [vmem:[#allocation7 + $0x1408] sm:$0xff]  ;;  %1586 = vmatprep.subr.mxu0 %v1009_v60  ;;  %v1000_v2 = vld [vmem:[#allocation7 + $0x1400] sm:$0xff]  ;;  %v691_v33 = vld [vmem:[#allocation7 + $0xa58] sm:$0xff] }
  0xfb   : > { %v1257_v1 = vld [vmem:[#allocation7 + $0x1c08] sm:$0xff]  ;;  %1657 = vmatprep.subr.mxu1 %v1265_v61  ;;  %1587 = vmatpush2.msra.mxu0 %v1008_v62  ;;  %v1256_v4 = vld [vmem:[#allocation7 + $0x1c00] sm:$0xff]  ;;  %v434_v34 = vld [vmem:[#allocation7 + $0x250] sm:$0xff] }
  0xfc   : > { %v349_v3 = vld [vmem:[%s3386_s11 + $0x28] sm:$0xff]  ;;  %1658 = vmatpush2.msra.mxu1 %v1264_v63  ;;  %v348_v5 = vld [vmem:[%s3386_s11 + $0x20] sm:$0xff]  ;;  %1588 = vmatprep.subr.mxu0 %v1001_v0  ;;  %v690_v35 = vld [vmem:[#allocation7 + $0xa50] sm:$0xff] }
  0xfd   : > { %1659 = vmatprep.subr.mxu1 %v1257_v1  ;;  %1589 = vmatpush2.msra.mxu0 %v1000_v2  ;;  %v427_v36 = vld [vmem:[#allocation7 + $0x218] sm:$0xff]  ;;  %v426_v38 = vld [vmem:[#allocation7 + $0x210] sm:$0xff] }
  0xfe   : > { %1590 = vmatprep.mubr.f32.mxu0 %v349_v3  ;;  %1660 = vmatpush2.msra.mxu1 %v1256_v4  ;;  %v683_v37 = vld [vmem:[#allocation7 + $0xa18] sm:$0xff]  ;;  %v682_v39 = vld [vmem:[#allocation7 + $0xa10] sm:$0xff] }
  0xff   : > { %1591 = vmatmul.mubr.f32.vlgmr.msra.gmra.mxu0 %v348_v5  ;;  %1661 = vmatprep.mubr.f32.mxu1 %v351_v6  ;;  %v419_v40 = vld [vmem:[#allocation7 + $0x1d8] sm:$0xff]  ;;  %v418_v42 = vld [vmem:[#allocation7 + $0x1d0] sm:$0xff] }
 0x100   : > { %1668 = vmatprep.subr.mxu0 %v483_v7  ;;  %1739 = vmatprep.subr.mxu1 %v739_v8  ;;  %v675_v41 = vld [vmem:[#allocation7 + $0x9d8] sm:$0xff]  ;;  %v674_v43 = vld [vmem:[#allocation7 + $0x9d0] sm:$0xff] }
 0x101   : > { %1662 = vmatmul.mubr.f32.vlgmr.msra.gmra.mxu1 %v350_v9  ;;  %1669 = vmatpush1.msra.mxu0 %v482_v10  ;;  %v411_v44 = vld [vmem:[#allocation7 + $0x198] sm:$0xff]  ;;  %v410_v46 = vld [vmem:[#allocation7 + $0x190] sm:$0xff] }
 0x102   : > { %1740 = vmatpush1.msra.mxu1 %v738_v11  ;;  %1670 = vmatprep.subr.mxu0 %v475_v12  ;;  %v667_v45 = vld [vmem:[#allocation7 + $0x998] sm:$0xff]  ;;  %v666_v47 = vld [vmem:[#allocation7 + $0x990] sm:$0xff] }
 0x103   : > { %1741 = vmatprep.subr.mxu1 %v731_v13  ;;  %1671 = vmatpush1.msra.mxu0 %v474_v14  ;;  %v403_v48 = vld [vmem:[#allocation7 + $0x158] sm:$0xff]  ;;  %v402_v50 = vld [vmem:[#allocation7 + $0x150] sm:$0xff] }
 0x104   : > { %1742 = vmatpush1.msra.mxu1 %v730_v15  ;;  %1672 = vmatprep.subr.mxu0 %v467_v16  ;;  %v659_v49 = vld [vmem:[#allocation7 + $0x958] sm:$0xff]  ;;  %v658_v51 = vld [vmem:[#allocation7 + $0x950] sm:$0xff] }
 0x105   : > { %1743 = vmatprep.subr.mxu1 %v723_v17  ;;  %1673 = vmatpush1.msra.mxu0 %v466_v18  ;;  %v395_v52 = vld [vmem:[#allocation7 + $0x118] sm:$0xff]  ;;  %v394_v54 = vld [vmem:[#allocation7 + $0x110] sm:$0xff] }
 0x106   : > { %1744 = vmatpush1.msra.mxu1 %v722_v19  ;;  %1674 = vmatprep.subr.mxu0 %v459_v20  ;;  %v651_v53 = vld [vmem:[#allocation7 + $0x918] sm:$0xff]  ;;  %v650_v55 = vld [vmem:[#allocation7 + $0x910] sm:$0xff] }
 0x107   : > { %1745 = vmatprep.subr.mxu1 %v715_v21  ;;  %1675 = vmatpush1.msra.mxu0 %v458_v22  ;;  %v387_v56 = vld [vmem:[#allocation7 + $0xd8] sm:$0xff]  ;;  %v386_v58 = vld [vmem:[#allocation7 + $0xd0] sm:$0xff] }
 0x108   : > { %1746 = vmatpush1.msra.mxu1 %v714_v23  ;;  %1676 = vmatprep.subr.mxu0 %v451_v24  ;;  %v643_v57 = vld [vmem:[#allocation7 + $0x8d8] sm:$0xff]  ;;  %v642_v59 = vld [vmem:[#allocation7 + $0x8d0] sm:$0xff] }
 0x109   : > { %1747 = vmatprep.subr.mxu1 %v707_v25  ;;  %1677 = vmatpush1.msra.mxu0 %v450_v26  ;;  %v379_v60 = vld [vmem:[#allocation7 + $0x98] sm:$0xff]  ;;  %v378_v62 = vld [vmem:[#allocation7 + $0x90] sm:$0xff] }
 0x10a   : > { %1748 = vmatpush1.msra.mxu1 %v706_v27  ;;  %1678 = vmatprep.subr.mxu0 %v443_v28  ;;  %v635_v61 = vld [vmem:[#allocation7 + $0x898] sm:$0xff]  ;;  %v634_v63 = vld [vmem:[#allocation7 + $0x890] sm:$0xff] }
 0x10b   : > { %1749 = vmatprep.subr.mxu1 %v699_v29  ;;  %1679 = vmatpush1.msra.mxu0 %v442_v30  ;;  %v371_v0 = vld [vmem:[#allocation7 + $0x58] sm:$0xff]  ;;  %v370_v2 = vld [vmem:[#allocation7 + $0x50] sm:$0xff] }
 0x10c   : > { %1750 = vmatpush1.msra.mxu1 %v698_v31  ;;  %1680 = vmatprep.subr.mxu0 %v435_v32  ;;  %v627_v1 = vld [vmem:[#allocation7 + $0x858] sm:$0xff]  ;;  %v626_v3 = vld [vmem:[#allocation7 + $0x850] sm:$0xff] }
 0x10d   : > { %1751 = vmatprep.subr.mxu1 %v691_v33  ;;  %1681 = vmatpush1.msra.mxu0 %v434_v34  ;;  %v363_v4 = vld [vmem:[#allocation7 + $0x18] sm:$0xff]  ;;  %v362_v6 = vld [vmem:[#allocation7 + $0x10] sm:$0xff] }
 0x10e   : > { %1752 = vmatpush1.msra.mxu1 %v690_v35  ;;  %1682 = vmatprep.subr.mxu0 %v427_v36  ;;  %v619_v5 = vld [vmem:[#allocation7 + $0x818] sm:$0xff]  ;;  %v618_v7 = vld [vmem:[#allocation7 + $0x810] sm:$0xff] }
 0x10f   : > { %1753 = vmatprep.subr.mxu1 %v683_v37  ;;  %1683 = vmatpush1.msra.mxu0 %v426_v38  ;;  %v611_v8 = vld [vmem:[#allocation7 + $0x7d8] sm:$0xff]  ;;  %v610_v10 = vld [vmem:[#allocation7 + $0x7d0] sm:$0xff] }
 0x110   : > { %1754 = vmatpush1.msra.mxu1 %v682_v39  ;;  %1684 = vmatprep.subr.mxu0 %v419_v40  ;;  %v867_v9 = vld [vmem:[#allocation7 + $0xfd8] sm:$0xff]  ;;  %v866_v11 = vld [vmem:[#allocation7 + $0xfd0] sm:$0xff] }
 0x111   : > { %1755 = vmatprep.subr.mxu1 %v675_v41  ;;  %1685 = vmatpush1.msra.mxu0 %v418_v42  ;;  %v603_v12 = vld [vmem:[#allocation7 + $0x798] sm:$0xff]  ;;  %v602_v14 = vld [vmem:[#allocation7 + $0x790] sm:$0xff] }
 0x112   : > { %1756 = vmatpush1.msra.mxu1 %v674_v43  ;;  %1686 = vmatprep.subr.mxu0 %v411_v44  ;;  %v859_v13 = vld [vmem:[#allocation7 + $0xf98] sm:$0xff]  ;;  %v858_v15 = vld [vmem:[#allocation7 + $0xf90] sm:$0xff] }
 0x113   : > { %1757 = vmatprep.subr.mxu1 %v667_v45  ;;  %1687 = vmatpush1.msra.mxu0 %v410_v46  ;;  %v595_v16 = vld [vmem:[#allocation7 + $0x758] sm:$0xff]  ;;  %v594_v18 = vld [vmem:[#allocation7 + $0x750] sm:$0xff] }
 0x114   : > { %1758 = vmatpush1.msra.mxu1 %v666_v47  ;;  %1688 = vmatprep.subr.mxu0 %v403_v48  ;;  %v851_v17 = vld [vmem:[#allocation7 + $0xf58] sm:$0xff]  ;;  %v850_v19 = vld [vmem:[#allocation7 + $0xf50] sm:$0xff] }
 0x115   : > { %1759 = vmatprep.subr.mxu1 %v659_v49  ;;  %1689 = vmatpush1.msra.mxu0 %v402_v50  ;;  %v587_v20 = vld [vmem:[#allocation7 + $0x718] sm:$0xff]  ;;  %v586_v22 = vld [vmem:[#allocation7 + $0x710] sm:$0xff] }
 0x116   : > { %1760 = vmatpush1.msra.mxu1 %v658_v51  ;;  %1690 = vmatprep.subr.mxu0 %v395_v52  ;;  %v843_v21 = vld [vmem:[#allocation7 + $0xf18] sm:$0xff]  ;;  %v842_v23 = vld [vmem:[#allocation7 + $0xf10] sm:$0xff] }
 0x117   : > { %1761 = vmatprep.subr.mxu1 %v651_v53  ;;  %1691 = vmatpush1.msra.mxu0 %v394_v54  ;;  %v579_v24 = vld [vmem:[#allocation7 + $0x6d8] sm:$0xff]  ;;  %v578_v26 = vld [vmem:[#allocation7 + $0x6d0] sm:$0xff] }
 0x118   : > { %1762 = vmatpush1.msra.mxu1 %v650_v55  ;;  %1692 = vmatprep.subr.mxu0 %v387_v56  ;;  %v835_v25 = vld [vmem:[#allocation7 + $0xed8] sm:$0xff]  ;;  %v834_v27 = vld [vmem:[#allocation7 + $0xed0] sm:$0xff] }
 0x119   : > { %1763 = vmatprep.subr.mxu1 %v643_v57  ;;  %1693 = vmatpush1.msra.mxu0 %v386_v58  ;;  %v571_v28 = vld [vmem:[#allocation7 + $0x698] sm:$0xff]  ;;  %v570_v30 = vld [vmem:[#allocation7 + $0x690] sm:$0xff] }
 0x11a   : > { %1764 = vmatpush1.msra.mxu1 %v642_v59  ;;  %1694 = vmatprep.subr.mxu0 %v379_v60  ;;  %v827_v29 = vld [vmem:[#allocation7 + $0xe98] sm:$0xff]  ;;  %v826_v31 = vld [vmem:[#allocation7 + $0xe90] sm:$0xff] }
 0x11b   : > { %1765 = vmatprep.subr.mxu1 %v635_v61  ;;  %1695 = vmatpush1.msra.mxu0 %v378_v62  ;;  %v563_v32 = vld [vmem:[#allocation7 + $0x658] sm:$0xff]  ;;  %v562_v34 = vld [vmem:[#allocation7 + $0x650] sm:$0xff] }
 0x11c   : > { %1766 = vmatpush1.msra.mxu1 %v634_v63  ;;  %1696 = vmatprep.subr.mxu0 %v371_v0  ;;  %v819_v33 = vld [vmem:[#allocation7 + $0xe58] sm:$0xff]  ;;  %v818_v35 = vld [vmem:[#allocation7 + $0xe50] sm:$0xff] }
 0x11d   : > { %1767 = vmatprep.subr.mxu1 %v627_v1  ;;  %1697 = vmatpush1.msra.mxu0 %v370_v2  ;;  %v555_v36 = vld [vmem:[#allocation7 + $0x618] sm:$0xff]  ;;  %v554_v38 = vld [vmem:[#allocation7 + $0x610] sm:$0xff] }
 0x11e   : > { %1768 = vmatpush1.msra.mxu1 %v626_v3  ;;  %1698 = vmatprep.subr.mxu0 %v363_v4  ;;  %v811_v37 = vld [vmem:[#allocation7 + $0xe18] sm:$0xff]  ;;  %v810_v39 = vld [vmem:[#allocation7 + $0xe10] sm:$0xff] }
 0x11f   : > { %1769 = vmatprep.subr.mxu1 %v619_v5  ;;  %1699 = vmatpush1.msra.mxu0 %v362_v6  ;;  %v547_v40 = vld [vmem:[#allocation7 + $0x5d8] sm:$0xff]  ;;  %v546_v42 = vld [vmem:[#allocation7 + $0x5d0] sm:$0xff] }
 0x120   : > { %1770 = vmatpush1.msra.mxu1 %v618_v7  ;;  %1700 = vmatprep.subr.mxu0 %v611_v8  ;;  %v803_v41 = vld [vmem:[#allocation7 + $0xdd8] sm:$0xff]  ;;  %v802_v43 = vld [vmem:[#allocation7 + $0xdd0] sm:$0xff]  ;;  %v3001_v8 = vld [vmem:[%s3386_s11 + $0x8] sm:$0xff] }
 0x121   : > { %1771 = vmatprep.subr.mxu1 %v867_v9  ;;  %1701 = vmatpush2.msra.mxu0 %v610_v10  ;;  %v539_v44 = vld [vmem:[#allocation7 + $0x598] sm:$0xff]  ;;  %v538_v46 = vld [vmem:[#allocation7 + $0x590] sm:$0xff] }
 0x122   : > { %1772 = vmatpush2.msra.mxu1 %v866_v11  ;;  %1702 = vmatprep.subr.mxu0 %v603_v12  ;;  %v795_v45 = vld [vmem:[#allocation7 + $0xd98] sm:$0xff]  ;;  %v794_v47 = vld [vmem:[#allocation7 + $0xd90] sm:$0xff] }
 0x123   : > { %1773 = vmatprep.subr.mxu1 %v859_v13  ;;  %1703 = vmatpush2.msra.mxu0 %v602_v14  ;;  %v531_v48 = vld [vmem:[#allocation7 + $0x558] sm:$0xff]  ;;  %v530_v50 = vld [vmem:[#allocation7 + $0x550] sm:$0xff]  ;;  %v3003_v14 = vld [vmem:[%s3386_s11] sm:$0xff] }
 0x124   : > { %1774 = vmatpush2.msra.mxu1 %v858_v15  ;;  %1704 = vmatprep.subr.mxu0 %v595_v16  ;;  %v787_v49 = vld [vmem:[#allocation7 + $0xd58] sm:$0xff]  ;;  %v786_v51 = vld [vmem:[#allocation7 + $0xd50] sm:$0xff] }
 0x125   : > { %1775 = vmatprep.subr.mxu1 %v851_v17  ;;  %1705 = vmatpush2.msra.mxu0 %v594_v18  ;;  %v523_v52 = vld [vmem:[#allocation7 + $0x518] sm:$0xff]  ;;  %v522_v54 = vld [vmem:[#allocation7 + $0x510] sm:$0xff] }
 0x126   : > { %1776 = vmatpush2.msra.mxu1 %v850_v19  ;;  %1706 = vmatprep.subr.mxu0 %v587_v20  ;;  %v779_v53 = vld [vmem:[#allocation7 + $0xd18] sm:$0xff]  ;;  %v778_v55 = vld [vmem:[#allocation7 + $0xd10] sm:$0xff] }
 0x127   : > { %1777 = vmatprep.subr.mxu1 %v843_v21  ;;  %1707 = vmatpush2.msra.mxu0 %v586_v22  ;;  %v515_v56 = vld [vmem:[#allocation7 + $0x4d8] sm:$0xff]  ;;  %v514_v58 = vld [vmem:[#allocation7 + $0x4d0] sm:$0xff] }
 0x128   : > { %1778 = vmatpush2.msra.mxu1 %v842_v23  ;;  %1708 = vmatprep.subr.mxu0 %v579_v24  ;;  %v771_v57 = vld [vmem:[#allocation7 + $0xcd8] sm:$0xff]  ;;  %v770_v59 = vld [vmem:[#allocation7 + $0xcd0] sm:$0xff] }
 0x129   : > { %1779 = vmatprep.subr.mxu1 %v835_v25  ;;  %1709 = vmatpush2.msra.mxu0 %v578_v26  ;;  %v507_v60 = vld [vmem:[#allocation7 + $0x498] sm:$0xff]  ;;  %v506_v62 = vld [vmem:[#allocation7 + $0x490] sm:$0xff] }
 0x12a   : > { %1780 = vmatpush2.msra.mxu1 %v834_v27  ;;  %1710 = vmatprep.subr.mxu0 %v571_v28  ;;  %v763_v61 = vld [vmem:[#allocation7 + $0xc98] sm:$0xff]  ;;  %v762_v63 = vld [vmem:[#allocation7 + $0xc90] sm:$0xff] }
 0x12b   : > { %1781 = vmatprep.subr.mxu1 %v827_v29  ;;  %1711 = vmatpush2.msra.mxu0 %v570_v30  ;;  %v499_v0 = vld [vmem:[#allocation7 + $0x458] sm:$0xff]  ;;  %v498_v2 = vld [vmem:[#allocation7 + $0x450] sm:$0xff] }
 0x12c   : > { %1782 = vmatpush2.msra.mxu1 %v826_v31  ;;  %1712 = vmatprep.subr.mxu0 %v563_v32  ;;  %v755_v1 = vld [vmem:[#allocation7 + $0xc58] sm:$0xff]  ;;  %v754_v3 = vld [vmem:[#allocation7 + $0xc50] sm:$0xff] }
 0x12d   : > { %1783 = vmatprep.subr.mxu1 %v819_v33  ;;  %1713 = vmatpush2.msra.mxu0 %v562_v34  ;;  %v491_v4 = vld [vmem:[#allocation7 + $0x418] sm:$0xff]  ;;  %v490_v6 = vld [vmem:[#allocation7 + $0x410] sm:$0xff] }
 0x12e   : > { %1784 = vmatpush2.msra.mxu1 %v818_v35  ;;  %1714 = vmatprep.subr.mxu0 %v555_v36  ;;  %v747_v5 = vld [vmem:[#allocation7 + $0xc18] sm:$0xff]  ;;  %v746_v7 = vld [vmem:[#allocation7 + $0xc10] sm:$0xff] }
 0x12f   : > { %1785 = vmatprep.subr.mxu1 %v811_v37  ;;  %1715 = vmatpush2.msra.mxu0 %v554_v38  ;;  %v995_v9 = vld [vmem:[#allocation7 + $0x13d8] sm:$0xff]  ;;  %v994_v12 = vld [vmem:[#allocation7 + $0x13d0] sm:$0xff] }
 0x130   : > { %1786 = vmatpush2.msra.mxu1 %v810_v39  ;;  %1716 = vmatprep.subr.mxu0 %v547_v40  ;;  %v1251_v10 = vld [vmem:[#allocation7 + $0x1bd8] sm:$0xff]  ;;  %v1250_v13 = vld [vmem:[#allocation7 + $0x1bd0] sm:$0xff] }
 0x131   : > { %1787 = vmatprep.subr.mxu1 %v803_v41  ;;  %1717 = vmatpush2.msra.mxu0 %v546_v42  ;;  %v3002_v11 = vld [vmem:[%s3386_s11 + $0x18] sm:$0xff]  ;;  %v3004_v15 = vld [vmem:[%s3386_s11 + $0x10] sm:$0xff] }
 0x132   : > { %1788 = vmatpush2.msra.mxu1 %v802_v43  ;;  %1718 = vmatprep.subr.mxu0 %v539_v44  ;;  %v987_v16 = vld [vmem:[#allocation7 + $0x1398] sm:$0xff]  ;;  %v986_v18 = vld [vmem:[#allocation7 + $0x1390] sm:$0xff] }
 0x133   : > { %1789 = vmatprep.subr.mxu1 %v795_v45  ;;  %1719 = vmatpush2.msra.mxu0 %v538_v46  ;;  %v1243_v17 = vld [vmem:[#allocation7 + $0x1b98] sm:$0xff]  ;;  %v1242_v19 = vld [vmem:[#allocation7 + $0x1b90] sm:$0xff] }
 0x134   : > { %1790 = vmatpush2.msra.mxu1 %v794_v47  ;;  %1720 = vmatprep.subr.mxu0 %v531_v48  ;;  %v979_v20 = vld [vmem:[#allocation7 + $0x1358] sm:$0xff]  ;;  %v978_v22 = vld [vmem:[#allocation7 + $0x1350] sm:$0xff] }
 0x135   : > { %1791 = vmatprep.subr.mxu1 %v787_v49  ;;  %1721 = vmatpush2.msra.mxu0 %v530_v50  ;;  %v1235_v21 = vld [vmem:[#allocation7 + $0x1b58] sm:$0xff]  ;;  %v1234_v23 = vld [vmem:[#allocation7 + $0x1b50] sm:$0xff] }
 0x136   : > { %1792 = vmatpush2.msra.mxu1 %v786_v51  ;;  %1722 = vmatprep.subr.mxu0 %v523_v52  ;;  %v971_v24 = vld [vmem:[#allocation7 + $0x1318] sm:$0xff]  ;;  %v970_v26 = vld [vmem:[#allocation7 + $0x1310] sm:$0xff] }
 0x137   : > { %1793 = vmatprep.subr.mxu1 %v779_v53  ;;  %1723 = vmatpush2.msra.mxu0 %v522_v54  ;;  %v1227_v25 = vld [vmem:[#allocation7 + $0x1b18] sm:$0xff]  ;;  %v1226_v27 = vld [vmem:[#allocation7 + $0x1b10] sm:$0xff] }
 0x138   : > { %1794 = vmatpush2.msra.mxu1 %v778_v55  ;;  %1724 = vmatprep.subr.mxu0 %v515_v56  ;;  %v963_v28 = vld [vmem:[#allocation7 + $0x12d8] sm:$0xff]  ;;  %v962_v30 = vld [vmem:[#allocation7 + $0x12d0] sm:$0xff] }
 0x139   : > { %1795 = vmatprep.subr.mxu1 %v771_v57  ;;  %1725 = vmatpush2.msra.mxu0 %v514_v58  ;;  %v1219_v29 = vld [vmem:[#allocation7 + $0x1ad8] sm:$0xff]  ;;  %v1218_v31 = vld [vmem:[#allocation7 + $0x1ad0] sm:$0xff] }
 0x13a   : > { %1796 = vmatpush2.msra.mxu1 %v770_v59  ;;  %1726 = vmatprep.subr.mxu0 %v507_v60  ;;  %v955_v32 = vld [vmem:[#allocation7 + $0x1298] sm:$0xff]  ;;  %v954_v34 = vld [vmem:[#allocation7 + $0x1290] sm:$0xff] }
 0x13b   : > { %1797 = vmatprep.subr.mxu1 %v763_v61  ;;  %1727 = vmatpush2.msra.mxu0 %v506_v62  ;;  %v1211_v33 = vld [vmem:[#allocation7 + $0x1a98] sm:$0xff]  ;;  %v1210_v35 = vld [vmem:[#allocation7 + $0x1a90] sm:$0xff] }
 0x13c   : > { %1798 = vmatpush2.msra.mxu1 %v762_v63  ;;  %1728 = vmatprep.subr.mxu0 %v499_v0  ;;  %v947_v36 = vld [vmem:[#allocation7 + $0x1258] sm:$0xff]  ;;  %v946_v38 = vld [vmem:[#allocation7 + $0x1250] sm:$0xff] }
 0x13d   : > { %1799 = vmatprep.subr.mxu1 %v755_v1  ;;  %1729 = vmatpush2.msra.mxu0 %v498_v2  ;;  %v1203_v37 = vld [vmem:[#allocation7 + $0x1a58] sm:$0xff]  ;;  %v1202_v39 = vld [vmem:[#allocation7 + $0x1a50] sm:$0xff] }
 0x13e   : > { %1800 = vmatpush2.msra.mxu1 %v754_v3  ;;  %1730 = vmatprep.subr.mxu0 %v491_v4  ;;  %v939_v40 = vld [vmem:[#allocation7 + $0x1218] sm:$0xff]  ;;  %v938_v42 = vld [vmem:[#allocation7 + $0x1210] sm:$0xff] }
 0x13f   : > { %1801 = vmatprep.subr.mxu1 %v747_v5  ;;  %1731 = vmatpush2.msra.mxu0 %v490_v6  ;;  %v1195_v41 = vld [vmem:[#allocation7 + $0x1a18] sm:$0xff]  ;;  %v1194_v43 = vld [vmem:[#allocation7 + $0x1a10] sm:$0xff] }
 0x140   : > { %1732 = vmatprep.mubr.f32.mxu0 %v3001_v8  ;;  %1802 = vmatpush2.msra.mxu1 %v746_v7  ;;  %v931_v44 = vld [vmem:[#allocation7 + $0x11d8] sm:$0xff]  ;;  %v930_v46 = vld [vmem:[#allocation7 + $0x11d0] sm:$0xff] }
 0x141   : > { %1803 = vmatprep.mubr.f32.mxu1 %v3002_v11  ;;  %1733 = vmatmul.mubr.f32.vlgmr.msra.gmra.mxu0 %v3003_v14  ;;  %v1187_v45 = vld [vmem:[#allocation7 + $0x19d8] sm:$0xff]  ;;  %v1186_v47 = vld [vmem:[#allocation7 + $0x19d0] sm:$0xff] }
 0x142   : > { %1804 = vmatmul.mubr.f32.vlgmr.msra.gmra.mxu1 %v3004_v15  ;;  %1810 = vmatprep.subr.mxu0 %v995_v9  ;;  %v923_v48 = vld [vmem:[#allocation7 + $0x1198] sm:$0xff]  ;;  %v922_v50 = vld [vmem:[#allocation7 + $0x1190] sm:$0xff] }
 0x143   : > { %1881 = vmatprep.subr.mxu1 %v1251_v10  ;;  %1811 = vmatpush1.msra.mxu0 %v994_v12  ;;  %v1179_v49 = vld [vmem:[#allocation7 + $0x1998] sm:$0xff]  ;;  %v1178_v51 = vld [vmem:[#allocation7 + $0x1990] sm:$0xff] }
 0x144   : > { %1882 = vmatpush1.msra.mxu1 %v1250_v13  ;;  %1812 = vmatprep.subr.mxu0 %v987_v16  ;;  %v915_v52 = vld [vmem:[#allocation7 + $0x1158] sm:$0xff]  ;;  %v914_v54 = vld [vmem:[#allocation7 + $0x1150] sm:$0xff] }
 0x145   : > { %1883 = vmatprep.subr.mxu1 %v1243_v17  ;;  %1813 = vmatpush1.msra.mxu0 %v986_v18  ;;  %v1171_v53 = vld [vmem:[#allocation7 + $0x1958] sm:$0xff]  ;;  %v1170_v55 = vld [vmem:[#allocation7 + $0x1950] sm:$0xff] }
 0x146   : > { %1884 = vmatpush1.msra.mxu1 %v1242_v19  ;;  %1814 = vmatprep.subr.mxu0 %v979_v20  ;;  %v907_v56 = vld [vmem:[#allocation7 + $0x1118] sm:$0xff]  ;;  %v906_v58 = vld [vmem:[#allocation7 + $0x1110] sm:$0xff] }
 0x147   : > { %1885 = vmatprep.subr.mxu1 %v1235_v21  ;;  %1815 = vmatpush1.msra.mxu0 %v978_v22  ;;  %v1163_v57 = vld [vmem:[#allocation7 + $0x1918] sm:$0xff]  ;;  %v1162_v59 = vld [vmem:[#allocation7 + $0x1910] sm:$0xff] }
 0x148   : > { %1886 = vmatpush1.msra.mxu1 %v1234_v23  ;;  %1816 = vmatprep.subr.mxu0 %v971_v24  ;;  %v899_v60 = vld [vmem:[#allocation7 + $0x10d8] sm:$0xff]  ;;  %v898_v62 = vld [vmem:[#allocation7 + $0x10d0] sm:$0xff] }
 0x149   : > { %1887 = vmatprep.subr.mxu1 %v1227_v25  ;;  %1817 = vmatpush1.msra.mxu0 %v970_v26  ;;  %v1155_v61 = vld [vmem:[#allocation7 + $0x18d8] sm:$0xff]  ;;  %v1154_v63 = vld [vmem:[#allocation7 + $0x18d0] sm:$0xff] }
 0x14a   : > { %1888 = vmatpush1.msra.mxu1 %v1226_v27  ;;  %1818 = vmatprep.subr.mxu0 %v963_v28  ;;  %v891_v0 = vld [vmem:[#allocation7 + $0x1098] sm:$0xff]  ;;  %v890_v2 = vld [vmem:[#allocation7 + $0x1090] sm:$0xff] }
 0x14b   : > { %1889 = vmatprep.subr.mxu1 %v1219_v29  ;;  %1819 = vmatpush1.msra.mxu0 %v962_v30  ;;  %v1147_v1 = vld [vmem:[#allocation7 + $0x1898] sm:$0xff]  ;;  %v1146_v3 = vld [vmem:[#allocation7 + $0x1890] sm:$0xff] }
 0x14c   : > { %1890 = vmatpush1.msra.mxu1 %v1218_v31  ;;  %1820 = vmatprep.subr.mxu0 %v955_v32  ;;  %v883_v4 = vld [vmem:[#allocation7 + $0x1058] sm:$0xff]  ;;  %v882_v6 = vld [vmem:[#allocation7 + $0x1050] sm:$0xff] }
 0x14d   : > { %1891 = vmatprep.subr.mxu1 %v1211_v33  ;;  %1821 = vmatpush1.msra.mxu0 %v954_v34  ;;  %v1139_v5 = vld [vmem:[#allocation7 + $0x1858] sm:$0xff]  ;;  %v1138_v7 = vld [vmem:[#allocation7 + $0x1850] sm:$0xff] }
 0x14e   : > { %1892 = vmatpush1.msra.mxu1 %v1210_v35  ;;  %1822 = vmatprep.subr.mxu0 %v947_v36  ;;  %v875_v8 = vld [vmem:[#allocation7 + $0x1018] sm:$0xff]  ;;  %v874_v10 = vld [vmem:[#allocation7 + $0x1010] sm:$0xff] }
 0x14f   : > { %1893 = vmatprep.subr.mxu1 %v1203_v37  ;;  %1823 = vmatpush1.msra.mxu0 %v946_v38  ;;  %v1131_v9 = vld [vmem:[#allocation7 + $0x1818] sm:$0xff]  ;;  %v1130_v11 = vld [vmem:[#allocation7 + $0x1810] sm:$0xff] }
 0x150   : > { %1894 = vmatpush1.msra.mxu1 %v1202_v39  ;;  %1824 = vmatprep.subr.mxu0 %v939_v40  ;;  %v1123_v12 = vld [vmem:[#allocation7 + $0x17d8] sm:$0xff]  ;;  %v1122_v14 = vld [vmem:[#allocation7 + $0x17d0] sm:$0xff] }
 0x151   : > { %1895 = vmatprep.subr.mxu1 %v1195_v41  ;;  %1825 = vmatpush1.msra.mxu0 %v938_v42  ;;  %v1379_v13 = vld [vmem:[#allocation7 + $0x1fd8] sm:$0xff]  ;;  %v1378_v15 = vld [vmem:[#allocation7 + $0x1fd0] sm:$0xff] }
 0x152   : > { %1896 = vmatpush1.msra.mxu1 %v1194_v43  ;;  %1826 = vmatprep.subr.mxu0 %v931_v44  ;;  %v1115_v16 = vld [vmem:[#allocation7 + $0x1798] sm:$0xff]  ;;  %v1114_v18 = vld [vmem:[#allocation7 + $0x1790] sm:$0xff] }
 0x153   : > { %1897 = vmatprep.subr.mxu1 %v1187_v45  ;;  %1827 = vmatpush1.msra.mxu0 %v930_v46  ;;  %v1371_v17 = vld [vmem:[#allocation7 + $0x1f98] sm:$0xff]  ;;  %v1370_v19 = vld [vmem:[#allocation7 + $0x1f90] sm:$0xff] }
 0x154   : > { %1898 = vmatpush1.msra.mxu1 %v1186_v47  ;;  %1828 = vmatprep.subr.mxu0 %v923_v48  ;;  %v1107_v20 = vld [vmem:[#allocation7 + $0x1758] sm:$0xff]  ;;  %v1106_v22 = vld [vmem:[#allocation7 + $0x1750] sm:$0xff] }
 0x155   : > { %1899 = vmatprep.subr.mxu1 %v1179_v49  ;;  %1829 = vmatpush1.msra.mxu0 %v922_v50  ;;  %v1363_v21 = vld [vmem:[#allocation7 + $0x1f58] sm:$0xff]  ;;  %v1362_v23 = vld [vmem:[#allocation7 + $0x1f50] sm:$0xff] }
 0x156   : > { %1900 = vmatpush1.msra.mxu1 %v1178_v51  ;;  %1830 = vmatprep.subr.mxu0 %v915_v52  ;;  %v1099_v24 = vld [vmem:[#allocation7 + $0x1718] sm:$0xff]  ;;  %v1098_v26 = vld [vmem:[#allocation7 + $0x1710] sm:$0xff] }
 0x157   : > { %1901 = vmatprep.subr.mxu1 %v1171_v53  ;;  %1831 = vmatpush1.msra.mxu0 %v914_v54  ;;  %v1355_v25 = vld [vmem:[#allocation7 + $0x1f18] sm:$0xff]  ;;  %v1354_v27 = vld [vmem:[#allocation7 + $0x1f10] sm:$0xff] }
 0x158   : > { %1902 = vmatpush1.msra.mxu1 %v1170_v55  ;;  %1832 = vmatprep.subr.mxu0 %v907_v56  ;;  %v1091_v28 = vld [vmem:[#allocation7 + $0x16d8] sm:$0xff]  ;;  %v1090_v30 = vld [vmem:[#allocation7 + $0x16d0] sm:$0xff] }
 0x159   : > { %1903 = vmatprep.subr.mxu1 %v1163_v57  ;;  %1833 = vmatpush1.msra.mxu0 %v906_v58  ;;  %v1347_v29 = vld [vmem:[#allocation7 + $0x1ed8] sm:$0xff]  ;;  %v1346_v31 = vld [vmem:[#allocation7 + $0x1ed0] sm:$0xff] }
 0x15a   : > { %1904 = vmatpush1.msra.mxu1 %v1162_v59  ;;  %1834 = vmatprep.subr.mxu0 %v899_v60  ;;  %v1083_v32 = vld [vmem:[#allocation7 + $0x1698] sm:$0xff]  ;;  %v1082_v34 = vld [vmem:[#allocation7 + $0x1690] sm:$0xff] }
 0x15b   : > { %1905 = vmatprep.subr.mxu1 %v1155_v61  ;;  %1835 = vmatpush1.msra.mxu0 %v898_v62  ;;  %v1339_v33 = vld [vmem:[#allocation7 + $0x1e98] sm:$0xff]  ;;  %v1338_v35 = vld [vmem:[#allocation7 + $0x1e90] sm:$0xff] }
 0x15c   : > { %1906 = vmatpush1.msra.mxu1 %v1154_v63  ;;  %1836 = vmatprep.subr.mxu0 %v891_v0  ;;  %v1075_v36 = vld [vmem:[#allocation7 + $0x1658] sm:$0xff]  ;;  %v1074_v38 = vld [vmem:[#allocation7 + $0x1650] sm:$0xff] }
 0x15d   : > { %1907 = vmatprep.subr.mxu1 %v1147_v1  ;;  %1837 = vmatpush1.msra.mxu0 %v890_v2  ;;  %v1331_v37 = vld [vmem:[#allocation7 + $0x1e58] sm:$0xff]  ;;  %v1330_v39 = vld [vmem:[#allocation7 + $0x1e50] sm:$0xff] }
 0x15e   : > { %1908 = vmatpush1.msra.mxu1 %v1146_v3  ;;  %1838 = vmatprep.subr.mxu0 %v883_v4  ;;  %v1067_v40 = vld [vmem:[#allocation7 + $0x1618] sm:$0xff]  ;;  %v1066_v42 = vld [vmem:[#allocation7 + $0x1610] sm:$0xff] }
 0x15f   : > { %1909 = vmatprep.subr.mxu1 %v1139_v5  ;;  %1839 = vmatpush1.msra.mxu0 %v882_v6  ;;  %v1323_v41 = vld [vmem:[#allocation7 + $0x1e18] sm:$0xff]  ;;  %v1322_v43 = vld [vmem:[#allocation7 + $0x1e10] sm:$0xff] }
 0x160   : > { %1910 = vmatpush1.msra.mxu1 %v1138_v7  ;;  %1840 = vmatprep.subr.mxu0 %v875_v8  ;;  %v1059_v44 = vld [vmem:[#allocation7 + $0x15d8] sm:$0xff]  ;;  %v1058_v46 = vld [vmem:[#allocation7 + $0x15d0] sm:$0xff] }
 0x161   : > { %1911 = vmatprep.subr.mxu1 %v1131_v9  ;;  %1841 = vmatpush1.msra.mxu0 %v874_v10  ;;  %v1315_v45 = vld [vmem:[#allocation7 + $0x1dd8] sm:$0xff]  ;;  %v1314_v47 = vld [vmem:[#allocation7 + $0x1dd0] sm:$0xff] }
 0x162   : > { %1912 = vmatpush1.msra.mxu1 %v1130_v11  ;;  %1842 = vmatprep.subr.mxu0 %v1123_v12  ;;  %v1051_v48 = vld [vmem:[#allocation7 + $0x1598] sm:$0xff]  ;;  %v1050_v50 = vld [vmem:[#allocation7 + $0x1590] sm:$0xff]  ;;  %v485_v12 = vld [vmem:[#allocation7 + $0x3e8] sm:$0xff] }
 0x163   : > { %1913 = vmatprep.subr.mxu1 %v1379_v13  ;;  %1843 = vmatpush2.msra.mxu0 %v1122_v14  ;;  %v1307_v49 = vld [vmem:[#allocation7 + $0x1d98] sm:$0xff]  ;;  %v1306_v51 = vld [vmem:[#allocation7 + $0x1d90] sm:$0xff]  ;;  %v3005_v13 = vld [vmem:[%s3386_s11 + $0x28] sm:$0xff] }
 0x164   : > { %1914 = vmatpush2.msra.mxu1 %v1378_v15  ;;  %1844 = vmatprep.subr.mxu0 %v1115_v16  ;;  %v1043_v52 = vld [vmem:[#allocation7 + $0x1558] sm:$0xff]  ;;  %v1042_v54 = vld [vmem:[#allocation7 + $0x1550] sm:$0xff]  ;;  %v741_v14 = vld [vmem:[#allocation7 + $0xbe8] sm:$0xff] }
 0x165   : > { %1915 = vmatprep.subr.mxu1 %v1371_v17  ;;  %1845 = vmatpush2.msra.mxu0 %v1114_v18  ;;  %v1299_v53 = vld [vmem:[#allocation7 + $0x1d58] sm:$0xff]  ;;  %v1298_v55 = vld [vmem:[#allocation7 + $0x1d50] sm:$0xff]  ;;  %v3006_v15 = vld [vmem:[%s3386_s11 + $0x20] sm:$0xff] }
 0x166   : > { %1916 = vmatpush2.msra.mxu1 %v1370_v19  ;;  %1846 = vmatprep.subr.mxu0 %v1107_v20  ;;  %v1035_v56 = vld [vmem:[#allocation7 + $0x1518] sm:$0xff]  ;;  %v1034_v58 = vld [vmem:[#allocation7 + $0x1510] sm:$0xff]  ;;  %v484_v16 = vld [vmem:[#allocation7 + $0x3e0] sm:$0xff] }
 0x167   : > { %1917 = vmatprep.subr.mxu1 %v1363_v21  ;;  %1847 = vmatpush2.msra.mxu0 %v1106_v22  ;;  %v1291_v57 = vld [vmem:[#allocation7 + $0x1d18] sm:$0xff]  ;;  %v1290_v59 = vld [vmem:[#allocation7 + $0x1d10] sm:$0xff]  ;;  %v740_v17 = vld [vmem:[#allocation7 + $0xbe0] sm:$0xff] }
 0x168   : > { %1918 = vmatpush2.msra.mxu1 %v1362_v23  ;;  %1848 = vmatprep.subr.mxu0 %v1099_v24  ;;  %v1027_v60 = vld [vmem:[#allocation7 + $0x14d8] sm:$0xff]  ;;  %v1026_v62 = vld [vmem:[#allocation7 + $0x14d0] sm:$0xff]  ;;  %v477_v19 = vld [vmem:[#allocation7 + $0x3a8] sm:$0xff] }
 0x169   : > { %1919 = vmatprep.subr.mxu1 %v1355_v25  ;;  %1849 = vmatpush2.msra.mxu0 %v1098_v26  ;;  %v1283_v61 = vld [vmem:[#allocation7 + $0x1cd8] sm:$0xff]  ;;  %v1282_v63 = vld [vmem:[#allocation7 + $0x1cd0] sm:$0xff]  ;;  %v733_v20 = vld [vmem:[#allocation7 + $0xba8] sm:$0xff] }
 0x16a   : > { %1920 = vmatpush2.msra.mxu1 %v1354_v27  ;;  %1850 = vmatprep.subr.mxu0 %v1091_v28  ;;  %v1019_v0 = vld [vmem:[#allocation7 + $0x1498] sm:$0xff]  ;;  %v1018_v2 = vld [vmem:[#allocation7 + $0x1490] sm:$0xff]  ;;  %v476_v22 = vld [vmem:[#allocation7 + $0x3a0] sm:$0xff] }
 0x16b   : > { %1921 = vmatprep.subr.mxu1 %v1347_v29  ;;  %1851 = vmatpush2.msra.mxu0 %v1090_v30  ;;  %v1275_v1 = vld [vmem:[#allocation7 + $0x1c98] sm:$0xff]  ;;  %v1274_v3 = vld [vmem:[#allocation7 + $0x1c90] sm:$0xff]  ;;  %v732_v23 = vld [vmem:[#allocation7 + $0xba0] sm:$0xff] }
 0x16c   : > { %1922 = vmatpush2.msra.mxu1 %v1346_v31  ;;  %1852 = vmatprep.subr.mxu0 %v1083_v32  ;;  %v1011_v4 = vld [vmem:[#allocation7 + $0x1458] sm:$0xff]  ;;  %v1010_v6 = vld [vmem:[#allocation7 + $0x1450] sm:$0xff]  ;;  %v469_v24 = vld [vmem:[#allocation7 + $0x368] sm:$0xff] }
 0x16d   : > { %1923 = vmatprep.subr.mxu1 %v1339_v33  ;;  %1853 = vmatpush2.msra.mxu0 %v1082_v34  ;;  %v1267_v5 = vld [vmem:[#allocation7 + $0x1c58] sm:$0xff]  ;;  %v1266_v7 = vld [vmem:[#allocation7 + $0x1c50] sm:$0xff]  ;;  %v725_v25 = vld [vmem:[#allocation7 + $0xb68] sm:$0xff] }
 0x16e   : > { %1924 = vmatpush2.msra.mxu1 %v1338_v35  ;;  %1854 = vmatprep.subr.mxu0 %v1075_v36  ;;  %v1003_v8 = vld [vmem:[#allocation7 + $0x1418] sm:$0xff]  ;;  %v1002_v10 = vld [vmem:[#allocation7 + $0x1410] sm:$0xff]  ;;  %v468_v26 = vld [vmem:[#allocation7 + $0x360] sm:$0xff] }
 0x16f   : > { %1925 = vmatprep.subr.mxu1 %v1331_v37  ;;  %1855 = vmatpush2.msra.mxu0 %v1074_v38  ;;  %v1259_v9 = vld [vmem:[#allocation7 + $0x1c18] sm:$0xff]  ;;  %v1258_v11 = vld [vmem:[#allocation7 + $0x1c10] sm:$0xff]  ;;  %v724_v27 = vld [vmem:[#allocation7 + $0xb60] sm:$0xff] }
 0x170   : > { %1926 = vmatpush2.msra.mxu1 %v1330_v39  ;;  %1856 = vmatprep.subr.mxu0 %v1067_v40  ;;  %v3007_v18 = vld [vmem:[%s3386_s11 + $0x38] sm:$0xff]  ;;  %v3008_v21 = vld [vmem:[%s3386_s11 + $0x30] sm:$0xff]  ;;  %v461_v28 = vld [vmem:[#allocation7 + $0x328] sm:$0xff] }
 0x171   : > { %1927 = vmatprep.subr.mxu1 %v1323_v41  ;;  %1857 = vmatpush2.msra.mxu0 %v1066_v42  ;;  %v717_v29 = vld [vmem:[#allocation7 + $0xb28] sm:$0xff]  ;;  %v460_v30 = vld [vmem:[#allocation7 + $0x320] sm:$0xff] }
 0x172   : > { %1928 = vmatpush2.msra.mxu1 %v1322_v43  ;;  %1858 = vmatprep.subr.mxu0 %v1059_v44  ;;  %v716_v31 = vld [vmem:[#allocation7 + $0xb20] sm:$0xff]  ;;  %v453_v32 = vld [vmem:[#allocation7 + $0x2e8] sm:$0xff] }
 0x173   : > { %1929 = vmatprep.subr.mxu1 %v1315_v45  ;;  %1859 = vmatpush2.msra.mxu0 %v1058_v46  ;;  %v709_v33 = vld [vmem:[#allocation7 + $0xae8] sm:$0xff]  ;;  %v452_v34 = vld [vmem:[#allocation7 + $0x2e0] sm:$0xff] }
 0x174   : > { %1930 = vmatpush2.msra.mxu1 %v1314_v47  ;;  %1860 = vmatprep.subr.mxu0 %v1051_v48  ;;  %v708_v35 = vld [vmem:[#allocation7 + $0xae0] sm:$0xff]  ;;  %v445_v36 = vld [vmem:[#allocation7 + $0x2a8] sm:$0xff] }
 0x175   : > { %1931 = vmatprep.subr.mxu1 %v1307_v49  ;;  %1861 = vmatpush2.msra.mxu0 %v1050_v50  ;;  %v701_v37 = vld [vmem:[#allocation7 + $0xaa8] sm:$0xff]  ;;  %v444_v38 = vld [vmem:[#allocation7 + $0x2a0] sm:$0xff] }
 0x176   : > { %1932 = vmatpush2.msra.mxu1 %v1306_v51  ;;  %1862 = vmatprep.subr.mxu0 %v1043_v52  ;;  %v700_v39 = vld [vmem:[#allocation7 + $0xaa0] sm:$0xff]  ;;  %v437_v40 = vld [vmem:[#allocation7 + $0x268] sm:$0xff] }
 0x177   : > { %1933 = vmatprep.subr.mxu1 %v1299_v53  ;;  %1863 = vmatpush2.msra.mxu0 %v1042_v54  ;;  %v693_v41 = vld [vmem:[#allocation7 + $0xa68] sm:$0xff]  ;;  %v436_v42 = vld [vmem:[#allocation7 + $0x260] sm:$0xff] }
 0x178   : > { %1934 = vmatpush2.msra.mxu1 %v1298_v55  ;;  %1864 = vmatprep.subr.mxu0 %v1035_v56  ;;  %v692_v43 = vld [vmem:[#allocation7 + $0xa60] sm:$0xff]  ;;  %v429_v44 = vld [vmem:[#allocation7 + $0x228] sm:$0xff] }
 0x179   : > { %1935 = vmatprep.subr.mxu1 %v1291_v57  ;;  %1865 = vmatpush2.msra.mxu0 %v1034_v58  ;;  %v685_v45 = vld [vmem:[#allocation7 + $0xa28] sm:$0xff]  ;;  %v428_v46 = vld [vmem:[#allocation7 + $0x220] sm:$0xff] }
 0x17a   : > { %1936 = vmatpush2.msra.mxu1 %v1290_v59  ;;  %1866 = vmatprep.subr.mxu0 %v1027_v60  ;;  %v684_v47 = vld [vmem:[#allocation7 + $0xa20] sm:$0xff]  ;;  %v421_v48 = vld [vmem:[#allocation7 + $0x1e8] sm:$0xff] }
 0x17b   : > { %1937 = vmatprep.subr.mxu1 %v1283_v61  ;;  %1867 = vmatpush2.msra.mxu0 %v1026_v62  ;;  %v677_v49 = vld [vmem:[#allocation7 + $0x9e8] sm:$0xff]  ;;  %v420_v50 = vld [vmem:[#allocation7 + $0x1e0] sm:$0xff] }
 0x17c   : > { %1938 = vmatpush2.msra.mxu1 %v1282_v63  ;;  %1868 = vmatprep.subr.mxu0 %v1019_v0  ;;  %v676_v51 = vld [vmem:[#allocation7 + $0x9e0] sm:$0xff]  ;;  %v413_v52 = vld [vmem:[#allocation7 + $0x1a8] sm:$0xff] }
 0x17d   : > { %1939 = vmatprep.subr.mxu1 %v1275_v1  ;;  %1869 = vmatpush2.msra.mxu0 %v1018_v2  ;;  %v669_v53 = vld [vmem:[#allocation7 + $0x9a8] sm:$0xff]  ;;  %v412_v54 = vld [vmem:[#allocation7 + $0x1a0] sm:$0xff] }
 0x17e   : > { %1940 = vmatpush2.msra.mxu1 %v1274_v3  ;;  %1870 = vmatprep.subr.mxu0 %v1011_v4  ;;  %v668_v55 = vld [vmem:[#allocation7 + $0x9a0] sm:$0xff]  ;;  %v405_v56 = vld [vmem:[#allocation7 + $0x168] sm:$0xff] }
 0x17f   : > { %1941 = vmatprep.subr.mxu1 %v1267_v5  ;;  %1871 = vmatpush2.msra.mxu0 %v1010_v6  ;;  %v661_v57 = vld [vmem:[#allocation7 + $0x968] sm:$0xff]  ;;  %v404_v58 = vld [vmem:[#allocation7 + $0x160] sm:$0xff] }
 0x180   : > { %1942 = vmatpush2.msra.mxu1 %v1266_v7  ;;  %1872 = vmatprep.subr.mxu0 %v1003_v8  ;;  %v660_v59 = vld [vmem:[#allocation7 + $0x960] sm:$0xff]  ;;  %v397_v60 = vld [vmem:[#allocation7 + $0x128] sm:$0xff] }
 0x181   : > { %1943 = vmatprep.subr.mxu1 %v1259_v9  ;;  %1873 = vmatpush2.msra.mxu0 %v1002_v10  ;;  %v653_v61 = vld [vmem:[#allocation7 + $0x928] sm:$0xff]  ;;  %v396_v62 = vld [vmem:[#allocation7 + $0x120] sm:$0xff] }
 0x182   : > { %1874 = vmatprep.mubr.f32.mxu0 %v3005_v13  ;;  %1944 = vmatpush2.msra.mxu1 %v1258_v11  ;;  %v652_v63 = vld [vmem:[#allocation7 + $0x920] sm:$0xff]  ;;  %v389_v0 = vld [vmem:[#allocation7 + $0xe8] sm:$0xff] }
 0x183   : > { %1875 = vmatmul.mubr.f32.vlgmr.msra.gmra.mxu0 %v3006_v15  ;;  %1945 = vmatprep.mubr.f32.mxu1 %v3007_v18  ;;  %v645_v1 = vld [vmem:[#allocation7 + $0x8e8] sm:$0xff]  ;;  %v388_v2 = vld [vmem:[#allocation7 + $0xe0] sm:$0xff] }
 0x184   : > { %1952 = vmatprep.subr.mxu0 %v485_v12  ;;  %2023 = vmatprep.subr.mxu1 %v741_v14  ;;  %v644_v3 = vld [vmem:[#allocation7 + $0x8e0] sm:$0xff]  ;;  %v381_v4 = vld [vmem:[#allocation7 + $0xa8] sm:$0xff] }
 0x185   : > { %1946 = vmatmul.mubr.f32.vlgmr.msra.gmra.mxu1 %v3008_v21  ;;  %1953 = vmatpush1.msra.mxu0 %v484_v16  ;;  %v637_v5 = vld [vmem:[#allocation7 + $0x8a8] sm:$0xff]  ;;  %v380_v6 = vld [vmem:[#allocation7 + $0xa0] sm:$0xff] }
 0x186   : > { %2024 = vmatpush1.msra.mxu1 %v740_v17  ;;  %1954 = vmatprep.subr.mxu0 %v477_v19  ;;  %v636_v7 = vld [vmem:[#allocation7 + $0x8a0] sm:$0xff]  ;;  %v373_v8 = vld [vmem:[#allocation7 + $0x68] sm:$0xff] }
 0x187   : > { %2025 = vmatprep.subr.mxu1 %v733_v20  ;;  %1955 = vmatpush1.msra.mxu0 %v476_v22  ;;  %v629_v9 = vld [vmem:[#allocation7 + $0x868] sm:$0xff]  ;;  %v372_v10 = vld [vmem:[#allocation7 + $0x60] sm:$0xff] }
 0x188   : > { %2026 = vmatpush1.msra.mxu1 %v732_v23  ;;  %1956 = vmatprep.subr.mxu0 %v469_v24  ;;  %v628_v11 = vld [vmem:[#allocation7 + $0x860] sm:$0xff]  ;;  %v365_v12 = vld [vmem:[#allocation7 + $0x28] sm:$0xff] }
 0x189   : > { %2027 = vmatprep.subr.mxu1 %v725_v25  ;;  %1957 = vmatpush1.msra.mxu0 %v468_v26  ;;  %v621_v13 = vld [vmem:[#allocation7 + $0x828] sm:$0xff]  ;;  %v364_v14 = vld [vmem:[#allocation7 + $0x20] sm:$0xff] }
 0x18a   : > { %2028 = vmatpush1.msra.mxu1 %v724_v27  ;;  %1958 = vmatprep.subr.mxu0 %v461_v28  ;;  %v620_v15 = vld [vmem:[#allocation7 + $0x820] sm:$0xff]  ;;  %v613_v16 = vld [vmem:[#allocation7 + $0x7e8] sm:$0xff] }
 0x18b   : > { %2029 = vmatprep.subr.mxu1 %v717_v29  ;;  %1959 = vmatpush1.msra.mxu0 %v460_v30  ;;  %v869_v17 = vld [vmem:[#allocation7 + $0xfe8] sm:$0xff]  ;;  %v612_v18 = vld [vmem:[#allocation7 + $0x7e0] sm:$0xff] }
 0x18c   : > { %2030 = vmatpush1.msra.mxu1 %v716_v31  ;;  %1960 = vmatprep.subr.mxu0 %v453_v32  ;;  %v868_v19 = vld [vmem:[#allocation7 + $0xfe0] sm:$0xff]  ;;  %v605_v20 = vld [vmem:[#allocation7 + $0x7a8] sm:$0xff] }
 0x18d   : > { %2031 = vmatprep.subr.mxu1 %v709_v33  ;;  %1961 = vmatpush1.msra.mxu0 %v452_v34  ;;  %v861_v21 = vld [vmem:[#allocation7 + $0xfa8] sm:$0xff]  ;;  %v604_v22 = vld [vmem:[#allocation7 + $0x7a0] sm:$0xff] }
 0x18e   : > { %2032 = vmatpush1.msra.mxu1 %v708_v35  ;;  %1962 = vmatprep.subr.mxu0 %v445_v36  ;;  %v860_v23 = vld [vmem:[#allocation7 + $0xfa0] sm:$0xff]  ;;  %v597_v24 = vld [vmem:[#allocation7 + $0x768] sm:$0xff] }
 0x18f   : > { %2033 = vmatprep.subr.mxu1 %v701_v37  ;;  %1963 = vmatpush1.msra.mxu0 %v444_v38  ;;  %v853_v25 = vld [vmem:[#allocation7 + $0xf68] sm:$0xff]  ;;  %v596_v26 = vld [vmem:[#allocation7 + $0x760] sm:$0xff] }
 0x190   : > { %2034 = vmatpush1.msra.mxu1 %v700_v39  ;;  %1964 = vmatprep.subr.mxu0 %v437_v40  ;;  %v852_v27 = vld [vmem:[#allocation7 + $0xf60] sm:$0xff]  ;;  %v589_v28 = vld [vmem:[#allocation7 + $0x728] sm:$0xff] }
 0x191   : > { %2035 = vmatprep.subr.mxu1 %v693_v41  ;;  %1965 = vmatpush1.msra.mxu0 %v436_v42  ;;  %v845_v29 = vld [vmem:[#allocation7 + $0xf28] sm:$0xff]  ;;  %v588_v30 = vld [vmem:[#allocation7 + $0x720] sm:$0xff] }
 0x192   : > { %2036 = vmatpush1.msra.mxu1 %v692_v43  ;;  %1966 = vmatprep.subr.mxu0 %v429_v44  ;;  %v844_v31 = vld [vmem:[#allocation7 + $0xf20] sm:$0xff]  ;;  %v581_v32 = vld [vmem:[#allocation7 + $0x6e8] sm:$0xff] }
 0x193   : > { %2037 = vmatprep.subr.mxu1 %v685_v45  ;;  %1967 = vmatpush1.msra.mxu0 %v428_v46  ;;  %v837_v33 = vld [vmem:[#allocation7 + $0xee8] sm:$0xff]  ;;  %v580_v34 = vld [vmem:[#allocation7 + $0x6e0] sm:$0xff] }
 0x194   : > { %2038 = vmatpush1.msra.mxu1 %v684_v47  ;;  %1968 = vmatprep.subr.mxu0 %v421_v48  ;;  %v836_v35 = vld [vmem:[#allocation7 + $0xee0] sm:$0xff]  ;;  %v573_v36 = vld [vmem:[#allocation7 + $0x6a8] sm:$0xff] }
 0x195   : > { %2039 = vmatprep.subr.mxu1 %v677_v49  ;;  %1969 = vmatpush1.msra.mxu0 %v420_v50  ;;  %v829_v37 = vld [vmem:[#allocation7 + $0xea8] sm:$0xff]  ;;  %v572_v38 = vld [vmem:[#allocation7 + $0x6a0] sm:$0xff] }
 0x196   : > { %2040 = vmatpush1.msra.mxu1 %v676_v51  ;;  %1970 = vmatprep.subr.mxu0 %v413_v52  ;;  %v828_v39 = vld [vmem:[#allocation7 + $0xea0] sm:$0xff]  ;;  %v565_v40 = vld [vmem:[#allocation7 + $0x668] sm:$0xff] }
 0x197   : > { %2041 = vmatprep.subr.mxu1 %v669_v53  ;;  %1971 = vmatpush1.msra.mxu0 %v412_v54  ;;  %v821_v41 = vld [vmem:[#allocation7 + $0xe68] sm:$0xff]  ;;  %v564_v42 = vld [vmem:[#allocation7 + $0x660] sm:$0xff] }
 0x198   : > { %2042 = vmatpush1.msra.mxu1 %v668_v55  ;;  %1972 = vmatprep.subr.mxu0 %v405_v56  ;;  %v820_v43 = vld [vmem:[#allocation7 + $0xe60] sm:$0xff]  ;;  %v557_v44 = vld [vmem:[#allocation7 + $0x628] sm:$0xff] }
 0x199   : > { %2043 = vmatprep.subr.mxu1 %v661_v57  ;;  %1973 = vmatpush1.msra.mxu0 %v404_v58  ;;  %v813_v45 = vld [vmem:[#allocation7 + $0xe28] sm:$0xff]  ;;  %v556_v46 = vld [vmem:[#allocation7 + $0x620] sm:$0xff] }
 0x19a   : > { %2044 = vmatpush1.msra.mxu1 %v660_v59  ;;  %1974 = vmatprep.subr.mxu0 %v397_v60  ;;  %v812_v47 = vld [vmem:[#allocation7 + $0xe20] sm:$0xff]  ;;  %v549_v48 = vld [vmem:[#allocation7 + $0x5e8] sm:$0xff] }
 0x19b   : > { %2045 = vmatprep.subr.mxu1 %v653_v61  ;;  %1975 = vmatpush1.msra.mxu0 %v396_v62  ;;  %v805_v49 = vld [vmem:[#allocation7 + $0xde8] sm:$0xff]  ;;  %v548_v50 = vld [vmem:[#allocation7 + $0x5e0] sm:$0xff] }
 0x19c   : > { %2046 = vmatpush1.msra.mxu1 %v652_v63  ;;  %1976 = vmatprep.subr.mxu0 %v389_v0  ;;  %v804_v51 = vld [vmem:[#allocation7 + $0xde0] sm:$0xff]  ;;  %v541_v52 = vld [vmem:[#allocation7 + $0x5a8] sm:$0xff] }
 0x19d   : > { %2047 = vmatprep.subr.mxu1 %v645_v1  ;;  %1977 = vmatpush1.msra.mxu0 %v388_v2  ;;  %v797_v53 = vld [vmem:[#allocation7 + $0xda8] sm:$0xff]  ;;  %v540_v54 = vld [vmem:[#allocation7 + $0x5a0] sm:$0xff] }
 0x19e   : > { %2048 = vmatpush1.msra.mxu1 %v644_v3  ;;  %1978 = vmatprep.subr.mxu0 %v381_v4  ;;  %v796_v55 = vld [vmem:[#allocation7 + $0xda0] sm:$0xff]  ;;  %v533_v56 = vld [vmem:[#allocation7 + $0x568] sm:$0xff] }
 0x19f   : > { %2049 = vmatprep.subr.mxu1 %v637_v5  ;;  %1979 = vmatpush1.msra.mxu0 %v380_v6  ;;  %v789_v57 = vld [vmem:[#allocation7 + $0xd68] sm:$0xff]  ;;  %v532_v58 = vld [vmem:[#allocation7 + $0x560] sm:$0xff] }
 0x1a0   : > { %2050 = vmatpush1.msra.mxu1 %v636_v7  ;;  %1980 = vmatprep.subr.mxu0 %v373_v8  ;;  %v788_v59 = vld [vmem:[#allocation7 + $0xd60] sm:$0xff]  ;;  %v525_v60 = vld [vmem:[#allocation7 + $0x528] sm:$0xff] }
 0x1a1   : > { %2051 = vmatprep.subr.mxu1 %v629_v9  ;;  %1981 = vmatpush1.msra.mxu0 %v372_v10  ;;  %v781_v61 = vld [vmem:[#allocation7 + $0xd28] sm:$0xff]  ;;  %v524_v62 = vld [vmem:[#allocation7 + $0x520] sm:$0xff] }
 0x1a2   : > { %2052 = vmatpush1.msra.mxu1 %v628_v11  ;;  %1982 = vmatprep.subr.mxu0 %v365_v12  ;;  %v780_v63 = vld [vmem:[#allocation7 + $0xd20] sm:$0xff]  ;;  %v517_v0 = vld [vmem:[#allocation7 + $0x4e8] sm:$0xff] }
 0x1a3   : > { %2053 = vmatprep.subr.mxu1 %v621_v13  ;;  %1983 = vmatpush1.msra.mxu0 %v364_v14  ;;  %v773_v1 = vld [vmem:[#allocation7 + $0xce8] sm:$0xff]  ;;  %v516_v2 = vld [vmem:[#allocation7 + $0x4e0] sm:$0xff] }
 0x1a4   : > { %2054 = vmatpush1.msra.mxu1 %v620_v15  ;;  %1984 = vmatprep.subr.mxu0 %v613_v16  ;;  %v772_v3 = vld [vmem:[#allocation7 + $0xce0] sm:$0xff]  ;;  %v509_v4 = vld [vmem:[#allocation7 + $0x4a8] sm:$0xff] }
 0x1a5   : > { %2055 = vmatprep.subr.mxu1 %v869_v17  ;;  %1985 = vmatpush2.msra.mxu0 %v612_v18  ;;  %v765_v5 = vld [vmem:[#allocation7 + $0xca8] sm:$0xff]  ;;  %v508_v6 = vld [vmem:[#allocation7 + $0x4a0] sm:$0xff] }
 0x1a6   : > { %2056 = vmatpush2.msra.mxu1 %v868_v19  ;;  %1986 = vmatprep.subr.mxu0 %v605_v20  ;;  %v764_v7 = vld [vmem:[#allocation7 + $0xca0] sm:$0xff]  ;;  %v501_v8 = vld [vmem:[#allocation7 + $0x468] sm:$0xff]  ;;  %v3010_v19 = vld [vmem:[%s3386_s11 + $0x18] sm:$0xff] }
 0x1a7   : > { %2057 = vmatprep.subr.mxu1 %v861_v21  ;;  %1987 = vmatpush2.msra.mxu0 %v604_v22  ;;  %v757_v9 = vld [vmem:[#allocation7 + $0xc68] sm:$0xff]  ;;  %v500_v10 = vld [vmem:[#allocation7 + $0x460] sm:$0xff] }
 0x1a8   : > { %2058 = vmatpush2.msra.mxu1 %v860_v23  ;;  %1988 = vmatprep.subr.mxu0 %v597_v24  ;;  %v756_v11 = vld [vmem:[#allocation7 + $0xc60] sm:$0xff]  ;;  %v493_v12 = vld [vmem:[#allocation7 + $0x428] sm:$0xff]  ;;  %v3012_v23 = vld [vmem:[%s3386_s11 + $0x10] sm:$0xff] }
 0x1a9   : > { %2059 = vmatprep.subr.mxu1 %v853_v25  ;;  %1989 = vmatpush2.msra.mxu0 %v596_v26  ;;  %v749_v13 = vld [vmem:[#allocation7 + $0xc28] sm:$0xff]  ;;  %v492_v14 = vld [vmem:[#allocation7 + $0x420] sm:$0xff] }
 0x1aa   : > { %2060 = vmatpush2.msra.mxu1 %v852_v27  ;;  %1990 = vmatprep.subr.mxu0 %v589_v28  ;;  %v748_v15 = vld [vmem:[#allocation7 + $0xc20] sm:$0xff]  ;;  %v3009_v16 = vld [vmem:[%s3386_s11 + $0x8] sm:$0xff] }
 0x1ab   : > { %2061 = vmatprep.subr.mxu1 %v845_v29  ;;  %1991 = vmatpush2.msra.mxu0 %v588_v30  ;;  %v997_v17 = vld [vmem:[#allocation7 + $0x13e8] sm:$0xff]  ;;  %v996_v20 = vld [vmem:[#allocation7 + $0x13e0] sm:$0xff] }
 0x1ac   : > { %2062 = vmatpush2.msra.mxu1 %v844_v31  ;;  %1992 = vmatprep.subr.mxu0 %v581_v32  ;;  %v1253_v18 = vld [vmem:[#allocation7 + $0x1be8] sm:$0xff]  ;;  %v1252_v21 = vld [vmem:[#allocation7 + $0x1be0] sm:$0xff] }
 0x1ad   : > { %2063 = vmatprep.subr.mxu1 %v837_v33  ;;  %1993 = vmatpush2.msra.mxu0 %v580_v34  ;;  %v3011_v22 = vld [vmem:[%s3386_s11] sm:$0xff]  ;;  %v989_v24 = vld [vmem:[#allocation7 + $0x13a8] sm:$0xff] }
 0x1ae   : > { %2064 = vmatpush2.msra.mxu1 %v836_v35  ;;  %1994 = vmatprep.subr.mxu0 %v573_v36  ;;  %v1245_v25 = vld [vmem:[#allocation7 + $0x1ba8] sm:$0xff]  ;;  %v988_v26 = vld [vmem:[#allocation7 + $0x13a0] sm:$0xff] }
 0x1af   : > { %2065 = vmatprep.subr.mxu1 %v829_v37  ;;  %1995 = vmatpush2.msra.mxu0 %v572_v38  ;;  %v1244_v27 = vld [vmem:[#allocation7 + $0x1ba0] sm:$0xff]  ;;  %v981_v28 = vld [vmem:[#allocation7 + $0x1368] sm:$0xff] }
 0x1b0   : > { %2066 = vmatpush2.msra.mxu1 %v828_v39  ;;  %1996 = vmatprep.subr.mxu0 %v565_v40  ;;  %v1237_v29 = vld [vmem:[#allocation7 + $0x1b68] sm:$0xff]  ;;  %v980_v30 = vld [vmem:[#allocation7 + $0x1360] sm:$0xff] }
 0x1b1   : > { %2067 = vmatprep.subr.mxu1 %v821_v41  ;;  %1997 = vmatpush2.msra.mxu0 %v564_v42  ;;  %v1236_v31 = vld [vmem:[#allocation7 + $0x1b60] sm:$0xff]  ;;  %v973_v32 = vld [vmem:[#allocation7 + $0x1328] sm:$0xff] }
 0x1b2   : > { %2068 = vmatpush2.msra.mxu1 %v820_v43  ;;  %1998 = vmatprep.subr.mxu0 %v557_v44  ;;  %v1229_v33 = vld [vmem:[#allocation7 + $0x1b28] sm:$0xff]  ;;  %v972_v34 = vld [vmem:[#allocation7 + $0x1320] sm:$0xff] }
 0x1b3   : > { %2069 = vmatprep.subr.mxu1 %v813_v45  ;;  %1999 = vmatpush2.msra.mxu0 %v556_v46  ;;  %v1228_v35 = vld [vmem:[#allocation7 + $0x1b20] sm:$0xff]  ;;  %v965_v36 = vld [vmem:[#allocation7 + $0x12e8] sm:$0xff] }
 0x1b4   : > { %2070 = vmatpush2.msra.mxu1 %v812_v47  ;;  %2000 = vmatprep.subr.mxu0 %v549_v48  ;;  %v1221_v37 = vld [vmem:[#allocation7 + $0x1ae8] sm:$0xff]  ;;  %v964_v38 = vld [vmem:[#allocation7 + $0x12e0] sm:$0xff] }
 0x1b5   : > { %2071 = vmatprep.subr.mxu1 %v805_v49  ;;  %2001 = vmatpush2.msra.mxu0 %v548_v50  ;;  %v1220_v39 = vld [vmem:[#allocation7 + $0x1ae0] sm:$0xff]  ;;  %v957_v40 = vld [vmem:[#allocation7 + $0x12a8] sm:$0xff] }
 0x1b6   : > { %2072 = vmatpush2.msra.mxu1 %v804_v51  ;;  %2002 = vmatprep.subr.mxu0 %v541_v52  ;;  %v1213_v41 = vld [vmem:[#allocation7 + $0x1aa8] sm:$0xff]  ;;  %v956_v42 = vld [vmem:[#allocation7 + $0x12a0] sm:$0xff] }
 0x1b7   : > { %2073 = vmatprep.subr.mxu1 %v797_v53  ;;  %2003 = vmatpush2.msra.mxu0 %v540_v54  ;;  %v1212_v43 = vld [vmem:[#allocation7 + $0x1aa0] sm:$0xff]  ;;  %v949_v44 = vld [vmem:[#allocation7 + $0x1268] sm:$0xff] }
 0x1b8   : > { %2074 = vmatpush2.msra.mxu1 %v796_v55  ;;  %2004 = vmatprep.subr.mxu0 %v533_v56  ;;  %v1205_v45 = vld [vmem:[#allocation7 + $0x1a68] sm:$0xff]  ;;  %v948_v46 = vld [vmem:[#allocation7 + $0x1260] sm:$0xff] }
 0x1b9   : > { %2075 = vmatprep.subr.mxu1 %v789_v57  ;;  %2005 = vmatpush2.msra.mxu0 %v532_v58  ;;  %v1204_v47 = vld [vmem:[#allocation7 + $0x1a60] sm:$0xff]  ;;  %v941_v48 = vld [vmem:[#allocation7 + $0x1228] sm:$0xff] }
 0x1ba   : > { %2076 = vmatpush2.msra.mxu1 %v788_v59  ;;  %2006 = vmatprep.subr.mxu0 %v525_v60  ;;  %v1197_v49 = vld [vmem:[#allocation7 + $0x1a28] sm:$0xff]  ;;  %v940_v50 = vld [vmem:[#allocation7 + $0x1220] sm:$0xff] }
 0x1bb   : > { %2077 = vmatprep.subr.mxu1 %v781_v61  ;;  %2007 = vmatpush2.msra.mxu0 %v524_v62  ;;  %v1196_v51 = vld [vmem:[#allocation7 + $0x1a20] sm:$0xff]  ;;  %v933_v52 = vld [vmem:[#allocation7 + $0x11e8] sm:$0xff] }
 0x1bc   : > { %2078 = vmatpush2.msra.mxu1 %v780_v63  ;;  %2008 = vmatprep.subr.mxu0 %v517_v0  ;;  %v1189_v53 = vld [vmem:[#allocation7 + $0x19e8] sm:$0xff]  ;;  %v932_v54 = vld [vmem:[#allocation7 + $0x11e0] sm:$0xff] }
 0x1bd   : > { %2079 = vmatprep.subr.mxu1 %v773_v1  ;;  %2009 = vmatpush2.msra.mxu0 %v516_v2  ;;  %v1188_v55 = vld [vmem:[#allocation7 + $0x19e0] sm:$0xff]  ;;  %v925_v56 = vld [vmem:[#allocation7 + $0x11a8] sm:$0xff] }
 0x1be   : > { %2080 = vmatpush2.msra.mxu1 %v772_v3  ;;  %2010 = vmatprep.subr.mxu0 %v509_v4  ;;  %v1181_v57 = vld [vmem:[#allocation7 + $0x19a8] sm:$0xff]  ;;  %v924_v58 = vld [vmem:[#allocation7 + $0x11a0] sm:$0xff] }
 0x1bf   : > { %2081 = vmatprep.subr.mxu1 %v765_v5  ;;  %2011 = vmatpush2.msra.mxu0 %v508_v6  ;;  %v1180_v59 = vld [vmem:[#allocation7 + $0x19a0] sm:$0xff]  ;;  %v917_v60 = vld [vmem:[#allocation7 + $0x1168] sm:$0xff] }
 0x1c0   : > { %2082 = vmatpush2.msra.mxu1 %v764_v7  ;;  %2012 = vmatprep.subr.mxu0 %v501_v8  ;;  %v1173_v61 = vld [vmem:[#allocation7 + $0x1968] sm:$0xff]  ;;  %v916_v62 = vld [vmem:[#allocation7 + $0x1160] sm:$0xff] }
 0x1c1   : > { %2083 = vmatprep.subr.mxu1 %v757_v9  ;;  %2013 = vmatpush2.msra.mxu0 %v500_v10  ;;  %v1172_v63 = vld [vmem:[#allocation7 + $0x1960] sm:$0xff]  ;;  %v909_v0 = vld [vmem:[#allocation7 + $0x1128] sm:$0xff] }
 0x1c2   : > { %2084 = vmatpush2.msra.mxu1 %v756_v11  ;;  %2014 = vmatprep.subr.mxu0 %v493_v12  ;;  %v1165_v1 = vld [vmem:[#allocation7 + $0x1928] sm:$0xff]  ;;  %v908_v2 = vld [vmem:[#allocation7 + $0x1120] sm:$0xff] }
 0x1c3   : > { %2085 = vmatprep.subr.mxu1 %v749_v13  ;;  %2015 = vmatpush2.msra.mxu0 %v492_v14  ;;  %v1164_v3 = vld [vmem:[#allocation7 + $0x1920] sm:$0xff]  ;;  %v901_v4 = vld [vmem:[#allocation7 + $0x10e8] sm:$0xff] }
 0x1c4   : > { %2016 = vmatprep.mubr.f32.mxu0 %v3009_v16  ;;  %2086 = vmatpush2.msra.mxu1 %v748_v15  ;;  %v1157_v5 = vld [vmem:[#allocation7 + $0x18e8] sm:$0xff]  ;;  %v900_v6 = vld [vmem:[#allocation7 + $0x10e0] sm:$0xff] }
 0x1c5   : > { %2087 = vmatprep.mubr.f32.mxu1 %v3010_v19  ;;  %2017 = vmatmul.mubr.f32.vlgmr.msra.gmra.mxu0 %v3011_v22  ;;  %v1156_v7 = vld [vmem:[#allocation7 + $0x18e0] sm:$0xff]  ;;  %v893_v8 = vld [vmem:[#allocation7 + $0x10a8] sm:$0xff] }
 0x1c6   : > { %2088 = vmatmul.mubr.f32.vlgmr.msra.gmra.mxu1 %v3012_v23  ;;  %2094 = vmatprep.subr.mxu0 %v997_v17  ;;  %v1149_v9 = vld [vmem:[#allocation7 + $0x18a8] sm:$0xff]  ;;  %v892_v10 = vld [vmem:[#allocation7 + $0x10a0] sm:$0xff] }
 0x1c7   : > { %2165 = vmatprep.subr.mxu1 %v1253_v18  ;;  %2095 = vmatpush1.msra.mxu0 %v996_v20  ;;  %v1148_v11 = vld [vmem:[#allocation7 + $0x18a0] sm:$0xff]  ;;  %v885_v12 = vld [vmem:[#allocation7 + $0x1068] sm:$0xff] }
 0x1c8   : > { %2166 = vmatpush1.msra.mxu1 %v1252_v21  ;;  %2096 = vmatprep.subr.mxu0 %v989_v24  ;;  %v1141_v13 = vld [vmem:[#allocation7 + $0x1868] sm:$0xff]  ;;  %v884_v14 = vld [vmem:[#allocation7 + $0x1060] sm:$0xff] }
 0x1c9   : > { %2167 = vmatprep.subr.mxu1 %v1245_v25  ;;  %2097 = vmatpush1.msra.mxu0 %v988_v26  ;;  %v1140_v15 = vld [vmem:[#allocation7 + $0x1860] sm:$0xff]  ;;  %v877_v16 = vld [vmem:[#allocation7 + $0x1028] sm:$0xff] }
 0x1ca   : > { %2168 = vmatpush1.msra.mxu1 %v1244_v27  ;;  %2098 = vmatprep.subr.mxu0 %v981_v28  ;;  %v1133_v17 = vld [vmem:[#allocation7 + $0x1828] sm:$0xff]  ;;  %v876_v18 = vld [vmem:[#allocation7 + $0x1020] sm:$0xff] }
 0x1cb   : > { %2169 = vmatprep.subr.mxu1 %v1237_v29  ;;  %2099 = vmatpush1.msra.mxu0 %v980_v30  ;;  %v1132_v19 = vld [vmem:[#allocation7 + $0x1820] sm:$0xff]  ;;  %v1125_v20 = vld [vmem:[#allocation7 + $0x17e8] sm:$0xff] }
 0x1cc   : > { %2170 = vmatpush1.msra.mxu1 %v1236_v31  ;;  %2100 = vmatprep.subr.mxu0 %v973_v32  ;;  %v1381_v21 = vld [vmem:[#allocation7 + $0x1fe8] sm:$0xff]  ;;  %v1124_v22 = vld [vmem:[#allocation7 + $0x17e0] sm:$0xff] }
 0x1cd   : > { %2171 = vmatprep.subr.mxu1 %v1229_v33  ;;  %2101 = vmatpush1.msra.mxu0 %v972_v34  ;;  %v1380_v23 = vld [vmem:[#allocation7 + $0x1fe0] sm:$0xff]  ;;  %v1117_v24 = vld [vmem:[#allocation7 + $0x17a8] sm:$0xff] }
 0x1ce   : > { %2172 = vmatpush1.msra.mxu1 %v1228_v35  ;;  %2102 = vmatprep.subr.mxu0 %v965_v36  ;;  %v1373_v25 = vld [vmem:[#allocation7 + $0x1fa8] sm:$0xff]  ;;  %v1116_v26 = vld [vmem:[#allocation7 + $0x17a0] sm:$0xff] }
 0x1cf   : > { %2173 = vmatprep.subr.mxu1 %v1221_v37  ;;  %2103 = vmatpush1.msra.mxu0 %v964_v38  ;;  %v1372_v27 = vld [vmem:[#allocation7 + $0x1fa0] sm:$0xff]  ;;  %v1109_v28 = vld [vmem:[#allocation7 + $0x1768] sm:$0xff] }
 0x1d0   : > { %2174 = vmatpush1.msra.mxu1 %v1220_v39  ;;  %2104 = vmatprep.subr.mxu0 %v957_v40  ;;  %v1365_v29 = vld [vmem:[#allocation7 + $0x1f68] sm:$0xff]  ;;  %v1108_v30 = vld [vmem:[#allocation7 + $0x1760] sm:$0xff] }
 0x1d1   : > { %2175 = vmatprep.subr.mxu1 %v1213_v41  ;;  %2105 = vmatpush1.msra.mxu0 %v956_v42  ;;  %v1364_v31 = vld [vmem:[#allocation7 + $0x1f60] sm:$0xff]  ;;  %v1101_v32 = vld [vmem:[#allocation7 + $0x1728] sm:$0xff] }
 0x1d2   : > { %2176 = vmatpush1.msra.mxu1 %v1212_v43  ;;  %2106 = vmatprep.subr.mxu0 %v949_v44  ;;  %v1357_v33 = vld [vmem:[#allocation7 + $0x1f28] sm:$0xff]  ;;  %v1100_v34 = vld [vmem:[#allocation7 + $0x1720] sm:$0xff] }
 0x1d3   : > { %2177 = vmatprep.subr.mxu1 %v1205_v45  ;;  %2107 = vmatpush1.msra.mxu0 %v948_v46  ;;  %v1356_v35 = vld [vmem:[#allocation7 + $0x1f20] sm:$0xff]  ;;  %v1093_v36 = vld [vmem:[#allocation7 + $0x16e8] sm:$0xff] }
 0x1d4   : > { %2178 = vmatpush1.msra.mxu1 %v1204_v47  ;;  %2108 = vmatprep.subr.mxu0 %v941_v48  ;;  %v1349_v37 = vld [vmem:[#allocation7 + $0x1ee8] sm:$0xff]  ;;  %v1092_v38 = vld [vmem:[#allocation7 + $0x16e0] sm:$0xff] }
 0x1d5   : > { %2179 = vmatprep.subr.mxu1 %v1197_v49  ;;  %2109 = vmatpush1.msra.mxu0 %v940_v50  ;;  %v1348_v39 = vld [vmem:[#allocation7 + $0x1ee0] sm:$0xff]  ;;  %v1085_v40 = vld [vmem:[#allocation7 + $0x16a8] sm:$0xff] }
 0x1d6   : > { %2180 = vmatpush1.msra.mxu1 %v1196_v51  ;;  %2110 = vmatprep.subr.mxu0 %v933_v52  ;;  %v1341_v41 = vld [vmem:[#allocation7 + $0x1ea8] sm:$0xff]  ;;  %v1084_v42 = vld [vmem:[#allocation7 + $0x16a0] sm:$0xff] }
 0x1d7   : > { %2181 = vmatprep.subr.mxu1 %v1189_v53  ;;  %2111 = vmatpush1.msra.mxu0 %v932_v54  ;;  %v1340_v43 = vld [vmem:[#allocation7 + $0x1ea0] sm:$0xff]  ;;  %v1077_v44 = vld [vmem:[#allocation7 + $0x1668] sm:$0xff] }
 0x1d8   : > { %2182 = vmatpush1.msra.mxu1 %v1188_v55  ;;  %2112 = vmatprep.subr.mxu0 %v925_v56  ;;  %v1333_v45 = vld [vmem:[#allocation7 + $0x1e68] sm:$0xff]  ;;  %v1076_v46 = vld [vmem:[#allocation7 + $0x1660] sm:$0xff] }
 0x1d9   : > { %2183 = vmatprep.subr.mxu1 %v1181_v57  ;;  %2113 = vmatpush1.msra.mxu0 %v924_v58  ;;  %v1332_v47 = vld [vmem:[#allocation7 + $0x1e60] sm:$0xff]  ;;  %v1069_v48 = vld [vmem:[#allocation7 + $0x1628] sm:$0xff] }
 0x1da   : > { %2184 = vmatpush1.msra.mxu1 %v1180_v59  ;;  %2114 = vmatprep.subr.mxu0 %v917_v60  ;;  %v1325_v49 = vld [vmem:[#allocation7 + $0x1e28] sm:$0xff]  ;;  %v1068_v50 = vld [vmem:[#allocation7 + $0x1620] sm:$0xff] }
 0x1db   : > { %2185 = vmatprep.subr.mxu1 %v1173_v61  ;;  %2115 = vmatpush1.msra.mxu0 %v916_v62  ;;  %v1324_v51 = vld [vmem:[#allocation7 + $0x1e20] sm:$0xff]  ;;  %v1061_v52 = vld [vmem:[#allocation7 + $0x15e8] sm:$0xff] }
 0x1dc   : > { %2186 = vmatpush1.msra.mxu1 %v1172_v63  ;;  %2116 = vmatprep.subr.mxu0 %v909_v0  ;;  %v1317_v53 = vld [vmem:[#allocation7 + $0x1de8] sm:$0xff]  ;;  %v1060_v54 = vld [vmem:[#allocation7 + $0x15e0] sm:$0xff] }
 0x1dd   : > { %2187 = vmatprep.subr.mxu1 %v1165_v1  ;;  %2117 = vmatpush1.msra.mxu0 %v908_v2  ;;  %v1316_v55 = vld [vmem:[#allocation7 + $0x1de0] sm:$0xff]  ;;  %v1053_v56 = vld [vmem:[#allocation7 + $0x15a8] sm:$0xff] }
 0x1de   : > { %2188 = vmatpush1.msra.mxu1 %v1164_v3  ;;  %2118 = vmatprep.subr.mxu0 %v901_v4  ;;  %v1309_v57 = vld [vmem:[#allocation7 + $0x1da8] sm:$0xff]  ;;  %v1052_v58 = vld [vmem:[#allocation7 + $0x15a0] sm:$0xff] }
 0x1df   : > { %2189 = vmatprep.subr.mxu1 %v1157_v5  ;;  %2119 = vmatpush1.msra.mxu0 %v900_v6  ;;  %v1308_v59 = vld [vmem:[#allocation7 + $0x1da0] sm:$0xff]  ;;  %v1045_v60 = vld [vmem:[#allocation7 + $0x1568] sm:$0xff] }
 0x1e0   : > { %2190 = vmatpush1.msra.mxu1 %v1156_v7  ;;  %2120 = vmatprep.subr.mxu0 %v893_v8  ;;  %v1301_v61 = vld [vmem:[#allocation7 + $0x1d68] sm:$0xff]  ;;  %v1044_v62 = vld [vmem:[#allocation7 + $0x1560] sm:$0xff] }
 0x1e1   : > { %2191 = vmatprep.subr.mxu1 %v1149_v9  ;;  %2121 = vmatpush1.msra.mxu0 %v892_v10  ;;  %v1300_v63 = vld [vmem:[#allocation7 + $0x1d60] sm:$0xff]  ;;  %v1037_v0 = vld [vmem:[#allocation7 + $0x1528] sm:$0xff] }
 0x1e2   : > { %2192 = vmatpush1.msra.mxu1 %v1148_v11  ;;  %2122 = vmatprep.subr.mxu0 %v885_v12  ;;  %v1293_v1 = vld [vmem:[#allocation7 + $0x1d28] sm:$0xff]  ;;  %v1036_v2 = vld [vmem:[#allocation7 + $0x1520] sm:$0xff] }
 0x1e3   : > { %2193 = vmatprep.subr.mxu1 %v1141_v13  ;;  %2123 = vmatpush1.msra.mxu0 %v884_v14  ;;  %v1292_v3 = vld [vmem:[#allocation7 + $0x1d20] sm:$0xff]  ;;  %v1029_v4 = vld [vmem:[#allocation7 + $0x14e8] sm:$0xff] }
 0x1e4   : > { %2194 = vmatpush1.msra.mxu1 %v1140_v15  ;;  %2124 = vmatprep.subr.mxu0 %v877_v16  ;;  %v1285_v5 = vld [vmem:[#allocation7 + $0x1ce8] sm:$0xff]  ;;  %v1028_v6 = vld [vmem:[#allocation7 + $0x14e0] sm:$0xff] }
 0x1e5   : > { %2195 = vmatprep.subr.mxu1 %v1133_v17  ;;  %2125 = vmatpush1.msra.mxu0 %v876_v18  ;;  %v1284_v7 = vld [vmem:[#allocation7 + $0x1ce0] sm:$0xff]  ;;  %v1021_v8 = vld [vmem:[#allocation7 + $0x14a8] sm:$0xff] }
 0x1e6   : > { %2196 = vmatpush1.msra.mxu1 %v1132_v19  ;;  %2126 = vmatprep.subr.mxu0 %v1125_v20  ;;  %v1277_v9 = vld [vmem:[#allocation7 + $0x1ca8] sm:$0xff]  ;;  %v1020_v10 = vld [vmem:[#allocation7 + $0x14a0] sm:$0xff]  ;;  %v487_v20 = vld [vmem:[#allocation7 + $0x3f8] sm:$0xff] }
 0x1e7   : > { %2197 = vmatprep.subr.mxu1 %v1381_v21  ;;  %2127 = vmatpush2.msra.mxu0 %v1124_v22  ;;  %v1276_v11 = vld [vmem:[#allocation7 + $0x1ca0] sm:$0xff]  ;;  %v1013_v12 = vld [vmem:[#allocation7 + $0x1468] sm:$0xff]  ;;  %v743_v22 = vld [vmem:[#allocation7 + $0xbf8] sm:$0xff] }
 0x1e8   : > { %2198 = vmatpush2.msra.mxu1 %v1380_v23  ;;  %2128 = vmatprep.subr.mxu0 %v1117_v24  ;;  %v1269_v13 = vld [vmem:[#allocation7 + $0x1c68] sm:$0xff]  ;;  %v1012_v14 = vld [vmem:[#allocation7 + $0x1460] sm:$0xff]  ;;  %v486_v24 = vld [vmem:[#allocation7 + $0x3f0] sm:$0xff] }
 0x1e9   : > { %2199 = vmatprep.subr.mxu1 %v1373_v25  ;;  %2129 = vmatpush2.msra.mxu0 %v1116_v26  ;;  %v1268_v15 = vld [vmem:[#allocation7 + $0x1c60] sm:$0xff]  ;;  %v1005_v16 = vld [vmem:[#allocation7 + $0x1428] sm:$0xff]  ;;  %v742_v25 = vld [vmem:[#allocation7 + $0xbf0] sm:$0xff] }
 0x1ea   : > { %2200 = vmatpush2.msra.mxu1 %v1372_v27  ;;  %2130 = vmatprep.subr.mxu0 %v1109_v28  ;;  %v1261_v17 = vld [vmem:[#allocation7 + $0x1c28] sm:$0xff]  ;;  %v1004_v18 = vld [vmem:[#allocation7 + $0x1420] sm:$0xff]  ;;  %v3015_v26 = vld [vmem:[%s3386_s11 + $0x38] sm:$0xff] }
 0x1eb   : > { %2201 = vmatprep.subr.mxu1 %v1365_v29  ;;  %2131 = vmatpush2.msra.mxu0 %v1108_v30  ;;  %v1260_v19 = vld [vmem:[#allocation7 + $0x1c20] sm:$0xff]  ;;  %v3013_v21 = vld [vmem:[%s3386_s11 + $0x28] sm:$0xff]  ;;  %v479_v27 = vld [vmem:[#allocation7 + $0x3b8] sm:$0xff] }
 0x1ec   : > { %2202 = vmatpush2.msra.mxu1 %v1364_v31  ;;  %2132 = vmatprep.subr.mxu0 %v1101_v32  ;;  %v3014_v23 = vld [vmem:[%s3386_s11 + $0x20] sm:$0xff]  ;;  %v735_v28 = vld [vmem:[#allocation7 + $0xbb8] sm:$0xff]  ;;  %v3016_v29 = vld [vmem:[%s3386_s11 + $0x30] sm:$0xff] }
 0x1ed   : > { %2203 = vmatprep.subr.mxu1 %v1357_v33  ;;  %2133 = vmatpush2.msra.mxu0 %v1100_v34  ;;  %v478_v30 = vld [vmem:[#allocation7 + $0x3b0] sm:$0xff]  ;;  %v471_v32 = vld [vmem:[#allocation7 + $0x378] sm:$0xff] }
 0x1ee   : > { %2204 = vmatpush2.msra.mxu1 %v1356_v35  ;;  %2134 = vmatprep.subr.mxu0 %v1093_v36  ;;  %v734_v31 = vld [vmem:[#allocation7 + $0xbb0] sm:$0xff]  ;;  %v727_v33 = vld [vmem:[#allocation7 + $0xb78] sm:$0xff] }
 0x1ef   : > { %2205 = vmatprep.subr.mxu1 %v1349_v37  ;;  %2135 = vmatpush2.msra.mxu0 %v1092_v38  ;;  %v470_v34 = vld [vmem:[#allocation7 + $0x370] sm:$0xff]  ;;  %v463_v36 = vld [vmem:[#allocation7 + $0x338] sm:$0xff] }
 0x1f0   : > { %2206 = vmatpush2.msra.mxu1 %v1348_v39  ;;  %2136 = vmatprep.subr.mxu0 %v1085_v40  ;;  %v726_v35 = vld [vmem:[#allocation7 + $0xb70] sm:$0xff]  ;;  %v719_v37 = vld [vmem:[#allocation7 + $0xb38] sm:$0xff] }
 0x1f1   : > { %2207 = vmatprep.subr.mxu1 %v1341_v41  ;;  %2137 = vmatpush2.msra.mxu0 %v1084_v42  ;;  %v462_v38 = vld [vmem:[#allocation7 + $0x330] sm:$0xff]  ;;  %v455_v40 = vld [vmem:[#allocation7 + $0x2f8] sm:$0xff] }
 0x1f2   : > { %2208 = vmatpush2.msra.mxu1 %v1340_v43  ;;  %2138 = vmatprep.subr.mxu0 %v1077_v44  ;;  %v718_v39 = vld [vmem:[#allocation7 + $0xb30] sm:$0xff]  ;;  %v711_v41 = vld [vmem:[#allocation7 + $0xaf8] sm:$0xff] }
 0x1f3   : > { %2209 = vmatprep.subr.mxu1 %v1333_v45  ;;  %2139 = vmatpush2.msra.mxu0 %v1076_v46  ;;  %v454_v42 = vld [vmem:[#allocation7 + $0x2f0] sm:$0xff]  ;;  %v447_v44 = vld [vmem:[#allocation7 + $0x2b8] sm:$0xff] }
 0x1f4   : > { %2210 = vmatpush2.msra.mxu1 %v1332_v47  ;;  %2140 = vmatprep.subr.mxu0 %v1069_v48  ;;  %v710_v43 = vld [vmem:[#allocation7 + $0xaf0] sm:$0xff]  ;;  %v703_v45 = vld [vmem:[#allocation7 + $0xab8] sm:$0xff] }
 0x1f5   : > { %2211 = vmatprep.subr.mxu1 %v1325_v49  ;;  %2141 = vmatpush2.msra.mxu0 %v1068_v50  ;;  %v446_v46 = vld [vmem:[#allocation7 + $0x2b0] sm:$0xff]  ;;  %v439_v48 = vld [vmem:[#allocation7 + $0x278] sm:$0xff] }
 0x1f6   : > { %2212 = vmatpush2.msra.mxu1 %v1324_v51  ;;  %2142 = vmatprep.subr.mxu0 %v1061_v52  ;;  %v702_v47 = vld [vmem:[#allocation7 + $0xab0] sm:$0xff]  ;;  %v695_v49 = vld [vmem:[#allocation7 + $0xa78] sm:$0xff] }
 0x1f7   : > { %2213 = vmatprep.subr.mxu1 %v1317_v53  ;;  %2143 = vmatpush2.msra.mxu0 %v1060_v54  ;;  %v438_v50 = vld [vmem:[#allocation7 + $0x270] sm:$0xff]  ;;  %v431_v52 = vld [vmem:[#allocation7 + $0x238] sm:$0xff] }
 0x1f8   : > { %2214 = vmatpush2.msra.mxu1 %v1316_v55  ;;  %2144 = vmatprep.subr.mxu0 %v1053_v56  ;;  %v694_v51 = vld [vmem:[#allocation7 + $0xa70] sm:$0xff]  ;;  %v687_v53 = vld [vmem:[#allocation7 + $0xa38] sm:$0xff] }
 0x1f9   : > { %2215 = vmatprep.subr.mxu1 %v1309_v57  ;;  %2145 = vmatpush2.msra.mxu0 %v1052_v58  ;;  %v430_v54 = vld [vmem:[#allocation7 + $0x230] sm:$0xff]  ;;  %v423_v56 = vld [vmem:[#allocation7 + $0x1f8] sm:$0xff] }
 0x1fa   : > { %2216 = vmatpush2.msra.mxu1 %v1308_v59  ;;  %2146 = vmatprep.subr.mxu0 %v1045_v60  ;;  %v686_v55 = vld [vmem:[#allocation7 + $0xa30] sm:$0xff]  ;;  %v679_v57 = vld [vmem:[#allocation7 + $0x9f8] sm:$0xff] }
 0x1fb   : > { %2217 = vmatprep.subr.mxu1 %v1301_v61  ;;  %2147 = vmatpush2.msra.mxu0 %v1044_v62  ;;  %v422_v58 = vld [vmem:[#allocation7 + $0x1f0] sm:$0xff]  ;;  %v415_v60 = vld [vmem:[#allocation7 + $0x1b8] sm:$0xff] }
 0x1fc   : > { %2218 = vmatpush2.msra.mxu1 %v1300_v63  ;;  %2148 = vmatprep.subr.mxu0 %v1037_v0  ;;  %v678_v59 = vld [vmem:[#allocation7 + $0x9f0] sm:$0xff]  ;;  %v671_v61 = vld [vmem:[#allocation7 + $0x9b8] sm:$0xff] }
 0x1fd   : > { %2219 = vmatprep.subr.mxu1 %v1293_v1  ;;  %2149 = vmatpush2.msra.mxu0 %v1036_v2  ;;  %v414_v62 = vld [vmem:[#allocation7 + $0x1b0] sm:$0xff]  ;;  %v407_v0 = vld [vmem:[#allocation7 + $0x178] sm:$0xff] }
 0x1fe   : > { %2220 = vmatpush2.msra.mxu1 %v1292_v3  ;;  %2150 = vmatprep.subr.mxu0 %v1029_v4  ;;  %v670_v63 = vld [vmem:[#allocation7 + $0x9b0] sm:$0xff]  ;;  %v663_v1 = vld [vmem:[#allocation7 + $0x978] sm:$0xff] }
 0x1ff   : > { %2221 = vmatprep.subr.mxu1 %v1285_v5  ;;  %2151 = vmatpush2.msra.mxu0 %v1028_v6  ;;  %v406_v2 = vld [vmem:[#allocation7 + $0x170] sm:$0xff]  ;;  %v399_v4 = vld [vmem:[#allocation7 + $0x138] sm:$0xff] }
 0x200   : > { %2222 = vmatpush2.msra.mxu1 %v1284_v7  ;;  %2152 = vmatprep.subr.mxu0 %v1021_v8  ;;  %v662_v3 = vld [vmem:[#allocation7 + $0x970] sm:$0xff]  ;;  %v655_v5 = vld [vmem:[#allocation7 + $0x938] sm:$0xff] }
 0x201   : > { %2223 = vmatprep.subr.mxu1 %v1277_v9  ;;  %2153 = vmatpush2.msra.mxu0 %v1020_v10  ;;  %v398_v6 = vld [vmem:[#allocation7 + $0x130] sm:$0xff]  ;;  %v391_v8 = vld [vmem:[#allocation7 + $0xf8] sm:$0xff] }
 0x202   : > { %2224 = vmatpush2.msra.mxu1 %v1276_v11  ;;  %2154 = vmatprep.subr.mxu0 %v1013_v12  ;;  %v654_v7 = vld [vmem:[#allocation7 + $0x930] sm:$0xff]  ;;  %v647_v9 = vld [vmem:[#allocation7 + $0x8f8] sm:$0xff] }
 0x203   : > { %2225 = vmatprep.subr.mxu1 %v1269_v13  ;;  %2155 = vmatpush2.msra.mxu0 %v1012_v14  ;;  %v390_v10 = vld [vmem:[#allocation7 + $0xf0] sm:$0xff]  ;;  %v383_v12 = vld [vmem:[#allocation7 + $0xb8] sm:$0xff] }
 0x204   : > { %2226 = vmatpush2.msra.mxu1 %v1268_v15  ;;  %2156 = vmatprep.subr.mxu0 %v1005_v16  ;;  %v646_v11 = vld [vmem:[#allocation7 + $0x8f0] sm:$0xff]  ;;  %v639_v13 = vld [vmem:[#allocation7 + $0x8b8] sm:$0xff] }
 0x205   : > { %2227 = vmatprep.subr.mxu1 %v1261_v17  ;;  %2157 = vmatpush2.msra.mxu0 %v1004_v18  ;;  %v382_v14 = vld [vmem:[#allocation7 + $0xb0] sm:$0xff]  ;;  %v375_v16 = vld [vmem:[#allocation7 + $0x78] sm:$0xff] }
 0x206   : > { %2158 = vmatprep.mubr.f32.mxu0 %v3013_v21  ;;  %2228 = vmatpush2.msra.mxu1 %v1260_v19  ;;  %v638_v15 = vld [vmem:[#allocation7 + $0x8b0] sm:$0xff]  ;;  %v631_v17 = vld [vmem:[#allocation7 + $0x878] sm:$0xff] }
 0x207   : > { %2159 = vmatmul.mubr.f32.vlgmr.msra.gmra.mxu0 %v3014_v23  ;;  %2229 = vmatprep.mubr.f32.mxu1 %v3015_v26  ;;  %v374_v18 = vld [vmem:[#allocation7 + $0x70] sm:$0xff]  ;;  %v623_v21 = vld [vmem:[#allocation7 + $0x838] sm:$0xff] }
 0x208   : > { %2236 = vmatprep.subr.mxu0 %v487_v20  ;;  %2307 = vmatprep.subr.mxu1 %v743_v22  ;;  %v630_v19 = vld [vmem:[#allocation7 + $0x870] sm:$0xff]  ;;  %v367_v20 = vld [vmem:[#allocation7 + $0x38] sm:$0xff] }
 0x209   : > { %2230 = vmatmul.mubr.f32.vlgmr.msra.gmra.mxu1 %v3016_v29  ;;  %2237 = vmatpush1.msra.mxu0 %v486_v24  ;;  %v366_v22 = vld [vmem:[#allocation7 + $0x30] sm:$0xff]  ;;  %v615_v24 = vld [vmem:[#allocation7 + $0x7f8] sm:$0xff] }
 0x20a   : > { %2308 = vmatpush1.msra.mxu1 %v742_v25  ;;  %2238 = vmatprep.subr.mxu0 %v479_v27  ;;  %v622_v23 = vld [vmem:[#allocation7 + $0x830] sm:$0xff]  ;;  %v871_v25 = vld [vmem:[#allocation7 + $0xff8] sm:$0xff] }
 0x20b   : > { %2309 = vmatprep.subr.mxu1 %v735_v28  ;;  %2239 = vmatpush1.msra.mxu0 %v478_v30  ;;  %v614_v26 = vld [vmem:[#allocation7 + $0x7f0] sm:$0xff]  ;;  %v607_v28 = vld [vmem:[#allocation7 + $0x7b8] sm:$0xff] }
 0x20c   : > { %2310 = vmatpush1.msra.mxu1 %v734_v31  ;;  %2240 = vmatprep.subr.mxu0 %v471_v32  ;;  %v870_v27 = vld [vmem:[#allocation7 + $0xff0] sm:$0xff]  ;;  %v863_v29 = vld [vmem:[#allocation7 + $0xfb8] sm:$0xff] }
 0x20d   : > { %2311 = vmatprep.subr.mxu1 %v727_v33  ;;  %2241 = vmatpush1.msra.mxu0 %v470_v34  ;;  %v606_v30 = vld [vmem:[#allocation7 + $0x7b0] sm:$0xff]  ;;  %v599_v32 = vld [vmem:[#allocation7 + $0x778] sm:$0xff] }
 0x20e   : > { %2312 = vmatpush1.msra.mxu1 %v726_v35  ;;  %2242 = vmatprep.subr.mxu0 %v463_v36  ;;  %v862_v31 = vld [vmem:[#allocation7 + $0xfb0] sm:$0xff]  ;;  %v855_v33 = vld [vmem:[#allocation7 + $0xf78] sm:$0xff] }
 0x20f   : > { %2313 = vmatprep.subr.mxu1 %v719_v37  ;;  %2243 = vmatpush1.msra.mxu0 %v462_v38  ;;  %v598_v34 = vld [vmem:[#allocation7 + $0x770] sm:$0xff]  ;;  %v591_v36 = vld [vmem:[#allocation7 + $0x738] sm:$0xff] }
 0x210   : > { %2314 = vmatpush1.msra.mxu1 %v718_v39  ;;  %2244 = vmatprep.subr.mxu0 %v455_v40  ;;  %v854_v35 = vld [vmem:[#allocation7 + $0xf70] sm:$0xff]  ;;  %v847_v37 = vld [vmem:[#allocation7 + $0xf38] sm:$0xff] }
 0x211   : > { %2315 = vmatprep.subr.mxu1 %v711_v41  ;;  %2245 = vmatpush1.msra.mxu0 %v454_v42  ;;  %v590_v38 = vld [vmem:[#allocation7 + $0x730] sm:$0xff]  ;;  %v583_v40 = vld [vmem:[#allocation7 + $0x6f8] sm:$0xff] }
 0x212   : > { %2316 = vmatpush1.msra.mxu1 %v710_v43  ;;  %2246 = vmatprep.subr.mxu0 %v447_v44  ;;  %v846_v39 = vld [vmem:[#allocation7 + $0xf30] sm:$0xff]  ;;  %v839_v41 = vld [vmem:[#allocation7 + $0xef8] sm:$0xff] }
 0x213   : > { %2317 = vmatprep.subr.mxu1 %v703_v45  ;;  %2247 = vmatpush1.msra.mxu0 %v446_v46  ;;  %v582_v42 = vld [vmem:[#allocation7 + $0x6f0] sm:$0xff]  ;;  %v575_v44 = vld [vmem:[#allocation7 + $0x6b8] sm:$0xff] }
 0x214   : > { %2318 = vmatpush1.msra.mxu1 %v702_v47  ;;  %2248 = vmatprep.subr.mxu0 %v439_v48  ;;  %v838_v43 = vld [vmem:[#allocation7 + $0xef0] sm:$0xff]  ;;  %v831_v45 = vld [vmem:[#allocation7 + $0xeb8] sm:$0xff] }
 0x215   : > { %2319 = vmatprep.subr.mxu1 %v695_v49  ;;  %2249 = vmatpush1.msra.mxu0 %v438_v50  ;;  %v574_v46 = vld [vmem:[#allocation7 + $0x6b0] sm:$0xff]  ;;  %v567_v48 = vld [vmem:[#allocation7 + $0x678] sm:$0xff] }
 0x216   : > { %2320 = vmatpush1.msra.mxu1 %v694_v51  ;;  %2250 = vmatprep.subr.mxu0 %v431_v52  ;;  %v830_v47 = vld [vmem:[#allocation7 + $0xeb0] sm:$0xff]  ;;  %v823_v49 = vld [vmem:[#allocation7 + $0xe78] sm:$0xff] }
 0x217   : > { %2321 = vmatprep.subr.mxu1 %v687_v53  ;;  %2251 = vmatpush1.msra.mxu0 %v430_v54  ;;  %v566_v50 = vld [vmem:[#allocation7 + $0x670] sm:$0xff]  ;;  %v559_v52 = vld [vmem:[#allocation7 + $0x638] sm:$0xff] }
 0x218   : > { %2322 = vmatpush1.msra.mxu1 %v686_v55  ;;  %2252 = vmatprep.subr.mxu0 %v423_v56  ;;  %v822_v51 = vld [vmem:[#allocation7 + $0xe70] sm:$0xff]  ;;  %v815_v53 = vld [vmem:[#allocation7 + $0xe38] sm:$0xff] }
 0x219   : > { %2323 = vmatprep.subr.mxu1 %v679_v57  ;;  %2253 = vmatpush1.msra.mxu0 %v422_v58  ;;  %v558_v54 = vld [vmem:[#allocation7 + $0x630] sm:$0xff]  ;;  %v551_v56 = vld [vmem:[#allocation7 + $0x5f8] sm:$0xff] }
 0x21a   : > { %2324 = vmatpush1.msra.mxu1 %v678_v59  ;;  %2254 = vmatprep.subr.mxu0 %v415_v60  ;;  %v814_v55 = vld [vmem:[#allocation7 + $0xe30] sm:$0xff]  ;;  %v807_v57 = vld [vmem:[#allocation7 + $0xdf8] sm:$0xff] }
 0x21b   : > { %2325 = vmatprep.subr.mxu1 %v671_v61  ;;  %2255 = vmatpush1.msra.mxu0 %v414_v62  ;;  %v550_v58 = vld [vmem:[#allocation7 + $0x5f0] sm:$0xff]  ;;  %v543_v60 = vld [vmem:[#allocation7 + $0x5b8] sm:$0xff] }
 0x21c   : > { %2326 = vmatpush1.msra.mxu1 %v670_v63  ;;  %2256 = vmatprep.subr.mxu0 %v407_v0  ;;  %v806_v59 = vld [vmem:[#allocation7 + $0xdf0] sm:$0xff]  ;;  %v799_v61 = vld [vmem:[#allocation7 + $0xdb8] sm:$0xff] }
 0x21d   : > { %2327 = vmatprep.subr.mxu1 %v663_v1  ;;  %2257 = vmatpush1.msra.mxu0 %v406_v2  ;;  %v542_v62 = vld [vmem:[#allocation7 + $0x5b0] sm:$0xff]  ;;  %v535_v0 = vld [vmem:[#allocation7 + $0x578] sm:$0xff] }
 0x21e   : > { %2328 = vmatpush1.msra.mxu1 %v662_v3  ;;  %2258 = vmatprep.subr.mxu0 %v399_v4  ;;  %v798_v63 = vld [vmem:[#allocation7 + $0xdb0] sm:$0xff]  ;;  %v791_v1 = vld [vmem:[#allocation7 + $0xd78] sm:$0xff] }
 0x21f   : > { %2329 = vmatprep.subr.mxu1 %v655_v5  ;;  %2259 = vmatpush1.msra.mxu0 %v398_v6  ;;  %v534_v2 = vld [vmem:[#allocation7 + $0x570] sm:$0xff]  ;;  %v527_v4 = vld [vmem:[#allocation7 + $0x538] sm:$0xff] }
 0x220   : > { %2330 = vmatpush1.msra.mxu1 %v654_v7  ;;  %2260 = vmatprep.subr.mxu0 %v391_v8  ;;  %v790_v3 = vld [vmem:[#allocation7 + $0xd70] sm:$0xff]  ;;  %v783_v5 = vld [vmem:[#allocation7 + $0xd38] sm:$0xff] }
 0x221   : > { %2331 = vmatprep.subr.mxu1 %v647_v9  ;;  %2261 = vmatpush1.msra.mxu0 %v390_v10  ;;  %v526_v6 = vld [vmem:[#allocation7 + $0x530] sm:$0xff]  ;;  %v519_v8 = vld [vmem:[#allocation7 + $0x4f8] sm:$0xff] }
 0x222   : > { %2332 = vmatpush1.msra.mxu1 %v646_v11  ;;  %2262 = vmatprep.subr.mxu0 %v383_v12  ;;  %v782_v7 = vld [vmem:[#allocation7 + $0xd30] sm:$0xff]  ;;  %v775_v9 = vld [vmem:[#allocation7 + $0xcf8] sm:$0xff] }
 0x223   : > { %2333 = vmatprep.subr.mxu1 %v639_v13  ;;  %2263 = vmatpush1.msra.mxu0 %v382_v14  ;;  %v518_v10 = vld [vmem:[#allocation7 + $0x4f0] sm:$0xff]  ;;  %v511_v12 = vld [vmem:[#allocation7 + $0x4b8] sm:$0xff] }
 0x224   : > { %2334 = vmatpush1.msra.mxu1 %v638_v15  ;;  %2264 = vmatprep.subr.mxu0 %v375_v16  ;;  %v774_v11 = vld [vmem:[#allocation7 + $0xcf0] sm:$0xff]  ;;  %v767_v13 = vld [vmem:[#allocation7 + $0xcb8] sm:$0xff] }
 0x225   : > { %2335 = vmatprep.subr.mxu1 %v631_v17  ;;  %2265 = vmatpush1.msra.mxu0 %v374_v18  ;;  %v510_v14 = vld [vmem:[#allocation7 + $0x4b0] sm:$0xff]  ;;  %v503_v16 = vld [vmem:[#allocation7 + $0x478] sm:$0xff] }
 0x226   : > { %2336 = vmatpush1.msra.mxu1 %v630_v19  ;;  %2266 = vmatprep.subr.mxu0 %v367_v20  ;;  %v766_v15 = vld [vmem:[#allocation7 + $0xcb0] sm:$0xff]  ;;  %v759_v17 = vld [vmem:[#allocation7 + $0xc78] sm:$0xff] }
 0x227   : > { %2337 = vmatprep.subr.mxu1 %v623_v21  ;;  %2267 = vmatpush1.msra.mxu0 %v366_v22  ;;  %v502_v18 = vld [vmem:[#allocation7 + $0x470] sm:$0xff]  ;;  %v495_v20 = vld [vmem:[#allocation7 + $0x438] sm:$0xff] }
 0x228   : > { %2338 = vmatpush1.msra.mxu1 %v622_v23  ;;  %2268 = vmatprep.subr.mxu0 %v615_v24  ;;  %v758_v19 = vld [vmem:[#allocation7 + $0xc70] sm:$0xff]  ;;  %v751_v21 = vld [vmem:[#allocation7 + $0xc38] sm:$0xff]  ;;  %v3017_v24 = vld [vmem:[%s3386_s11 + $0x8] sm:$0xff] }
 0x229   : > { %2339 = vmatprep.subr.mxu1 %v871_v25  ;;  %2269 = vmatpush2.msra.mxu0 %v614_v26  ;;  %v494_v22 = vld [vmem:[#allocation7 + $0x430] sm:$0xff]  ;;  %v999_v25 = vld [vmem:[#allocation7 + $0x13f8] sm:$0xff] }
 0x22a   : > { %2340 = vmatpush2.msra.mxu1 %v870_v27  ;;  %2270 = vmatprep.subr.mxu0 %v607_v28  ;;  %v750_v23 = vld [vmem:[#allocation7 + $0xc30] sm:$0xff]  ;;  %v1255_v26 = vld [vmem:[#allocation7 + $0x1bf8] sm:$0xff] }
 0x22b   : > { %2341 = vmatprep.subr.mxu1 %v863_v29  ;;  %2271 = vmatpush2.msra.mxu0 %v606_v30  ;;  %v3018_v27 = vld [vmem:[%s3386_s11 + $0x18] sm:$0xff]  ;;  %v998_v28 = vld [vmem:[#allocation7 + $0x13f0] sm:$0xff]  ;;  %v3019_v30 = vld [vmem:[%s3386_s11] sm:$0xff] }
 0x22c   : > { %2342 = vmatpush2.msra.mxu1 %v862_v31  ;;  %2272 = vmatprep.subr.mxu0 %v599_v32  ;;  %v1254_v29 = vld [vmem:[#allocation7 + $0x1bf0] sm:$0xff]  ;;  %v991_v32 = vld [vmem:[#allocation7 + $0x13b8] sm:$0xff] }
 0x22d   : > { %2343 = vmatprep.subr.mxu1 %v855_v33  ;;  %2273 = vmatpush2.msra.mxu0 %v598_v34  ;;  %v3020_v31 = vld [vmem:[%s3386_s11 + $0x10] sm:$0xff]  ;;  %v1247_v33 = vld [vmem:[#allocation7 + $0x1bb8] sm:$0xff] }
 0x22e   : > { %2344 = vmatpush2.msra.mxu1 %v854_v35  ;;  %2274 = vmatprep.subr.mxu0 %v591_v36  ;;  %v990_v34 = vld [vmem:[#allocation7 + $0x13b0] sm:$0xff]  ;;  %v983_v36 = vld [vmem:[#allocation7 + $0x1378] sm:$0xff] }
 0x22f   : > { %2345 = vmatprep.subr.mxu1 %v847_v37  ;;  %2275 = vmatpush2.msra.mxu0 %v590_v38  ;;  %v1246_v35 = vld [vmem:[#allocation7 + $0x1bb0] sm:$0xff]  ;;  %v1239_v37 = vld [vmem:[#allocation7 + $0x1b78] sm:$0xff] }
 0x230   : > { %2346 = vmatpush2.msra.mxu1 %v846_v39  ;;  %2276 = vmatprep.subr.mxu0 %v583_v40  ;;  %v982_v38 = vld [vmem:[#allocation7 + $0x1370] sm:$0xff]  ;;  %v975_v40 = vld [vmem:[#allocation7 + $0x1338] sm:$0xff] }
 0x231   : > { %2347 = vmatprep.subr.mxu1 %v839_v41  ;;  %2277 = vmatpush2.msra.mxu0 %v582_v42  ;;  %v1238_v39 = vld [vmem:[#allocation7 + $0x1b70] sm:$0xff]  ;;  %v1231_v41 = vld [vmem:[#allocation7 + $0x1b38] sm:$0xff] }
 0x232   : > { %2348 = vmatpush2.msra.mxu1 %v838_v43  ;;  %2278 = vmatprep.subr.mxu0 %v575_v44  ;;  %v974_v42 = vld [vmem:[#allocation7 + $0x1330] sm:$0xff]  ;;  %v967_v44 = vld [vmem:[#allocation7 + $0x12f8] sm:$0xff] }
 0x233   : > { %2349 = vmatprep.subr.mxu1 %v831_v45  ;;  %2279 = vmatpush2.msra.mxu0 %v574_v46  ;;  %v1230_v43 = vld [vmem:[#allocation7 + $0x1b30] sm:$0xff]  ;;  %v1223_v45 = vld [vmem:[#allocation7 + $0x1af8] sm:$0xff] }
 0x234   : > { %2350 = vmatpush2.msra.mxu1 %v830_v47  ;;  %2280 = vmatprep.subr.mxu0 %v567_v48  ;;  %v966_v46 = vld [vmem:[#allocation7 + $0x12f0] sm:$0xff]  ;;  %v959_v48 = vld [vmem:[#allocation7 + $0x12b8] sm:$0xff] }
 0x235   : > { %2351 = vmatprep.subr.mxu1 %v823_v49  ;;  %2281 = vmatpush2.msra.mxu0 %v566_v50  ;;  %v1222_v47 = vld [vmem:[#allocation7 + $0x1af0] sm:$0xff]  ;;  %v1215_v49 = vld [vmem:[#allocation7 + $0x1ab8] sm:$0xff] }
 0x236   : > { %2352 = vmatpush2.msra.mxu1 %v822_v51  ;;  %2282 = vmatprep.subr.mxu0 %v559_v52  ;;  %v958_v50 = vld [vmem:[#allocation7 + $0x12b0] sm:$0xff]  ;;  %v951_v52 = vld [vmem:[#allocation7 + $0x1278] sm:$0xff] }
 0x237   : > { %2353 = vmatprep.subr.mxu1 %v815_v53  ;;  %2283 = vmatpush2.msra.mxu0 %v558_v54  ;;  %v1214_v51 = vld [vmem:[#allocation7 + $0x1ab0] sm:$0xff]  ;;  %v1207_v53 = vld [vmem:[#allocation7 + $0x1a78] sm:$0xff] }
 0x238   : > { %2354 = vmatpush2.msra.mxu1 %v814_v55  ;;  %2284 = vmatprep.subr.mxu0 %v551_v56  ;;  %v950_v54 = vld [vmem:[#allocation7 + $0x1270] sm:$0xff]  ;;  %v943_v56 = vld [vmem:[#allocation7 + $0x1238] sm:$0xff] }
 0x239   : > { %2355 = vmatprep.subr.mxu1 %v807_v57  ;;  %2285 = vmatpush2.msra.mxu0 %v550_v58  ;;  %v1206_v55 = vld [vmem:[#allocation7 + $0x1a70] sm:$0xff]  ;;  %v1199_v57 = vld [vmem:[#allocation7 + $0x1a38] sm:$0xff] }
 0x23a   : > { %2356 = vmatpush2.msra.mxu1 %v806_v59  ;;  %2286 = vmatprep.subr.mxu0 %v543_v60  ;;  %v942_v58 = vld [vmem:[#allocation7 + $0x1230] sm:$0xff]  ;;  %v935_v60 = vld [vmem:[#allocation7 + $0x11f8] sm:$0xff] }
 0x23b   : > { %2357 = vmatprep.subr.mxu1 %v799_v61  ;;  %2287 = vmatpush2.msra.mxu0 %v542_v62  ;;  %v1198_v59 = vld [vmem:[#allocation7 + $0x1a30] sm:$0xff]  ;;  %v1191_v61 = vld [vmem:[#allocation7 + $0x19f8] sm:$0xff] }
 0x23c   : > { %2358 = vmatpush2.msra.mxu1 %v798_v63  ;;  %2288 = vmatprep.subr.mxu0 %v535_v0  ;;  %v934_v62 = vld [vmem:[#allocation7 + $0x11f0] sm:$0xff]  ;;  %v927_v0 = vld [vmem:[#allocation7 + $0x11b8] sm:$0xff] }
 0x23d   : > { %2359 = vmatprep.subr.mxu1 %v791_v1  ;;  %2289 = vmatpush2.msra.mxu0 %v534_v2  ;;  %v1190_v63 = vld [vmem:[#allocation7 + $0x19f0] sm:$0xff]  ;;  %v1183_v1 = vld [vmem:[#allocation7 + $0x19b8] sm:$0xff] }
 0x23e   : > { %2360 = vmatpush2.msra.mxu1 %v790_v3  ;;  %2290 = vmatprep.subr.mxu0 %v527_v4  ;;  %v926_v2 = vld [vmem:[#allocation7 + $0x11b0] sm:$0xff]  ;;  %v919_v4 = vld [vmem:[#allocation7 + $0x1178] sm:$0xff] }
 0x23f   : > { %2361 = vmatprep.subr.mxu1 %v783_v5  ;;  %2291 = vmatpush2.msra.mxu0 %v526_v6  ;;  %v1182_v3 = vld [vmem:[#allocation7 + $0x19b0] sm:$0xff]  ;;  %v1175_v5 = vld [vmem:[#allocation7 + $0x1978] sm:$0xff] }
 0x240   : > { %2362 = vmatpush2.msra.mxu1 %v782_v7  ;;  %2292 = vmatprep.subr.mxu0 %v519_v8  ;;  %v918_v6 = vld [vmem:[#allocation7 + $0x1170] sm:$0xff]  ;;  %v911_v8 = vld [vmem:[#allocation7 + $0x1138] sm:$0xff] }
 0x241   : > { %2363 = vmatprep.subr.mxu1 %v775_v9  ;;  %2293 = vmatpush2.msra.mxu0 %v518_v10  ;;  %v1174_v7 = vld [vmem:[#allocation7 + $0x1970] sm:$0xff]  ;;  %v1167_v9 = vld [vmem:[#allocation7 + $0x1938] sm:$0xff] }
 0x242   : > { %2364 = vmatpush2.msra.mxu1 %v774_v11  ;;  %2294 = vmatprep.subr.mxu0 %v511_v12  ;;  %v910_v10 = vld [vmem:[#allocation7 + $0x1130] sm:$0xff]  ;;  %v903_v12 = vld [vmem:[#allocation7 + $0x10f8] sm:$0xff] }
 0x243   : > { %2365 = vmatprep.subr.mxu1 %v767_v13  ;;  %2295 = vmatpush2.msra.mxu0 %v510_v14  ;;  %v1166_v11 = vld [vmem:[#allocation7 + $0x1930] sm:$0xff]  ;;  %v1159_v13 = vld [vmem:[#allocation7 + $0x18f8] sm:$0xff] }
 0x244   : > { %2366 = vmatpush2.msra.mxu1 %v766_v15  ;;  %2296 = vmatprep.subr.mxu0 %v503_v16  ;;  %v902_v14 = vld [vmem:[#allocation7 + $0x10f0] sm:$0xff]  ;;  %v895_v16 = vld [vmem:[#allocation7 + $0x10b8] sm:$0xff] }
 0x245   : > { %2367 = vmatprep.subr.mxu1 %v759_v17  ;;  %2297 = vmatpush2.msra.mxu0 %v502_v18  ;;  %v1158_v15 = vld [vmem:[#allocation7 + $0x18f0] sm:$0xff]  ;;  %v1151_v17 = vld [vmem:[#allocation7 + $0x18b8] sm:$0xff] }
 0x246   : > { %2368 = vmatpush2.msra.mxu1 %v758_v19  ;;  %2298 = vmatprep.subr.mxu0 %v495_v20  ;;  %v894_v18 = vld [vmem:[#allocation7 + $0x10b0] sm:$0xff]  ;;  %v887_v20 = vld [vmem:[#allocation7 + $0x1078] sm:$0xff] }
 0x247   : > { %2369 = vmatprep.subr.mxu1 %v751_v21  ;;  %2299 = vmatpush2.msra.mxu0 %v494_v22  ;;  %v1150_v19 = vld [vmem:[#allocation7 + $0x18b0] sm:$0xff]  ;;  %v1143_v21 = vld [vmem:[#allocation7 + $0x1878] sm:$0xff] }
 0x248   : > { %2300 = vmatprep.mubr.f32.mxu0 %v3017_v24  ;;  %2370 = vmatpush2.msra.mxu1 %v750_v23  ;;  %v886_v22 = vld [vmem:[#allocation7 + $0x1070] sm:$0xff]  ;;  %v879_v24 = vld [vmem:[#allocation7 + $0x1038] sm:$0xff] }
 0x249   : > { %2371 = vmatprep.mubr.f32.mxu1 %v3018_v27  ;;  %2301 = vmatmul.mubr.f32.vlgmr.msra.gmra.mxu0 %v3019_v30  ;;  %v1142_v23 = vld [vmem:[#allocation7 + $0x1870] sm:$0xff] }
 0x24a   : > { %2372 = vmatmul.mubr.f32.vlgmr.msra.gmra.mxu1 %v3020_v31  ;;  %2378 = vmatprep.subr.mxu0 %v999_v25  ;;  %v1135_v25 = vld [vmem:[#allocation7 + $0x1838] sm:$0xff]  ;;  %v1134_v27 = vld [vmem:[#allocation7 + $0x1830] sm:$0xff] }
 0x24b   : > { %2449 = vmatprep.subr.mxu1 %v1255_v26  ;;  %2379 = vmatpush1.msra.mxu0 %v998_v28  ;;  %v878_v26 = vld [vmem:[#allocation7 + $0x1030] sm:$0xff]  ;;  %v1127_v28 = vld [vmem:[#allocation7 + $0x17f8] sm:$0xff] }
 0x24c   : > { %2450 = vmatpush1.msra.mxu1 %v1254_v29  ;;  %2380 = vmatprep.subr.mxu0 %v991_v32  ;;  %v1383_v29 = vld [vmem:[#allocation7 + $0x1ff8] sm:$0xff]  ;;  %v1126_v30 = vld [vmem:[#allocation7 + $0x17f0] sm:$0xff] }
 0x24d   : > { %2451 = vmatprep.subr.mxu1 %v1247_v33  ;;  %2381 = vmatpush1.msra.mxu0 %v990_v34  ;;  %v1382_v31 = vld [vmem:[#allocation7 + $0x1ff0] sm:$0xff]  ;;  %v1119_v32 = vld [vmem:[#allocation7 + $0x17b8] sm:$0xff] }
 0x24e   : > { %2452 = vmatpush1.msra.mxu1 %v1246_v35  ;;  %2382 = vmatprep.subr.mxu0 %v983_v36  ;;  %v1375_v33 = vld [vmem:[#allocation7 + $0x1fb8] sm:$0xff]  ;;  %v1118_v34 = vld [vmem:[#allocation7 + $0x17b0] sm:$0xff] }
 0x24f   : > { %2453 = vmatprep.subr.mxu1 %v1239_v37  ;;  %2383 = vmatpush1.msra.mxu0 %v982_v38  ;;  %v1374_v35 = vld [vmem:[#allocation7 + $0x1fb0] sm:$0xff]  ;;  %v1111_v36 = vld [vmem:[#allocation7 + $0x1778] sm:$0xff] }
 0x250   : > { %2454 = vmatpush1.msra.mxu1 %v1238_v39  ;;  %2384 = vmatprep.subr.mxu0 %v975_v40  ;;  %v1367_v37 = vld [vmem:[#allocation7 + $0x1f78] sm:$0xff]  ;;  %v1110_v38 = vld [vmem:[#allocation7 + $0x1770] sm:$0xff] }
 0x251   : > { %2455 = vmatprep.subr.mxu1 %v1231_v41  ;;  %2385 = vmatpush1.msra.mxu0 %v974_v42  ;;  %v1366_v39 = vld [vmem:[#allocation7 + $0x1f70] sm:$0xff]  ;;  %v1103_v40 = vld [vmem:[#allocation7 + $0x1738] sm:$0xff] }
 0x252   : > { %2456 = vmatpush1.msra.mxu1 %v1230_v43  ;;  %2386 = vmatprep.subr.mxu0 %v967_v44  ;;  %v1359_v41 = vld [vmem:[#allocation7 + $0x1f38] sm:$0xff]  ;;  %v1102_v42 = vld [vmem:[#allocation7 + $0x1730] sm:$0xff] }
 0x253   : > { %2457 = vmatprep.subr.mxu1 %v1223_v45  ;;  %2387 = vmatpush1.msra.mxu0 %v966_v46  ;;  %v1358_v43 = vld [vmem:[#allocation7 + $0x1f30] sm:$0xff]  ;;  %v1095_v44 = vld [vmem:[#allocation7 + $0x16f8] sm:$0xff] }
 0x254   : > { %2458 = vmatpush1.msra.mxu1 %v1222_v47  ;;  %2388 = vmatprep.subr.mxu0 %v959_v48  ;;  %v1351_v45 = vld [vmem:[#allocation7 + $0x1ef8] sm:$0xff]  ;;  %v1094_v46 = vld [vmem:[#allocation7 + $0x16f0] sm:$0xff] }
 0x255   : > { %2459 = vmatprep.subr.mxu1 %v1215_v49  ;;  %2389 = vmatpush1.msra.mxu0 %v958_v50  ;;  %v1350_v47 = vld [vmem:[#allocation7 + $0x1ef0] sm:$0xff]  ;;  %v1087_v48 = vld [vmem:[#allocation7 + $0x16b8] sm:$0xff] }
 0x256   : > { %2460 = vmatpush1.msra.mxu1 %v1214_v51  ;;  %2390 = vmatprep.subr.mxu0 %v951_v52  ;;  %v1343_v49 = vld [vmem:[#allocation7 + $0x1eb8] sm:$0xff]  ;;  %v1086_v50 = vld [vmem:[#allocation7 + $0x16b0] sm:$0xff] }
 0x257   : > { %2461 = vmatprep.subr.mxu1 %v1207_v53  ;;  %2391 = vmatpush1.msra.mxu0 %v950_v54  ;;  %v1342_v51 = vld [vmem:[#allocation7 + $0x1eb0] sm:$0xff]  ;;  %v1079_v52 = vld [vmem:[#allocation7 + $0x1678] sm:$0xff] }
 0x258   : > { %2462 = vmatpush1.msra.mxu1 %v1206_v55  ;;  %2392 = vmatprep.subr.mxu0 %v943_v56  ;;  %v1335_v53 = vld [vmem:[#allocation7 + $0x1e78] sm:$0xff]  ;;  %v1078_v54 = vld [vmem:[#allocation7 + $0x1670] sm:$0xff] }
 0x259   : > { %2463 = vmatprep.subr.mxu1 %v1199_v57  ;;  %2393 = vmatpush1.msra.mxu0 %v942_v58  ;;  %v1334_v55 = vld [vmem:[#allocation7 + $0x1e70] sm:$0xff]  ;;  %v1071_v56 = vld [vmem:[#allocation7 + $0x1638] sm:$0xff] }
 0x25a   : > { %2464 = vmatpush1.msra.mxu1 %v1198_v59  ;;  %2394 = vmatprep.subr.mxu0 %v935_v60  ;;  %v1327_v57 = vld [vmem:[#allocation7 + $0x1e38] sm:$0xff]  ;;  %v1070_v58 = vld [vmem:[#allocation7 + $0x1630] sm:$0xff] }
 0x25b   : > { %2465 = vmatprep.subr.mxu1 %v1191_v61  ;;  %2395 = vmatpush1.msra.mxu0 %v934_v62  ;;  %v1326_v59 = vld [vmem:[#allocation7 + $0x1e30] sm:$0xff]  ;;  %v1063_v60 = vld [vmem:[#allocation7 + $0x15f8] sm:$0xff] }
 0x25c   : > { %2466 = vmatpush1.msra.mxu1 %v1190_v63  ;;  %2396 = vmatprep.subr.mxu0 %v927_v0  ;;  %v1319_v61 = vld [vmem:[#allocation7 + $0x1df8] sm:$0xff]  ;;  %v1062_v62 = vld [vmem:[#allocation7 + $0x15f0] sm:$0xff] }
 0x25d   : > { %2467 = vmatprep.subr.mxu1 %v1183_v1  ;;  %2397 = vmatpush1.msra.mxu0 %v926_v2  ;;  %v1318_v63 = vld [vmem:[#allocation7 + $0x1df0] sm:$0xff]  ;;  %v1055_v0 = vld [vmem:[#allocation7 + $0x15b8] sm:$0xff] }
 0x25e   : > { %2468 = vmatpush1.msra.mxu1 %v1182_v3  ;;  %2398 = vmatprep.subr.mxu0 %v919_v4  ;;  %v1311_v1 = vld [vmem:[#allocation7 + $0x1db8] sm:$0xff]  ;;  %v1054_v2 = vld [vmem:[#allocation7 + $0x15b0] sm:$0xff] }
 0x25f   : > { %2469 = vmatprep.subr.mxu1 %v1175_v5  ;;  %2399 = vmatpush1.msra.mxu0 %v918_v6  ;;  %v1310_v3 = vld [vmem:[#allocation7 + $0x1db0] sm:$0xff]  ;;  %v1047_v4 = vld [vmem:[#allocation7 + $0x1578] sm:$0xff] }
 0x260   : > { %2470 = vmatpush1.msra.mxu1 %v1174_v7  ;;  %2400 = vmatprep.subr.mxu0 %v911_v8  ;;  %v1303_v5 = vld [vmem:[#allocation7 + $0x1d78] sm:$0xff]  ;;  %v1046_v6 = vld [vmem:[#allocation7 + $0x1570] sm:$0xff] }
 0x261   : > { %2471 = vmatprep.subr.mxu1 %v1167_v9  ;;  %2401 = vmatpush1.msra.mxu0 %v910_v10  ;;  %v1302_v7 = vld [vmem:[#allocation7 + $0x1d70] sm:$0xff]  ;;  %v1039_v8 = vld [vmem:[#allocation7 + $0x1538] sm:$0xff] }
 0x262   : > { %2472 = vmatpush1.msra.mxu1 %v1166_v11  ;;  %2402 = vmatprep.subr.mxu0 %v903_v12  ;;  %v1295_v9 = vld [vmem:[#allocation7 + $0x1d38] sm:$0xff]  ;;  %v1038_v10 = vld [vmem:[#allocation7 + $0x1530] sm:$0xff] }
 0x263   : > { %2473 = vmatprep.subr.mxu1 %v1159_v13  ;;  %2403 = vmatpush1.msra.mxu0 %v902_v14  ;;  %v1294_v11 = vld [vmem:[#allocation7 + $0x1d30] sm:$0xff]  ;;  %v1031_v12 = vld [vmem:[#allocation7 + $0x14f8] sm:$0xff] }
 0x264   : > { %2474 = vmatpush1.msra.mxu1 %v1158_v15  ;;  %2404 = vmatprep.subr.mxu0 %v895_v16  ;;  %v1287_v13 = vld [vmem:[#allocation7 + $0x1cf8] sm:$0xff]  ;;  %v1030_v14 = vld [vmem:[#allocation7 + $0x14f0] sm:$0xff] }
 0x265   : > { %2475 = vmatprep.subr.mxu1 %v1151_v17  ;;  %2405 = vmatpush1.msra.mxu0 %v894_v18  ;;  %v1286_v15 = vld [vmem:[#allocation7 + $0x1cf0] sm:$0xff]  ;;  %v1023_v16 = vld [vmem:[#allocation7 + $0x14b8] sm:$0xff] }
 0x266   : > { %2476 = vmatpush1.msra.mxu1 %v1150_v19  ;;  %2406 = vmatprep.subr.mxu0 %v887_v20  ;;  %v1279_v17 = vld [vmem:[#allocation7 + $0x1cb8] sm:$0xff]  ;;  %v1022_v18 = vld [vmem:[#allocation7 + $0x14b0] sm:$0xff] }
 0x267   : > { %2477 = vmatprep.subr.mxu1 %v1143_v21  ;;  %2407 = vmatpush1.msra.mxu0 %v886_v22  ;;  %v1278_v19 = vld [vmem:[#allocation7 + $0x1cb0] sm:$0xff]  ;;  %v1015_v20 = vld [vmem:[#allocation7 + $0x1478] sm:$0xff] }
 0x268   : > { %2478 = vmatpush1.msra.mxu1 %v1142_v23  ;;  %2408 = vmatprep.subr.mxu0 %v879_v24  ;;  %v1271_v21 = vld [vmem:[#allocation7 + $0x1c78] sm:$0xff]  ;;  %v1014_v22 = vld [vmem:[#allocation7 + $0x1470] sm:$0xff] }
 0x269   : > { %2479 = vmatprep.subr.mxu1 %v1135_v25  ;;  %2409 = vmatpush1.msra.mxu0 %v878_v26  ;;  %v1270_v23 = vld [vmem:[#allocation7 + $0x1c70] sm:$0xff]  ;;  %v1007_v24 = vld [vmem:[#allocation7 + $0x1438] sm:$0xff] }
 0x26a   : > { %2480 = vmatpush1.msra.mxu1 %v1134_v27  ;;  %2410 = vmatprep.subr.mxu0 %v1127_v28  ;;  %v1263_v25 = vld [vmem:[#allocation7 + $0x1c38] sm:$0xff]  ;;  %v1006_v26 = vld [vmem:[#allocation7 + $0x1430] sm:$0xff]  ;;  %v3021_v28 = vld [vmem:[%s3386_s11 + $0x28] sm:$0xff] }
 0x26b   : > { %2481 = vmatprep.subr.mxu1 %v1383_v29  ;;  %2411 = vmatpush2.msra.mxu0 %v1126_v30  ;;  %v1262_v27 = vld [vmem:[#allocation7 + $0x1c30] sm:$0xff]  ;;  %v3022_v29 = vld [vmem:[%s3386_s11 + $0x38] sm:$0xff]  ;;  %v3023_v30 = vld [vmem:[%s3386_s11 + $0x20] sm:$0xff] }
 0x26c   : > { %2482 = vmatpush2.msra.mxu1 %v1382_v31  ;;  %2412 = vmatprep.subr.mxu0 %v1119_v32  ;;  %v3024_v31 = vld [vmem:[%s3386_s11 + $0x30] sm:$0xff]  ;;  %v1450_v32 = vpop.f32.mrf.mxu0 }
 0x26d   : > { %2483 = vmatprep.subr.mxu1 %v1375_v33  ;;  %2413 = vmatpush2.msra.mxu0 %v1118_v34  ;;  %v1521_v33 = vpop.f32.mrf.mxu1 }
 0x26e   : > { %2484 = vmatpush2.msra.mxu1 %v1374_v35  ;;  %2414 = vmatprep.subr.mxu0 %v1111_v36  ;;  %v1452_v34 = vpop.f32.mrf.mxu0 }
 0x26f   : > { %2485 = vmatprep.subr.mxu1 %v1367_v37  ;;  %2415 = vmatpush2.msra.mxu0 %v1110_v38  ;;  %v1523_v36 = vpop.f32.mrf.mxu1 }
 0x270   : > { %2486 = vmatpush2.msra.mxu1 %v1366_v39  ;;  %2416 = vmatprep.subr.mxu0 %v1103_v40  ;;  %v1592_v35 = vpop.f32.mrf.mxu0 }
 0x271   : > { %2487 = vmatprep.subr.mxu1 %v1359_v41  ;;  %2417 = vmatpush2.msra.mxu0 %v1102_v42  ;;  %v1663_v37 = vpop.f32.mrf.mxu1 }
 0x272   : > { %2488 = vmatpush2.msra.mxu1 %v1358_v43  ;;  %2418 = vmatprep.subr.mxu0 %v1095_v44  ;;  %v1594_v38 = vpop.f32.mrf.mxu0  ;;  %v1524_v43 = vadd.f32 %v1523_v36, %v1452_v34 }
 0x273   : > { %2489 = vmatprep.subr.mxu1 %v1351_v45  ;;  %2419 = vmatpush2.msra.mxu0 %v1094_v46  ;;  %v1665_v40 = vpop.f32.mrf.mxu1  ;;  %v1522_v45 = vadd.f32 %v1521_v33, %v1450_v32 }
 0x274   : > { %2490 = vmatpush2.msra.mxu1 %v1350_v47  ;;  %2420 = vmatprep.subr.mxu0 %v1087_v48  ;;  %v1734_v39 = vpop.f32.mrf.mxu0  ;;  %v1595_v46 = vadd.f32 %v1594_v38, %v1524_v43  ;;  %v340_v38 = vld [vmem:[%s3379_s30 + $0x20] sm:$0xff] }
 0x275   : > { %2491 = vmatprep.subr.mxu1 %v1343_v49  ;;  %2421 = vmatpush2.msra.mxu0 %v1086_v50  ;;  %v1805_v41 = vpop.f32.mrf.mxu1  ;;  %v1593_v48 = vadd.f32 %v1592_v35, %v1522_v45  ;;  %v355_v35 = vld [vmem:[%s3392_s14 + $0x18] sm:$0xff] }
 0x276   : > { %2492 = vmatpush2.msra.mxu1 %v1342_v51  ;;  %2422 = vmatprep.subr.mxu0 %v1079_v52  ;;  %v1736_v42 = vpop.f32.mrf.mxu0  ;;  %v1806_v49 = vadd.f32 %v1805_v41, %v1734_v39  ;;  %v337_v52 = vld [vmem:[%s3379_s30 + $0x8] sm:$0xff] }
 0x277   : > { %2493 = vmatprep.subr.mxu1 %v1335_v53  ;;  %2423 = vmatpush2.msra.mxu0 %v1078_v54  ;;  %v1807_v47 = vpop.f32.mrf.mxu1  ;;  %v1666_v53 = vadd.f32 %v1665_v40, %v1595_v46 }
 0x278   : > { %2494 = vmatpush2.msra.mxu1 %v1334_v55  ;;  %2424 = vmatprep.subr.mxu0 %v1071_v56  ;;  %v1876_v44 = vpop.f32.mrf.mxu0  ;;  %v1664_v56 = vadd.f32 %v1663_v37, %v1593_v48 }
 0x279   : > { %2495 = vmatprep.subr.mxu1 %v1327_v57  ;;  %2425 = vmatpush2.msra.mxu0 %v1070_v58  ;;  %v1947_v50 = vpop.f32.mrf.mxu1  ;;  %v1877_v54 = vadd.f32 %v1876_v44, %v1806_v49  ;;  %v336_v58 = vld [vmem:[%s3379_s30] sm:$0xff]  ;;  %v2595_v44 = vrot.slane %v355_v35, 7  ;;  %v341_v49 = vld [vmem:[%s3379_s30 + $0x28] sm:$0xff] }
 0x27a   : > { %2496 = vmatpush2.msra.mxu1 %v1326_v59  ;;  %2426 = vmatprep.subr.mxu0 %v1063_v60  ;;  %v1878_v51 = vpop.f32.mrf.mxu0  ;;  %v2529_v59 = vrot.slane %v337_v52, 7  ;;  %v1808_v60 = vadd.f32 %v1807_v47, %v1736_v42  ;;  %v2532_v47 = vrot.slane %v340_v38, 7 }
 0x27b   : > { %2497 = vmatprep.subr.mxu1 %v1319_v61  ;;  %2427 = vmatpush2.msra.mxu0 %v1062_v62  ;;  %v1949_v57 = vpop.f32.mrf.mxu1  ;;  %v353_v61 = vld [vmem:[%s3392_s14 + $0x8] sm:$0xff]  ;;  %v2561_v62 = vrot.slane %v1666_v53, 7 }
 0x27c   : > { %2498 = vmatpush2.msra.mxu1 %v1318_v63  ;;  %2428 = vmatprep.subr.mxu0 %v1055_v0  ;;  %v1948_v63 = vadd.f32 %v1947_v50, %v1877_v54  ;;  %v3185_v50 = vmov 0.0  }
 0x27d   : > { %2499 = vmatprep.subr.mxu1 %v1311_v1  ;;  %2429 = vmatpush2.msra.mxu0 %v1054_v2  ;;  %v338_v2 = vld [vmem:[%s3379_s30 + $0x10] sm:$0xff] }
 0x27e   : > { %2500 = vmatpush2.msra.mxu1 %v1310_v3  ;;  %2430 = vmatprep.subr.mxu0 %v1047_v4  ;;  %v1879_v3 = vadd.f32 %v1878_v51, %v1808_v60  ;;  %v352_v4 = vld [vmem:[%s3392_s14] sm:$0xff] }
 0x27f   : > { %2501 = vmatprep.subr.mxu1 %v1303_v5  ;;  %2431 = vmatpush2.msra.mxu0 %v1046_v6  ;;  %v2528_v5 = vrot.slane %v336_v58, 7  ;;  %v2560_v6 = vrot.slane %v1664_v56, 7 }
 0x280   : > { %2502 = vmatpush2.msra.mxu1 %v1302_v7  ;;  %2432 = vmatprep.subr.mxu0 %v1039_v8  ;;  %v2545_v8 = vsub.f32 %v337_v52, %v2529_v59  ;;  %v356_v52 = vld [vmem:[%s3392_s14 + $0x20] sm:$0xff] }
 0x281   : > { %2503 = vmatprep.subr.mxu1 %v1295_v9  ;;  %2433 = vmatpush2.msra.mxu0 %v1038_v10  ;;  %v2593_v9 = vrot.slane %v353_v61, 7  ;;  %v2577_v10 = vsub.f32 %v1666_v53, %v2561_v62 }
 0x282   : > { %2504 = vmatpush2.msra.mxu1 %v1294_v11  ;;  %2434 = vmatprep.subr.mxu0 %v1031_v12  ;;  %v2530_v11 = vrot.slane %v338_v2, 7  ;;  %v2562_v12 = vrot.slane %v1948_v63, 7 }
 0x283   : > { %2505 = vmatprep.subr.mxu1 %v1287_v13  ;;  %2435 = vmatpush2.msra.mxu0 %v1030_v14 }
 0x284   : > { %2506 = vmatpush2.msra.mxu1 %v1286_v15  ;;  %2436 = vmatprep.subr.mxu0 %v1023_v16  ;;  %v2592_v15 = vrot.slane %v352_v4, 7  ;;  %v354_v16 = vld [vmem:[%s3392_s14 + $0x10] sm:$0xff] }
 0x285   : > { %2507 = vmatprep.subr.mxu1 %v1279_v17  ;;  %2437 = vmatpush2.msra.mxu0 %v1022_v18  ;;  %v2018_v55 = vpop.f32.mrf.mxu0  ;;  %v1950_v17 = vadd.f32 %v1949_v57, %v1879_v3  ;;  %v2544_v18 = vsub.f32 %v336_v58, %v2528_v5  ;;  %v2533_v58 = vrot.slane %v341_v49, 7 }
 0x286   : > { %2508 = vmatpush2.msra.mxu1 %v1278_v19  ;;  %2438 = vmatprep.subr.mxu0 %v1015_v20  ;;  %v2089_v0 = vpop.f32.mrf.mxu1  ;;  %v2576_v19 = vsub.f32 %v1664_v56, %v2560_v6  ;;  %v339_v20 = vld [vmem:[%s3379_s30 + $0x18] sm:$0xff]  ;;  %v2611_v56 = vmul.f32 %v2595_v44, %v355_v35 }
 0x287   : > { %2509 = vmatprep.subr.mxu1 %v1271_v21  ;;  %2439 = vmatpush2.msra.mxu0 %v1014_v22  ;;  %v2020_v1 = vpop.f32.mrf.mxu0  ;;  %v2090_v13 = vadd.f32 %v2089_v0, %v2018_v55  ;;  %v2563_v32 = vrot.slane %v1950_v17, 7  ;;  %v357_v0 = vld [vmem:[%s3392_s14 + $0x28] sm:$0xff] }
 0x288   : > { %2510 = vmatpush2.msra.mxu1 %v1270_v23  ;;  %2440 = vmatprep.subr.mxu0 %v1007_v24  ;;  %v2091_v14 = vpop.f32.mrf.mxu1  ;;  %v2609_v24 = vmul.f32 %v2593_v9, %v353_v61  ;;  %v2616_v34 = vsub.f32 %v2544_v18, %v2576_v19  ;;  %v2548_v61 = vsub.f32 %v340_v38, %v2532_v47  ;;  %v2597_v9 = vrot.slane %v357_v0, 7 }
 0x289   : > { %2511 = vmatprep.subr.mxu1 %v1263_v25  ;;  %2441 = vmatpush2.msra.mxu0 %v1006_v26  ;;  %v2092_v25 = vadd.f32 %v2091_v14, %v2020_v1  ;;  %v2617_v26 = vsub.f32 %v2545_v8, %v2577_v10  ;;  %v2579_v43 = vsub.f32 %v1950_v17, %v2563_v32  ;;  %vm2695_vm4 = vcmp.gt.f32.partialorder %v2611_v56, 0.0 }
 0x28a   : > { %2442 = vmatprep.mubr.f32.mxu0 %v3021_v28  ;;  %2512 = vmatpush2.msra.mxu1 %v1262_v27  ;;  %v2546_v27 = vsub.f32 %v338_v2, %v2530_v11  ;;  %v2578_v28 = vsub.f32 %v1948_v63, %v2562_v12  ;;  %vm2693_vm1 = vcmp.gt.f32.partialorder %v2609_v24, 0.0  ;;  %v2596_v63 = vrot.slane %v356_v52, 7 }
 0x28b   : > { %2513 = vmatprep.mubr.f32.mxu1 %v3022_v29  ;;  %2443 = vmatmul.mubr.f32.vlgmr.msra.gmra.mxu0 %v3023_v30  ;;  %v2594_v29 = vrot.slane %v354_v16, 7  ;;  %v2608_v30 = vmul.f32 %v2592_v15, %v352_v4  ;;  %v2625_v39 = vmul.f32 %v2617_v26, %v2609_v24  ;;  %v2922_v54 = vsel %vm2693_vm1, 1.0, %v3185_v50 }
 0x28c   : > { %2514 = vmatmul.mubr.f32.vlgmr.msra.gmra.mxu1 %v3024_v31  ;;  %v2531_v31 = vrot.slane %v339_v20, 7  ;;  %v2618_v41 = vsub.f32 %v2546_v27, %v2578_v28  ;;  %v2725_v3 = vrot.slane %v2922_v54, 1  ;;  %v2612_v11 = vmul.f32 %v2596_v63, %v356_v52  ;;  %v342_v27 = vld [vmem:[%s3379_s30 + $0x30] sm:$0xff] }
 0x28d   : > { %vm2692_vm0 = vcmp.gt.f32.partialorder %v2608_v30, 0.0  ;;  %v2610_v40 = vmul.f32 %v2594_v29, %v354_v16  ;;  %v2624_v46 = vmul.f32 %v2616_v34, %v2608_v30  ;;  %v2633_v53 = vmul.f32 %v2625_v39, %v2625_v39 }
 0x28e   : > { %v2547_v42 = vsub.f32 %v339_v20, %v2531_v31  ;;  %v2921_v51 = vsel %vm2692_vm0, 1.0, %v3185_v50  ;;  %v2741_v17 = vsel %vm2664_vm3, %v2725_v3, 0.0  ;;  %v358_v20 = vld [vmem:[%s3392_s14 + $0x30] sm:$0xff]  ;;  %vm2696_vm5 = vcmp.gt.f32.partialorder %v2612_v11, 0.0 }
 0x28f   : > { %v2626_v55 = vmul.f32 %v2618_v41, %v2610_v40  ;;  %vm2694_vm2 = vcmp.gt.f32.partialorder %v2610_v40, 0.0  ;;  %v2632_v60 = vmul.f32 %v2624_v46, %v2624_v46  ;;  %v2724_v1 = vrot.slane %v2921_v51, 1 }
 0x290   : > { %v2619_v57 = vsub.f32 %v2547_v42, %v2579_v43  ;;  %v2649_v2 = vrot.slane %v2633_v53, 1  ;;  %v2923_v5 = vsel %vm2694_vm2, 1.0, %v3185_v50  ;;  %v2598_v31 = vrot.slane %v358_v20, 7 }
 0x291   : > { %v2634_v4 = vmul.f32 %v2626_v55, %v2626_v55  ;;  %v2648_v10 = vrot.slane %v2632_v60, 1  ;;  %v2726_v19 = vrot.slane %v2923_v5, 1  ;;  %v2534_v43 = vrot.slane %v342_v27, 7 }
 0x292   : > { %v2627_v6 = vmul.f32 %v2619_v57, %v2611_v56  ;;  %v2666_v16 = vsel %vm2664_vm3, %v2649_v2, 0.0  ;;  %v2925_v44 = vsel %vm2696_vm5, 1.0, %v3185_v50  ;;  %v2614_v52 = vmul.f32 %v2598_v31, %v358_v20 }
 0x293   : > { %v2650_v18 = vrot.slane %v2634_v4, 1  ;;  %v2743_v38 = vsel %vm2664_vm3, %v2726_v19, 0.0  ;;  %v2728_v56 = vrot.slane %v2925_v44, 1 }
 0x294   : > { %vm2698_vm7 = vcmp.gt.f32.partialorder %v2614_v52, 0.0 }
 0x2c7   : > { %v2160_v7 = vpop.f32.mrf.mxu0 }
 0x2c8   : > { %v2161_v21 = vadd.f32 %v2160_v7, %v2090_v13  ;;  %v2549_v7 = vsub.f32 %v341_v49, %v2533_v58  ;;  %v2740_v13 = vsel %vm2664_vm3, %v2724_v1, 0.0 }
 0x2c9   : > { %v2231_v22 = vpop.f32.mrf.mxu1  ;;  %v2162_v23 = vpop.f32.mrf.mxu0  ;;  %v2742_v32 = vadd.f32 %v2741_v17, %v2740_v13 }
 0x2ca   : > { %v2163_v33 = vadd.f32 %v2162_v23, %v2092_v25  ;;  %v2232_v36 = vadd.f32 %v2231_v22, %v2161_v21  ;;  %v2635_v21 = vmul.f32 %v2627_v6, %v2627_v6  ;;  %v2924_v22 = vsel %vm2695_vm4, 1.0, %v3185_v50 }
 0x2cb   : > { %v2233_v37 = vpop.f32.mrf.mxu1  ;;  %v2613_v23 = vmul.f32 %v2597_v9, %v357_v0  ;;  %v2665_v25 = vsel %vm2664_vm3, %v2648_v10, 0.0  ;;  %v2727_v34 = vrot.slane %v2924_v22, 1  ;;  %v2744_v53 = vadd.f32 %v2743_v38, %v2742_v32 }
 0x2cc   : > { %v2234_v45 = vadd.f32 %v2233_v37, %v2163_v33  ;;  %v2564_v48 = vrot.slane %v2232_v36, 7  ;;  %v2667_v28 = vadd.f32 %v2666_v16, %v2665_v25  ;;  %v2668_v33 = vsel %vm2664_vm3, %v2650_v18, 0.0  ;;  %v359_v37 = vld [vmem:[%s3392_s14 + $0x38] sm:$0xff] }
 0x2cd   : > { %v2651_v39 = vrot.slane %v2635_v21, 1  ;;  %vm2697_vm6 = vcmp.gt.f32.partialorder %v2613_v23, 0.0  ;;  %v2599_v51 = vrot.slane %v359_v37, 7  ;;  %v2745_v57 = vsel %vm2664_vm3, %v2727_v34, 0.0 }
 0x2ce   : > { %v2565_v59 = vrot.slane %v2234_v45, 7  ;;  %v2580_v62 = vsub.f32 %v2232_v36, %v2564_v48  ;;  %v343_v36 = vld [vmem:[%s3379_s30 + $0x38] sm:$0xff]  ;;  %v2746_v5 = vadd.f32 %v2745_v57, %v2744_v53  ;;  %v2747_v9 = vsel %vm2664_vm3, %v2728_v56, 0.0 }
 0x2cf   : > { %v2535_v49 = vrot.slane %v343_v36, 7  ;;  %v2615_v3 = vmul.f32 %v2599_v51, %v359_v37  ;;  %v2670_v4 = vsel %vm2664_vm3, %v2651_v39, 0.0 }
 0x2d0   : > { %v2581_v8 = vsub.f32 %v2234_v45, %v2565_v59  ;;  %v2620_v12 = vsub.f32 %v2548_v61, %v2580_v62  ;;  %v2550_v59 = vsub.f32 %v342_v27, %v2534_v43  ;;  %v2669_v61 = vadd.f32 %v2668_v33, %v2667_v28 }
 0x2d1   : > { %v2926_v62 = vsel %vm2697_vm6, 1.0, %v3185_v50  ;;  %v2551_v2 = vsub.f32 %v343_v36, %v2535_v49  ;;  %vm2699_vm8 = vcmp.gt.f32.partialorder %v2615_v3, 0.0  ;;  %v2748_v16 = vadd.f32 %v2747_v9, %v2746_v5 }
 0x2d2   : > { %v2621_v24 = vsub.f32 %v2549_v7, %v2581_v8  ;;  %v2628_v26 = vmul.f32 %v2620_v12, %v2612_v11  ;;  %v2729_v8 = vrot.slane %v2926_v62, 1  ;;  %v2927_v11 = vsel %vm2698_vm7, 1.0, %v3185_v50 }
 0x2d3   : > { %v2730_v19 = vrot.slane %v2927_v11, 1  ;;  %v2928_v22 = vsel %vm2699_vm8, 1.0, %v3185_v50 }
 0x2d4   : > { %v2629_v40 = vmul.f32 %v2621_v24, %v2613_v23  ;;  %v2636_v45 = vmul.f32 %v2628_v26, %v2628_v26  ;;  %v2749_v20 = vsel %vm2664_vm3, %v2729_v8, 0.0 }
 0x2d5   : > { %v2750_v26 = vadd.f32 %v2749_v20, %v2748_v16 }
 0x2d6   : > { %v2637_v58 = vmul.f32 %v2629_v40, %v2629_v40  ;;  %v2652_v63 = vrot.slane %v2636_v45, 1 }
 0x2d8   : > { %v2653_v10 = vrot.slane %v2637_v58, 1 }
 0x2da   : > { %v2674_v25 = vsel %vm2664_vm3, %v2653_v10, 0.0 }
 0x309   : > { %v2302_v14 = vpop.f32.mrf.mxu0 }
 0x30a   : > { %v2373_v15 = vpop.f32.mrf.mxu1 }
 0x30b   : > { %v2304_v29 = vpop.f32.mrf.mxu0  ;;  %v2374_v35 = vadd.f32 %v2373_v15, %v2302_v14  ;;  %v2672_v14 = vsel %vm2664_vm3, %v2652_v63, 0.0  ;;  %v2671_v15 = vadd.f32 %v2670_v4, %v2669_v61 }
 0x30c   : > { %v2375_v30 = vpop.f32.mrf.mxu1 }
 0x30d   : > { %v2376_v46 = vadd.f32 %v2375_v30, %v2304_v29  ;;  %v2673_v21 = vadd.f32 %v2672_v14, %v2671_v15  ;;  %v2731_v29 = vrot.slane %v2928_v22, 1  ;;  %v2751_v30 = vsel %vm2664_vm3, %v2730_v19, 0.0 }
 0x30f   : > { %v2675_v31 = vadd.f32 %v2674_v25, %v2673_v21  ;;  %v2753_v50 = vsel %vm2664_vm3, %v2731_v29, 0.0 }
 0x34b   : > { %v2444_v41 = vpop.f32.mrf.mxu0 }
 0x34c   : > { %v2515_v42 = vpop.f32.mrf.mxu1  ;;  %v2445_v47 = vadd.f32 %v2444_v41, %v2374_v35  ;;  %v2752_v35 = vadd.f32 %v2751_v30, %v2750_v26 }
 0x34d   : > { %v2446_v48 = vpop.f32.mrf.mxu0 }
 0x34e   : > { %v2516_v54 = vadd.f32 %v2515_v42, %v2445_v47  ;;  %v2447_v55 = vadd.f32 %v2446_v48, %v2376_v46  ;;  %v2517_v60 = vpop.f32.mrf.mxu1  ;;  %v2754_v38 = vadd.f32 %v2753_v50, %v2752_v35 }
 0x350   : > { %v2566_v0 = vrot.slane %v2516_v54, 7  ;;  %v2518_v1 = vadd.f32 %v2517_v60, %v2447_v55 }
 0x352   : > { %v2582_v6 = vsub.f32 %v2516_v54, %v2566_v0  ;;  %v2567_v7 = vrot.slane %v2518_v1, 7 }
 0x354   : > { %v2622_v12 = vsub.f32 %v2550_v59, %v2582_v6  ;;  %v2583_v13 = vsub.f32 %v2518_v1, %v2567_v7 }
 0x356   : > { %v2623_v17 = vsub.f32 %v2551_v2, %v2583_v13  ;;  %v2630_v18 = vmul.f32 %v2622_v12, %v2614_v52 }
 0x358   : > { %v2631_v23 = vmul.f32 %v2623_v17, %v2615_v3  ;;  %v2638_v24 = vmul.f32 %v2630_v18, %v2630_v18 }
 0x35a   : > { %v2639_v27 = vmul.f32 %v2631_v23, %v2631_v23  ;;  %v2654_v28 = vrot.slane %v2638_v24, 1 }
 0x35c   : > { %v2655_v32 = vrot.slane %v2639_v27, 1  ;;  %v2676_v33 = vsel %vm2664_vm3, %v2654_v28, 0.0 }
 0x35d   : > { %v2677_v34 = vadd.f32 %v2676_v33, %v2675_v31 }
 0x35e   : > { %v2678_v36 = vsel %vm2664_vm3, %v2655_v32, 0.0 }
 0x35f   : > { %v2679_v37 = vadd.f32 %v2678_v36, %v2677_v34 }
 0x361   : > { %2680 = vadd.xlane.f32.xlu0 %v2679_v37 }
 0x365   : > { %2755 = vadd.xlane.f32.xlu0 %v2754_v38 }
 0x3ea   : > { %v2681_v39 = vpop.xlane.xlu0 %2680 }
 0x3eb   : > { %v2682_v40 = vrot.slane %v2681_v39, 4 }
 0x3ed   : > { %v2683_v41 = vadd.f32 %v2682_v40, %v2681_v39 }
 0x3ee   : > { %v2756_v42 = vpop.xlane.xlu0 %2755 }
 0x3ef   : > { %v2684_v43 = vrot.slane %v2683_v41, 2  ;;  %v2757_v44 = vrot.slane %v2756_v42, 4 }
 0x3f1   : > { %v2758_v45 = vadd.f32 %v2757_v44, %v2756_v42  ;;  %v2685_v46 = vadd.f32 %v2684_v43, %v2683_v41 }
 0x3f3   : > { %v2759_v47 = vrot.slane %v2758_v45, 2  ;;  %v2686_v48 = vrot.slane %v2685_v46, 1 }
 0x3f5   : > { %v2760_v49 = vadd.f32 %v2759_v47, %v2758_v45  ;;  %v2687_v51 = vadd.f32 %v2686_v48, %v2685_v46 }
 0x3f7   : > { %2934 = vpush %v2687_v51  ;;  %v2761_v52 = vrot.slane %v2760_v49, 1 }
 0x3f9   : > { %v2762_v53 = vadd.f32 %v2761_v52, %v2760_v49 }
 0x3fb   : > { %2936 = vpush %v2762_v53 }
 0x428   : > { %s2935_s6 = spop %2934 }
 0x429   : > { %v2689_v54 = vstv %s2935_s6 }
 0x42a   : > { %2691 = vst.msk [vmem:[%s332_s25] sm:$0x1] %vm2690_vm9, %v2689_v54 }
 0x42c   : > { %s2937_s17 = spop %2936 }
 0x42d   : > { %v2764_v55 = vstv %s2937_s17 }
 0x42e   : > { %2765 = vst.msk [vmem:[%s335_s15] sm:$0x1] %vm2690_vm9, %v2764_v55 }
 0x42f PF: > { %s3516_s21 = sld [smem:[#allocation12_spill]]  ;;  %s3518_s18 = smov %s3169_s19 }
 0x430   : > { %s3517_s24 = sld [smem:[#allocation13_spill]]  ;;  %s3519_s19 = smov %s3173_s20 }
 0x435   : > { %p20_p9 = scmp.ge.s32.totalorder %s3516_s21, 4  }
 0x436   : > { %s3520_s20 = smov %s3517_s24 }
 0x437   :  { %22 = sbr.rel (!%p20_p9) target bundleno = 8 (0x8), region = 116 }
 0x43c   :  { %2795 = vsyncpa [#allocation3], 1 }
 0x43d   :  { %2797 = vsyncpa [#allocation3 + $0x1], 1 }
 0x43e   :  { %2798 = vsyncpa [#allocation5], 1 }
 0x43f   :  { %2800 = vsyncpa [#allocation5 + $0x1], 1 }
 0x440   :  { %2801 = vsyncpa [#allocation8], 1 }

</bundles_post_ra>
